<compile_context>
chip_gen: v5e
topology: v5e:2x2
jax: 0.10.0
libtpu: 0.0.40
codegen_flags: <defaults>
</compile_context>

<pallas_src>
import jax
import jax.numpy as jnp
from jax import lax
from jax.experimental import pallas as pl
from jax.experimental.pallas import tpu as pltpu

POS_EMB_NUM_FREQS = 2
AGG_CHANNELS = 4
CHANNELS = 16
NUM_OUTPUTS = 8
POS_EMB_DIM = 2 * (1 + 2 * POS_EMB_NUM_FREQS)      # 10 (include_input + sin/cos)
IN_CHANNELS = AGG_CHANNELS + 2 * POS_EMB_DIM       # 24 (abs emb + rel emb + feats)
RAW_CHANNELS = POS_EMB_DIM + 2 + AGG_CHANNELS      # 16 (abs emb + raw rel + feats)


# ----------------------------- Pallas kernel --------------------------------
def make_tower_kernel(NB, H, W):
    C1W = IN_CHANNELS * W        # 384 lanes (layer-1 input)
    CMW = CHANNELS * W           # 256 lanes (mid layers)
    COW = NUM_OUTPUTS * W        # 128 lanes (output)
    ABSW = POS_EMB_DIM * W       # 160 lanes (abs embedding)
    M = NB * H                   # matmul M dim (image rows per step)

    def kernel(x_ref, w1_ref, w23_ref, w4_ref, b1_ref, b23_ref, b4_ref,
               out_ref, p_ref):
        f32, bf16 = jnp.float32, jnp.bfloat16

        # Only the two zero-padding border rows need clearing; interior rows
        # (1..H) are fully overwritten by the single full-width store below
        # (invariant required for correctness - keep it if refactoring).
        zrow = jnp.zeros((NB, 1, C1W), bf16)
        p_ref[:, 0:1, :] = zrow
        p_ref[:, H + 1:H + 2, :] = zrow

        # Assemble the 24-channel layer-1 input row in registers and write it
        # with one lane-dense 384-lane store.  Channel order matches the
        # PyTorch concat [abs_emb(10) | rel_emb(10) | feats(4)]; the rel
        # sin/cos positional embedding is computed here on the EUP so only 16
        # channels per image are DMA'd in.
        x = x_ref[...]                                      # (NB, H, 16*W) f32
        rel = x[:, :, ABSW:ABSW + 2 * W]                    # raw rel coords
        parts = [x[:, :, :ABSW], rel]                       # abs emb, include_input
        for i in range(POS_EMB_NUM_FREQS):                  # freqs 1, 2 (log sampling)
            f = float(2.0 ** i)
            parts.append(jnp.sin(rel * f))
            parts.append(jnp.cos(rel * f))
        parts.append(x[:, :, ABSW + 2 * W:])                # feats (4*W)
        p_ref[:, 1:H + 1, :] = jnp.concatenate(parts, axis=-1).astype(bf16)

        def conv3x3(cin_w, wmat, b_row, relu=True):
            # Fused 3x3 conv: ONE MXU matmul with K = 3*cin_w.  The three
            # kh-shifted row slabs are lane-concatenated (aligned: cin_w is a
            # multiple of 128) and multiplied against the kh-stacked banded
            # weight matrix (kw taps + width zero-padding folded in).
            lhs = jnp.concatenate(
                [p_ref[:, kh:kh + H, :cin_w].reshape(M, cin_w)
                 for kh in range(3)], axis=-1)              # bf16 (M, 3*cin_w)
            y = jnp.dot(lhs, wmat, preferred_element_type=f32) + b_row
            return jnp.maximum(y, 0.0) if relu else y

        # layer 1: 24 -> 16 channels
        h = conv3x3(C1W, w1_ref[...], b1_ref[...])
        # layers 2-3: 16 -> 16 channels (bf16 inter-layer writeback, cast once)
        for li in range(2):
            p_ref[:, 1:H + 1, :CMW] = h.astype(bf16).reshape(NB, H, CMW)
            h = conv3x3(CMW, w23_ref[li], b23_ref[li])
        # layer 4: 1x1 conv 16 -> 8 (no activation)
        y = jnp.dot(h.astype(bf16), w4_ref[...],
                    preferred_element_type=f32) + b4_ref[...]
        out_ref[...] = y.reshape(NB, H, COW)                # lane-dense (128)

    return kernel


# ----------------------- banded weight construction --------------------------
def _band_matrices(w, W):
    # w: (3, 3, Cin, Cout) HWIO.  Returns (3*Cin*W, Cout*W) with
    #   M[kh*Cin*W + ci*W + wi, co*W + wo] = w[kh, wi-wo+1, ci, co] if 0<=wi-wo+1<=2
    #                                      = 0                       otherwise
    # i.e. the kw taps and the width zero-padding are folded into the weights,
    # and the three kh bands are stacked along K to match the in-kernel
    # [kh=0 | kh=1 | kh=2] LHS lane-concat (single fused matmul per layer).
    Cin, Cout = w.shape[2], w.shape[3]
    wi = jnp.arange(W)[:, None]
    wo = jnp.arange(W)[None, :]
    kw = wi - wo + 1
    valid = (kw >= 0) & (kw <= 2)
    kw_c = jnp.clip(kw, 0, 2)
    mats = []
    for kh in range(3):
        g = w[kh][kw_c]                                     # (W, W, Cin, Cout)
        g = jnp.where(valid[:, :, None, None], g, 0.0)
        mats.append(jnp.transpose(g, (2, 0, 3, 1)).reshape(Cin * W, Cout * W))
    return jnp.concatenate(mats, axis=0)                    # (3*Cin*W, Cout*W)


def _kron_eye(w, W):
    # 1x1 conv in row layout: M[ci*W+wi, co*W+wo] = w[ci, co] * (wi == wo).
    Cin, Cout = w.shape
    eye = jnp.eye(W, dtype=w.dtype)
    m = w[:, None, :, None] * eye[None, :, None, :]
    return m.reshape(Cin * W, Cout * W)


def pack_tower_params(params, W):
    w1, b1, w2, b2, w3, b3, w4, b4 = params
    m1 = _band_matrices(w1, W).astype(jnp.bfloat16)                    # (3*24W, 16W)
    m23 = jnp.stack([_band_matrices(w2, W),
                     _band_matrices(w3, W)]).astype(jnp.bfloat16)      # (2, 3*16W, 16W)
    m4 = _kron_eye(w4, W).astype(jnp.bfloat16)                         # (16W, 8W)
    b1r = jnp.repeat(b1, W)[None].astype(jnp.float32)                  # (1, 16W)
    b23r = jnp.stack([jnp.repeat(b2, W),
                      jnp.repeat(b3, W)])[:, None, :].astype(jnp.float32)  # (2, 1, 16W)
    b4r = jnp.repeat(b4, W)[None].astype(jnp.float32)                  # (1, 8W)
    return m1, m23, m4, b1r, b23r, b4r


# ------------------------------ pallas_call ----------------------------------
def tower_apply(x_rows, packed, H, W):
    N = x_rows.shape[0]
    C1W, CMW, COW = IN_CHANNELS * W, CHANNELS * W, NUM_OUTPUTS * W
    RAWW = RAW_CHANNELS * W

    # Grid collapse: run everything in one step (M = N*H rows, weights fetched
    # once) unless a 2-way "parallel" split (v7x megacore) still leaves each
    # core with >= 256 matmul rows.  At the demo size (N=2, H=16) => G=1.
    G = 2 if (N % 2 == 0 and (N // 2) * H >= 256) else 1
    NB = N // G

    m1, m23, m4, b1r, b23r, b4r = packed
    consts = (m1, m23, m4, b1r, b23r, b4r)

    def const_spec(a):
        nd = a.ndim
        return pl.BlockSpec(a.shape, lambda g, _nd=nd: (0,) * _nd)

    in_specs = [pl.BlockSpec((NB, H, RAWW), lambda g: (g, 0, 0))]
    in_specs += [const_spec(a) for a in consts]

    # Banded-weight VMEM footprint grows as ~5.6 KiB * W^2 (bf16); ~1.4 MiB at
    # W=16.  Raise the scoped VMEM limit only when the weights get large.
    # TODO(synk): add width tiling (blocked banded weights with a 1-column
    # halo) and single-buffered constant specs before scaling W past ~64
    # (v7x physical VMEM is 64 MiB).
    wt_bytes = 2 * (m1.size + m23.size + m4.size)
    vmem_limit = None
    if wt_bytes > 12 * (1 << 20):
        vmem_limit = int(min(3 * wt_bytes + (8 << 20), 60 << 20))

    return pl.pallas_call(
        make_tower_kernel(NB, H, W),
        out_shape=jax.ShapeDtypeStruct((N, H, COW), jnp.float32),
        grid_spec=pltpu.PrefetchScalarGridSpec(
            num_scalar_prefetch=0,
            grid=(G,),
            in_specs=in_specs,
            out_specs=pl.BlockSpec((NB, H, COW), lambda g: (g, 0, 0)),
            scratch_shapes=[pltpu.VMEM((NB, H + 2, C1W), jnp.bfloat16)],
        ),
        compiler_params=pltpu.CompilerParams(
            dimension_semantics=("parallel",) if G == 2 else ("arbitrary",),
            vmem_limit_bytes=vmem_limit),
    )(x_rows, *consts)


# ------------------------------- JAX glue ------------------------------------
def position_embed(x, num_freqs):
    # Embedder(include_input=True, log_sampling=True):
    #   cat([x] + [sin(x*f), cos(x*f) for f in 2**arange(num_freqs)], dim=1)
    outs = [x]
    for i in range(num_freqs):
        f = float(2.0 ** i)
        outs.append(jnp.sin(x * f))
        outs.append(jnp.cos(x * f))
    return jnp.concatenate(outs, axis=1)


def compute_grid(h, w, dtype=jnp.float32):
    # TODO(synk): exact CondInst `compute_grid` source not provided; using a
    # normalized [-1, 1] (x, y) coordinate grid of shape (2, H, W) as a stand-in.
    ys = jnp.linspace(-1.0, 1.0, h, dtype=dtype)
    xs = jnp.linspace(-1.0, 1.0, w, dtype=dtype)
    yv, xv = jnp.meshgrid(ys, xs, indexing="ij")
    return jnp.stack([xv, yv], axis=0)


def _upsample2_axis(x, axis):
    # aligned_bilinear factor-2 along one axis with static slices only:
    #   out[2k]   = 0.5 * (x[k-1] + x[k])    (with x[-1] := x[0])
    #   out[2k+1] = x[k]
    n = x.shape[axis]
    first = lax.slice_in_dim(x, 0, 1, axis=axis)
    prev = jnp.concatenate([first, lax.slice_in_dim(x, 0, n - 1, axis=axis)],
                           axis=axis)
    even = 0.5 * (prev + x)
    out = jnp.stack([even, x], axis=axis + 1)
    new_shape = list(x.shape)
    new_shape[axis] = 2 * n
    return out.reshape(new_shape)


def _aligned_bilinear_gather(x, factor):
    # General AdelaiDet aligned_bilinear (reference / fallback implementation).
    assert factor >= 1 and int(factor) == factor
    if factor == 1:
        return x
    n, c, h, w = x.shape
    x = jnp.pad(x, ((0, 0), (0, 0), (0, 1), (0, 1)), mode="edge")
    ih, iw = h + 1, w + 1
    oh, ow = factor * h + 1, factor * w + 1
    ys = jnp.arange(oh, dtype=jnp.float32) / factor
    xs = jnp.arange(ow, dtype=jnp.float32) / factor
    y0 = jnp.clip(jnp.floor(ys).astype(jnp.int32), 0, ih - 2)
    x0 = jnp.clip(jnp.floor(xs).astype(jnp.int32), 0, iw - 2)
    wy = (ys - y0.astype(jnp.float32))[None, None, :, None]
    wx = (xs - x0.astype(jnp.float32))[None, None, None, :]

    def gather_x(t):
        t0 = jnp.take(t, x0, axis=3)
        t1 = jnp.take(t, x0 + 1, axis=3)
        return t0 * (1.0 - wx) + t1 * wx

    gy0 = gather_x(jnp.take(x, y0, axis=2))
    gy1 = gather_x(jnp.take(x, y0 + 1, axis=2))
    out = gy0 * (1.0 - wy) + gy1 * wy
    p = factor // 2
    out = jnp.pad(out, ((0, 0), (0, 0), (p, 0), (p, 0)), mode="edge")
    return out[:, :, :oh - 1, :ow - 1]


def aligned_bilinear(x, factor):
    assert factor >= 1 and int(factor) == factor
    if factor == 1:
        return x
    if factor == 2:   # hot path for this config: static slices/averages, no gathers
        return _upsample2_axis(_upsample2_axis(x, 2), 3)
    return _aligned_bilinear_gather(x, factor)


def coord_global_iuv_head_forward(iuv_feats, rel_coord, params,
                                  iuv_feat_stride=8, iuv_out_stride=4):
    # iuv_feats: (N, AGG_CHANNELS, H, W)   rel_coord: (N, 2, H, W)   (NCHW)
    N, C, H, W = iuv_feats.shape
    assert C == AGG_CHANNELS

    # Batch-invariant absolute positional embedding, computed once.
    abs_emb = position_embed(compute_grid(H, W)[None], POS_EMB_NUM_FREQS)[0]  # (10,H,W)
    abs_rows = jnp.transpose(abs_emb, (1, 0, 2)).reshape(H, POS_EMB_DIM * W)

    # Single merged, lane-dense (16*W = 256-lane) per-image kernel input in row
    # layout (lane = channel*W + w): [abs_emb(10) | raw rel(2) | feats(4)].
    # The rel sin/cos embedding is expanded in-kernel.
    rel_rows = jnp.transpose(rel_coord, (0, 2, 1, 3)).reshape(N, H, 2 * W)
    feat_rows = jnp.transpose(iuv_feats, (0, 2, 1, 3)).reshape(N, H, AGG_CHANNELS * W)
    x_rows = jnp.concatenate(
        [jnp.broadcast_to(abs_rows[None], (N, H, POS_EMB_DIM * W)),
         rel_rows, feat_rows], axis=-1).astype(jnp.float32)            # (N, H, 16*W)

    packed = pack_tower_params(params, W)
    y_rows = tower_apply(x_rows, packed, H, W)                         # (N, H, 8*W)

    iuv_logit = jnp.transpose(y_rows.reshape(N, H, NUM_OUTPUTS, W), (0, 2, 1, 3))

    assert iuv_feat_stride >= iuv_out_stride
    assert iuv_feat_stride % iuv_out_stride == 0
    return aligned_bilinear(iuv_logit, iuv_feat_stride // iuv_out_stride)


# -------------------------- pure-JAX reference -------------------------------
def forward_reference(iuv_feats, rel_coord, params,
                      iuv_feat_stride=8, iuv_out_stride=4):
    N, _, H, W = iuv_feats.shape
    rel_emb = position_embed(rel_coord, POS_EMB_NUM_FREQS)
    x = jnp.concatenate([rel_emb, iuv_feats], axis=1)
    grid = jnp.broadcast_to(compute_grid(H, W)[None], (N, 2, H, W))
    x = jnp.concatenate([position_embed(grid, POS_EMB_NUM_FREQS), x], axis=1)

    w1, b1, w2, b2, w3, b3, w4, b4 = params

    def conv3x3_relu(h, w, b):
        y = lax.conv_general_dilated(h, w, (1, 1), ((1, 1), (1, 1)),
                                     dimension_numbers=("NCHW", "HWIO", "NCHW"))
        return jnp.maximum(y + b[None, :, None, None], 0.0)

    h = conv3x3_relu(x, w1, b1)
    h = conv3x3_relu(h, w2, b2)
    h = conv3x3_relu(h, w3, b3)
    y = lax.conv_general_dilated(h, w4[None, None], (1, 1), ((0, 0), (0, 0)),
                                 dimension_numbers=("NCHW", "HWIO", "NCHW"))
    y = y + b4[None, :, None, None]
    return _aligned_bilinear_gather(y, iuv_feat_stride // iuv_out_stride)


# --------------------------------- params ------------------------------------
def init_params(key):
    def kaiming_uniform(k, shape, fan_in):
        bound = (3.0 / fan_in) ** 0.5   # kaiming_uniform with a=1 (conv block)
        return jax.random.uniform(k, shape, jnp.float32, -bound, bound)

    ks = jax.random.split(key, 5)
    w1 = kaiming_uniform(ks[0], (3, 3, IN_CHANNELS, CHANNELS), 9 * IN_CHANNELS)
    w2 = kaiming_uniform(ks[1], (3, 3, CHANNELS, CHANNELS), 9 * CHANNELS)
    w3 = kaiming_uniform(ks[2], (3, 3, CHANNELS, CHANNELS), 9 * CHANNELS)
    w4 = kaiming_uniform(ks[3], (CHANNELS, NUM_OUTPUTS), CHANNELS)   # 1x1 conv
    b1 = jnp.zeros((CHANNELS,), jnp.float32)
    b2 = jnp.zeros((CHANNELS,), jnp.float32)
    b3 = jnp.zeros((CHANNELS,), jnp.float32)
    b4 = 0.01 * jax.random.normal(ks[4], (NUM_OUTPUTS,), jnp.float32)
    return (w1, b1, w2, b2, w3, b3, w4, b4)


if __name__ == "__main__":
    key = jax.random.PRNGKey(0)
    k_feat, k_coord, k_param = jax.random.split(key, 3)

    N, H, W = 2, 16, 16
    iuv_feats = jax.random.normal(k_feat, (N, AGG_CHANNELS, H, W), jnp.float32)
    rel_coord = jax.random.uniform(k_coord, (N, 2, H, W), jnp.float32,
                                   minval=-1.0, maxval=1.0)
    params = init_params(k_param)

    fwd = jax.jit(coord_global_iuv_head_forward,
                  static_argnames=("iuv_feat_stride", "iuv_out_stride"))
    out = jax.block_until_ready(fwd(iuv_feats, rel_coord, params,
                                    iuv_feat_stride=8, iuv_out_stride=4))
    assert out.shape == (N, NUM_OUTPUTS, 2 * H, 2 * W), out.shape
    assert bool(jnp.all(jnp.isfinite(out)))

    # Cross-check the Pallas tower (+ static x2 upsample) against a pure-JAX
    # f32 reference (lax.conv + gather-based aligned_bilinear). The kernel uses
    # bf16 matmul operands/activations, hence the loose tolerance.
    ref = forward_reference(iuv_feats, rel_coord, params, 8, 4)
    assert bool(jnp.allclose(out, ref, atol=0.1, rtol=0.1)), \
        float(jnp.max(jnp.abs(out - ref)))

    print("KERNEL_OK")
</pallas_src>

<mosaic_0001>
module attributes {stable_mosaic.version = 11 : i64} {
  func.func @kernel(%arg0: i32, %arg1: memref<2x16x256xf32, #tpu.memory_space<vmem>>, %arg2: memref<1152x256xbf16, #tpu.memory_space<vmem>>, %arg3: memref<2x768x256xbf16, #tpu.memory_space<vmem>>, %arg4: memref<256x128xbf16, #tpu.memory_space<vmem>>, %arg5: memref<1x256xf32, #tpu.memory_space<vmem>>, %arg6: memref<2x1x256xf32, #tpu.memory_space<vmem>>, %arg7: memref<1x128xf32, #tpu.memory_space<vmem>>, %arg8: memref<2x16x128xf32, #tpu.memory_space<vmem>>, %arg9: memref<2x18x384xbf16, #tpu.memory_space<vmem>>) attributes {dimension_semantics = [#tpu.dimension_semantics<arbitrary>], iteration_bounds = array<i64: 1>, scalar_prefetch = 0 : i64, scratch_operands = 1 : i64, tpu.core_type = #tpu.core_type<tc>, window_params = [{transform_indices = @transform_0, window_bounds = array<i64: 2, 16, 256>}, {pipeline_mode = #tpu.pipeline_mode<synchronous>, transform_indices = @transform_1, window_bounds = array<i64: 1152, 256>}, {pipeline_mode = #tpu.pipeline_mode<synchronous>, transform_indices = @transform_2, window_bounds = array<i64: 2, 768, 256>}, {pipeline_mode = #tpu.pipeline_mode<synchronous>, transform_indices = @transform_3, window_bounds = array<i64: 256, 128>}, {pipeline_mode = #tpu.pipeline_mode<synchronous>, transform_indices = @transform_4, window_bounds = array<i64: 1, 256>}, {pipeline_mode = #tpu.pipeline_mode<synchronous>, transform_indices = @transform_5, window_bounds = array<i64: 2, 1, 256>}, {pipeline_mode = #tpu.pipeline_mode<synchronous>, transform_indices = @transform_6, window_bounds = array<i64: 1, 128>}, {transform_indices = @transform_7, window_bounds = array<i64: 2, 16, 128>}]} {
    %cst = arith.constant 0.000000e+00 : bf16
    %0 = vector.broadcast %cst : bf16 to vector<2x1x384xbf16>
    %c0 = arith.constant 0 : index
    %c0_0 = arith.constant 0 : index
    %c0_1 = arith.constant 0 : index
    %1 = vector.load %arg9[%c0, %c0_0, %c0_1] : memref<2x18x384xbf16, #tpu.memory_space<vmem>>, vector<2x1x384xbf16>
    tpu.vector_store %arg9[%c0, %c0_0, %c0_1], %0 {strides = array<i32>} : memref<2x18x384xbf16, #tpu.memory_space<vmem>>, vector<2x1x384xbf16>,
    %c0_2 = arith.constant 0 : index
    %c17 = arith.constant 17 : index
    %c0_3 = arith.constant 0 : index
    %2 = vector.load %arg9[%c0_2, %c17, %c0_3] : memref<2x18x384xbf16, #tpu.memory_space<vmem>>, vector<2x1x384xbf16>
    tpu.vector_store %arg9[%c0_2, %c17, %c0_3], %0 {strides = array<i32>} : memref<2x18x384xbf16, #tpu.memory_space<vmem>>, vector<2x1x384xbf16>,
    %c0_4 = arith.constant 0 : index
    %c0_5 = arith.constant 0 : index
    %c0_6 = arith.constant 0 : index
    %3 = vector.load %arg1[%c0_4, %c0_5, %c0_6] : memref<2x16x256xf32, #tpu.memory_space<vmem>>, vector<2x16x256xf32>
    %4 = vector.extract_strided_slice %3 {offsets = [0, 0, 160], sizes = [2, 16, 32], strides = [1, 1, 1]} : vector<2x16x256xf32> to vector<2x16x32xf32>
    %5 = vector.extract_strided_slice %3 {offsets = [0, 0, 0], sizes = [2, 16, 160], strides = [1, 1, 1]} : vector<2x16x256xf32> to vector<2x16x160xf32>
    %cst_7 = arith.constant 1.000000e+00 : f32
    %6 = vector.broadcast %cst_7 : f32 to vector<2x16x32xf32>
    %7 = arith.mulf %4, %6 : vector<2x16x32xf32>
    %8 = math.sin %7 : vector<2x16x32xf32>
    %cst_8 = arith.constant 1.000000e+00 : f32
    %9 = vector.broadcast %cst_8 : f32 to vector<2x16x32xf32>
    %10 = arith.mulf %4, %9 : vector<2x16x32xf32>
    %11 = math.cos %10 : vector<2x16x32xf32>
    %cst_9 = arith.constant 2.000000e+00 : f32
    %12 = vector.broadcast %cst_9 : f32 to vector<2x16x32xf32>
    %13 = arith.mulf %4, %12 : vector<2x16x32xf32>
    %14 = math.sin %13 : vector<2x16x32xf32>
    %cst_10 = arith.constant 2.000000e+00 : f32
    %15 = vector.broadcast %cst_10 : f32 to vector<2x16x32xf32>
    %16 = arith.mulf %4, %15 : vector<2x16x32xf32>
    %17 = math.cos %16 : vector<2x16x32xf32>
    %18 = vector.extract_strided_slice %3 {offsets = [0, 0, 192], sizes = [2, 16, 64], strides = [1, 1, 1]} : vector<2x16x256xf32> to vector<2x16x64xf32>
    %19 = tpu.concatenate %5, %4, %8, %11, %14, %17, %18 in 2 : vector<2x16x160xf32>, vector<2x16x32xf32>, vector<2x16x32xf32>, vector<2x16x32xf32>, vector<2x16x32xf32>, vector<2x16x32xf32>, vector<2x16x64xf32> -> vector<2x16x384xf32>
    %20 = arith.truncf %19 : vector<2x16x384xf32> to vector<2x16x384xbf16>
    %c0_11 = arith.constant 0 : index
    %c1 = arith.constant 1 : index
    %c0_12 = arith.constant 0 : index
    %21 = vector.load %arg9[%c0_11, %c1, %c0_12] : memref<2x18x384xbf16, #tpu.memory_space<vmem>>, vector<2x16x384xbf16>
    tpu.vector_store %arg9[%c0_11, %c1, %c0_12], %20 {strides = array<i32>} : memref<2x18x384xbf16, #tpu.memory_space<vmem>>, vector<2x16x384xbf16>,
    %c0_13 = arith.constant 0 : index
    %c0_14 = arith.constant 0 : index
    %22 = vector.load %arg2[%c0_13, %c0_14] : memref<1152x256xbf16, #tpu.memory_space<vmem>>, vector<1152x256xbf16>
    %c0_15 = arith.constant 0 : index
    %c0_16 = arith.constant 0 : index
    %23 = vector.load %arg5[%c0_15, %c0_16] : memref<1x256xf32, #tpu.memory_space<vmem>>, vector<1x256xf32>
    %c0_17 = arith.constant 0 : index
    %c0_18 = arith.constant 0 : index
    %c0_19 = arith.constant 0 : index
    %24 = vector.load %arg9[%c0_17, %c0_18, %c0_19] : memref<2x18x384xbf16, #tpu.memory_space<vmem>>, vector<2x16x384xbf16>
    %25 = vector.shape_cast %24 : vector<2x16x384xbf16> to vector<32x384xbf16>
    %c0_20 = arith.constant 0 : index
    %c1_21 = arith.constant 1 : index
    %c0_22 = arith.constant 0 : index
    %26 = vector.load %arg9[%c0_20, %c1_21, %c0_22] : memref<2x18x384xbf16, #tpu.memory_space<vmem>>, vector<2x16x384xbf16>
    %27 = vector.shape_cast %26 : vector<2x16x384xbf16> to vector<32x384xbf16>
    %c0_23 = arith.constant 0 : index
    %c2 = arith.constant 2 : index
    %c0_24 = arith.constant 0 : index
    %28 = vector.load %arg9[%c0_23, %c2, %c0_24] : memref<2x18x384xbf16, #tpu.memory_space<vmem>>, vector<2x16x384xbf16>
    %29 = vector.shape_cast %28 : vector<2x16x384xbf16> to vector<32x384xbf16>
    %30 = tpu.concatenate %25, %27, %29 in 1 : vector<32x384xbf16>, vector<32x384xbf16>, vector<32x384xbf16> -> vector<32x1152xbf16>
    %cst_25 = arith.constant dense<0.000000e+00> : vector<32x256xf32>
    %31 = tpu.matmul %30, %22, %cst_25 {dimension_numbers = #tpu.dot_dimension_numbers<[1], [0], [0], [1], [0, 0, 1, 1], [], []>} : vector<32x1152xbf16>, vector<1152x256xbf16>, vector<32x256xf32> -> vector<32x256xf32>
    %32 = vector.broadcast %23 : vector<1x256xf32> to vector<32x256xf32>
    %33 = arith.addf %31, %32 : vector<32x256xf32>
    %cst_26 = arith.constant 0.000000e+00 : f32
    %34 = vector.broadcast %cst_26 : f32 to vector<32x256xf32>
    %35 = arith.maximumf %33, %34 : vector<32x256xf32>
    %36 = arith.truncf %35 : vector<32x256xf32> to vector<32x256xbf16>
    %37 = vector.shape_cast %36 : vector<32x256xbf16> to vector<2x16x256xbf16>
    %c0_27 = arith.constant 0 : index
    %c1_28 = arith.constant 1 : index
    %c0_29 = arith.constant 0 : index
    %38 = vector.load %arg9[%c0_27, %c1_28, %c0_29] : memref<2x18x384xbf16, #tpu.memory_space<vmem>>, vector<2x16x256xbf16>
    tpu.vector_store %arg9[%c0_27, %c1_28, %c0_29], %37 {strides = array<i32>} : memref<2x18x384xbf16, #tpu.memory_space<vmem>>, vector<2x16x256xbf16>,
    %c0_30 = arith.constant 0 : index
    %c0_31 = arith.constant 0 : index
    %c0_32 = arith.constant 0 : index
    %39 = vector.load %arg3[%c0_30, %c0_31, %c0_32] : memref<2x768x256xbf16, #tpu.memory_space<vmem>>, vector<1x768x256xbf16>
    %40 = vector.shape_cast %39 : vector<1x768x256xbf16> to vector<768x256xbf16>
    %c0_33 = arith.constant 0 : index
    %c0_34 = arith.constant 0 : index
    %c0_35 = arith.constant 0 : index
    %41 = vector.load %arg6[%c0_33, %c0_34, %c0_35] : memref<2x1x256xf32, #tpu.memory_space<vmem>>, vector<1x1x256xf32>
    %42 = vector.shape_cast %41 : vector<1x1x256xf32> to vector<1x256xf32>
    %c0_36 = arith.constant 0 : index
    %c0_37 = arith.constant 0 : index
    %c0_38 = arith.constant 0 : index
    %43 = vector.load %arg9[%c0_36, %c0_37, %c0_38] : memref<2x18x384xbf16, #tpu.memory_space<vmem>>, vector<2x16x256xbf16>
    %44 = vector.shape_cast %43 : vector<2x16x256xbf16> to vector<32x256xbf16>
    %c0_39 = arith.constant 0 : index
    %c1_40 = arith.constant 1 : index
    %c0_41 = arith.constant 0 : index
    %45 = vector.load %arg9[%c0_39, %c1_40, %c0_41] : memref<2x18x384xbf16, #tpu.memory_space<vmem>>, vector<2x16x256xbf16>
    %46 = vector.shape_cast %45 : vector<2x16x256xbf16> to vector<32x256xbf16>
    %c0_42 = arith.constant 0 : index
    %c2_43 = arith.constant 2 : index
    %c0_44 = arith.constant 0 : index
    %47 = vector.load %arg9[%c0_42, %c2_43, %c0_44] : memref<2x18x384xbf16, #tpu.memory_space<vmem>>, vector<2x16x256xbf16>
    %48 = vector.shape_cast %47 : vector<2x16x256xbf16> to vector<32x256xbf16>
    %49 = tpu.concatenate %44, %46, %48 in 1 : vector<32x256xbf16>, vector<32x256xbf16>, vector<32x256xbf16> -> vector<32x768xbf16>
    %cst_45 = arith.constant dense<0.000000e+00> : vector<32x256xf32>
    %50 = tpu.matmul %49, %40, %cst_45 {dimension_numbers = #tpu.dot_dimension_numbers<[1], [0], [0], [1], [0, 0, 1, 1], [], []>} : vector<32x768xbf16>, vector<768x256xbf16>, vector<32x256xf32> -> vector<32x256xf32>
    %51 = vector.broadcast %42 : vector<1x256xf32> to vector<32x256xf32>
    %52 = arith.addf %50, %51 : vector<32x256xf32>
    %cst_46 = arith.constant 0.000000e+00 : f32
    %53 = vector.broadcast %cst_46 : f32 to vector<32x256xf32>
    %54 = arith.maximumf %52, %53 : vector<32x256xf32>
    %55 = arith.truncf %54 : vector<32x256xf32> to vector<32x256xbf16>
    %56 = vector.shape_cast %55 : vector<32x256xbf16> to vector<2x16x256xbf16>
    %c0_47 = arith.constant 0 : index
    %c1_48 = arith.constant 1 : index
    %c0_49 = arith.constant 0 : index
    %57 = vector.load %arg9[%c0_47, %c1_48, %c0_49] : memref<2x18x384xbf16, #tpu.memory_space<vmem>>, vector<2x16x256xbf16>
    tpu.vector_store %arg9[%c0_47, %c1_48, %c0_49], %56 {strides = array<i32>} : memref<2x18x384xbf16, #tpu.memory_space<vmem>>, vector<2x16x256xbf16>,
    %c1_50 = arith.constant 1 : index
    %c0_51 = arith.constant 0 : index
    %c0_52 = arith.constant 0 : index
    %58 = vector.load %arg3[%c1_50, %c0_51, %c0_52] : memref<2x768x256xbf16, #tpu.memory_space<vmem>>, vector<1x768x256xbf16>
    %59 = vector.shape_cast %58 : vector<1x768x256xbf16> to vector<768x256xbf16>
    %c1_53 = arith.constant 1 : index
    %c0_54 = arith.constant 0 : index
    %c0_55 = arith.constant 0 : index
    %60 = vector.load %arg6[%c1_53, %c0_54, %c0_55] : memref<2x1x256xf32, #tpu.memory_space<vmem>>, vector<1x1x256xf32>
    %61 = vector.shape_cast %60 : vector<1x1x256xf32> to vector<1x256xf32>
    %c0_56 = arith.constant 0 : index
    %c0_57 = arith.constant 0 : index
    %c0_58 = arith.constant 0 : index
    %62 = vector.load %arg9[%c0_56, %c0_57, %c0_58] : memref<2x18x384xbf16, #tpu.memory_space<vmem>>, vector<2x16x256xbf16>
    %63 = vector.shape_cast %62 : vector<2x16x256xbf16> to vector<32x256xbf16>
    %c0_59 = arith.constant 0 : index
    %c1_60 = arith.constant 1 : index
    %c0_61 = arith.constant 0 : index
    %64 = vector.load %arg9[%c0_59, %c1_60, %c0_61] : memref<2x18x384xbf16, #tpu.memory_space<vmem>>, vector<2x16x256xbf16>
    %65 = vector.shape_cast %64 : vector<2x16x256xbf16> to vector<32x256xbf16>
    %c0_62 = arith.constant 0 : index
    %c2_63 = arith.constant 2 : index
    %c0_64 = arith.constant 0 : index
    %66 = vector.load %arg9[%c0_62, %c2_63, %c0_64] : memref<2x18x384xbf16, #tpu.memory_space<vmem>>, vector<2x16x256xbf16>
    %67 = vector.shape_cast %66 : vector<2x16x256xbf16> to vector<32x256xbf16>
    %68 = tpu.concatenate %63, %65, %67 in 1 : vector<32x256xbf16>, vector<32x256xbf16>, vector<32x256xbf16> -> vector<32x768xbf16>
    %cst_65 = arith.constant dense<0.000000e+00> : vector<32x256xf32>
    %69 = tpu.matmul %68, %59, %cst_65 {dimension_numbers = #tpu.dot_dimension_numbers<[1], [0], [0], [1], [0, 0, 1, 1], [], []>} : vector<32x768xbf16>, vector<768x256xbf16>, vector<32x256xf32> -> vector<32x256xf32>
    %70 = vector.broadcast %61 : vector<1x256xf32> to vector<32x256xf32>
    %71 = arith.addf %69, %70 : vector<32x256xf32>
    %cst_66 = arith.constant 0.000000e+00 : f32
    %72 = vector.broadcast %cst_66 : f32 to vector<32x256xf32>
    %73 = arith.maximumf %71, %72 : vector<32x256xf32>
    %74 = arith.truncf %73 : vector<32x256xf32> to vector<32x256xbf16>
    %c0_67 = arith.constant 0 : index
    %c0_68 = arith.constant 0 : index
    %75 = vector.load %arg4[%c0_67, %c0_68] : memref<256x128xbf16, #tpu.memory_space<vmem>>, vector<256x128xbf16>
    %cst_69 = arith.constant dense<0.000000e+00> : vector<32x128xf32>
    %76 = tpu.matmul %74, %75, %cst_69 {dimension_numbers = #tpu.dot_dimension_numbers<[1], [0], [0], [1], [0, 0, 1, 1], [], []>} : vector<32x256xbf16>, vector<256x128xbf16>, vector<32x128xf32> -> vector<32x128xf32>
    %c0_70 = arith.constant 0 : index
    %c0_71 = arith.constant 0 : index
    %77 = vector.load %arg7[%c0_70, %c0_71] : memref<1x128xf32, #tpu.memory_space<vmem>>, vector<1x128xf32>
    %78 = vector.broadcast %77 : vector<1x128xf32> to vector<32x128xf32>
    %79 = arith.addf %76, %78 : vector<32x128xf32>
    %80 = vector.shape_cast %79 : vector<32x128xf32> to vector<2x16x128xf32>
    %c0_72 = arith.constant 0 : index
    %c0_73 = arith.constant 0 : index
    %c0_74 = arith.constant 0 : index
    %81 = vector.load %arg8[%c0_72, %c0_73, %c0_74] : memref<2x16x128xf32, #tpu.memory_space<vmem>>, vector<2x16x128xf32>
    tpu.vector_store %arg8[%c0_72, %c0_73, %c0_74], %80 {strides = array<i32>} : memref<2x16x128xf32, #tpu.memory_space<vmem>>, vector<2x16x128xf32>,
    return
  }
  func.func @transform_0(%arg0: i32) -> (i32, i32, i32) {
    %c0_i32 = arith.constant 0 : i32
    %c0_i32_0 = arith.constant 0 : i32
    %c0_i32_1 = arith.constant 0 : i32
    return %arg0, %c0_i32, %c0_i32_0 : i32, i32, i32
  }
  func.func @transform_1(%arg0: i32) -> (i32, i32) {
    %c0_i32 = arith.constant 0 : i32
    %c0_i32_0 = arith.constant 0 : i32
    %c0_i32_1 = arith.constant 0 : i32
    return %c0_i32, %c0_i32_0 : i32, i32
  }
  func.func @transform_2(%arg0: i32) -> (i32, i32, i32) {
    %c0_i32 = arith.constant 0 : i32
    %c0_i32_0 = arith.constant 0 : i32
    %c0_i32_1 = arith.constant 0 : i32
    %c0_i32_2 = arith.constant 0 : i32
    return %c0_i32, %c0_i32_0, %c0_i32_1 : i32, i32, i32
  }
  func.func @transform_3(%arg0: i32) -> (i32, i32) {
    %c0_i32 = arith.constant 0 : i32
    %c0_i32_0 = arith.constant 0 : i32
    %c0_i32_1 = arith.constant 0 : i32
    return %c0_i32, %c0_i32_0 : i32, i32
  }
  func.func @transform_4(%arg0: i32) -> (i32, i32) {
    %c0_i32 = arith.constant 0 : i32
    %c0_i32_0 = arith.constant 0 : i32
    %c0_i32_1 = arith.constant 0 : i32
    return %c0_i32, %c0_i32_0 : i32, i32
  }
  func.func @transform_5(%arg0: i32) -> (i32, i32, i32) {
    %c0_i32 = arith.constant 0 : i32
    %c0_i32_0 = arith.constant 0 : i32
    %c0_i32_1 = arith.constant 0 : i32
    %c0_i32_2 = arith.constant 0 : i32
    return %c0_i32, %c0_i32_0, %c0_i32_1 : i32, i32, i32
  }
  func.func @transform_6(%arg0: i32) -> (i32, i32) {
    %c0_i32 = arith.constant 0 : i32
    %c0_i32_0 = arith.constant 0 : i32
    %c0_i32_1 = arith.constant 0 : i32
    return %c0_i32, %c0_i32_0 : i32, i32
  }
  func.func @transform_7(%arg0: i32) -> (i32, i32, i32) {
    %c0_i32 = arith.constant 0 : i32
    %c0_i32_0 = arith.constant 0 : i32
    %c0_i32_1 = arith.constant 0 : i32
    return %arg0, %c0_i32, %c0_i32_0 : i32, i32, i32
  }
}

</mosaic_0001>

<bundles_post_ra>
// kernel: coord_global_iuv_head_forward.1
= control target key start
LH: loop header
LB: loop body
LE: loop exit
PB: predicated region body
PF: predicated region fallthrough
CT: control target
= control target key end

     0   :  { %v8410_v27 = vmov 683565275   ;;  %v8411_v29 = vmov 2475754826   ;;  %v8412_v31 = vmov 2131351028   ;;  %s12452_s0 = inlined_call_operand.vmem [shape: f32[2,16,256], index: 0, kind: input, shape index: {}]   ;;  %s12453_s1 = inlined_call_operand.vmem [shape: bf16[1152,256], index: 1, kind: input, shape index: {}]   ;;  %s12454_s4 = inlined_call_operand.vmem [shape: f32[1,256], index: 4, kind: input, shape index: {}]   ;;  %s12455_s2 = inlined_call_operand.vmem [shape: bf16[2,768,256], index: 2, kind: input, shape index: {}]   ;;  %s12456_s5 = inlined_call_operand.vmem [shape: f32[2,1,256], index: 5, kind: input, shape index: {}]   ;;  %s12457_s6 = inlined_call_operand.vmem [shape: f32[1,128], index: 6, kind: input, shape index: {}]   ;;  %s12458_s3 = inlined_call_operand.vmem [shape: bf16[256,128], index: 3, kind: input, shape index: {}]   ;;  %s12459_s7 = inlined_call_operand.vmem [shape: f32[2,16,128], index: 7, kind: output, shape index: {}]  }
   0x1   :  { %v8463_v0 = vld [vmem:[%s12452_s0 + $0x8] sm:$0xff]  ;;  %v8468_v1 = vld [vmem:[%s12452_s0 + $0x18] sm:$0xff]  ;;  %v8413_v33 = vmov 2102212464   ;;  %v8414_v35 = vmov 920167782  }
   0x2   :  { %v71_v2 = vand.u32 2147483647, %v8463_v0  ;;  %v74_v3 = vand.u32 2139095040, %v8463_v0  ;;  %v226_v4 = vand.u32 2147483647, %v8468_v1  ;;  %v229_v5 = vand.u32 2139095040, %v8468_v1 }
   0x3   :  { %v8479_v8 = vld [vmem:[%s12452_s0 + $0x28] sm:$0xff]  ;;  %v8415_v44 = vmov 1326507024   ;;  %s8417_s9 = smov 32   ;;  %s8418_s16 = smov 64  }
   0x4   :  { %v75_v6 = vshrl.u32 %v74_v3, 23  ;;  %v78_v7 = vand.u32 8388607, %v71_v2  ;;  %v230_v9 = vshrl.u32 %v229_v5, 23  ;;  %v233_v10 = vand.u32 8388607, %v226_v4 }
   0x5   :  { %v384_v14 = vand.u32 2139095040, %v8479_v8  ;;  %s8419_s17 = smov 96  }
   0x6   :  { %v6378_v11 = vadd.s32 4294967169, %v75_v6  ;;  %v79_v12 = vor.u32 8388608, %v78_v7  ;;  %v6381_v13 = vadd.s32 4294967169, %v230_v9  ;;  %v234_v16 = vor.u32 8388608, %v233_v10 }
   0x7   :  { %v385_v20 = vshrl.u32 %v384_v14, 23 }
   0x8   :  { %v81_v15 = vadd.s32 1, %v6378_v11  ;;  %v236_v17 = vadd.s32 1, %v6381_v13  ;;  %v8484_v19 = vshll.u32 %v79_v12, 8  ;;  %v8490_v25 = vshll.u32 %v234_v16, 8 }
   0x9   :  { %v8498_v38 = vadd.s32 4294967169, %v385_v20 }
   0xa   :  { %vm82_vm0 = vcmp.gt.s32.totalorder %v81_v15, 0  ;;  %vm237_vm1 = vcmp.gt.s32.totalorder %v236_v17, 0  ;;  %v120_v37 = vand.u32 65535, %v8484_v19  ;;  %v121_v42 = vshrl.u32 %v8484_v19, 16 }
   0xb   :  { %v83_v18 = vsel %vm82_vm0, %v81_v15, 0  ;;  %v238_v22 = vsel %vm237_vm1, %v236_v17, 0 }
   0xc   :  { %v85_v21 = vand.u32 31, %v83_v18  ;;  %v8486_v23 = vshrl.u32 %v83_v18, 5  ;;  %v8488_v24 = vand.u32 31, %v238_v22  ;;  %v8518_v55 = vshrl.u32 %v238_v22, 5 }
   0xe   :  { %v86_v26 = vsub.s32 32, %v85_v21  ;;  %v88_v28 = vshll.u32 %v8410_v27, %v85_v21  ;;  %v91_v30 = vshll.u32 %v8411_v29, %v85_v21  ;;  %v94_v32 = vshll.u32 %v8412_v31, %v85_v21 }
   0xf   :  { %v97_v34 = vshll.u32 %v8413_v33, %v85_v21  ;;  %v100_v36 = vshll.u32 %v8414_v35, %v85_v21  ;;  %vm103_vm2 = vcmp.lt.s32.totalorder %v8486_v23, 1  ;;  %vm106_vm3 = vcmp.lt.s32.totalorder %v8486_v23, 4 }
  0x10   :  { %v89_v39 = vshrl.u32 %v8411_v29, %v86_v26  ;;  %v92_v40 = vshrl.u32 %v8412_v31, %v86_v26  ;;  %v95_v41 = vshrl.u32 %v8413_v33, %v86_v26  ;;  %v98_v43 = vshrl.u32 %v8414_v35, %v86_v26 }
  0x11   :  { %v101_v45 = vshrl.u32 %v8415_v44, %v86_v26  ;;  %v8509_v49 = vsub.s32 32, %v8488_v24  ;;  %v87_v50 = vshrl.u32 %v8410_v27, %v86_v26  ;;  %vm105_vm4 = vcmp.lt.s32.totalorder %v8486_v23, 3 }
  0x12   :  { %v90_v46 = vor.u32 %v89_v39, %v88_v28  ;;  %v93_v47 = vor.u32 %v92_v40, %v91_v30  ;;  %v96_v48 = vor.u32 %v95_v41, %v94_v32  ;;  %v99_v51 = vor.u32 %v98_v43, %v97_v34 }
  0x13   :  { %v102_v52 = vor.u32 %v101_v45, %v100_v36  ;;  %vm104_vm5 = vcmp.lt.s32.totalorder %v8486_v23, 2  ;;  %v243_v58 = vshll.u32 %v8410_v27, %v8488_v24  ;;  %v246_v59 = vshll.u32 %v8411_v29, %v8488_v24 }
  0x14   :  { %v111_v53 = vsel %vm103_vm2, %v90_v46, %v93_v47  ;;  %v115_v54 = vsel %vm103_vm2, %v93_v47, %v96_v48  ;;  %v112_v56 = vsel %vm106_vm3, %v99_v51, 920167782  ;;  %v108_v60 = vsel %vm106_vm3, %v96_v48, 2102212464 }
  0x15   :  { %v116_v57 = vsel %vm106_vm3, %v102_v52, 1326507024  ;;  %v113_v61 = vsel %vm105_vm4, %v96_v48, %v112_v56  ;;  %v244_v63 = vshrl.u32 %v8411_v29, %v8509_v49  ;;  %v107_v3 = vsel %vm103_vm2, %v87_v50, %v90_v46 }
  0x16   :  { %v117_v62 = vsel %vm105_vm4, %v99_v51, %v116_v57  ;;  %v114_v5 = vsel %vm104_vm5, %v111_v53, %v113_v61  ;;  %v247_v7 = vshrl.u32 %v8412_v31, %v8509_v49  ;;  %v109_v13 = vsel %vm105_vm4, %v93_v47, %v108_v60 }
  0x17   :  { %v118_v6 = vsel %vm104_vm5, %v115_v54, %v117_v62  ;;  %v144_v11 = vand.u32 65535, %v114_v5  ;;  %v145_v12 = vshrl.u32 %v114_v5, 16  ;;  %v8546_v14 = vor.u32 %v244_v63, %v243_v58 }
  0x18   :  { %v122_v9 = vand.u32 65535, %v118_v6  ;;  %v123_v10 = vshrl.u32 %v118_v6, 16  ;;  %v8548_v15 = vor.u32 %v247_v7, %v246_v59  ;;  %v249_v16 = vshll.u32 %v8412_v31, %v8488_v24 }
  0x19   :  { %v250_v21 = vshrl.u32 %v8413_v33, %v8509_v49  ;;  %v146_v26 = vmul.u32 %v144_v11, %v120_v37  ;;  %v147_v28 = vmul.u32 %v145_v12, %v120_v37  ;;  %v148_v30 = vmul.u32 %v144_v11, %v121_v42 }
  0x1a   :  { %v124_v17 = vmul.u32 %v122_v9, %v120_v37  ;;  %v125_v18 = vmul.u32 %v123_v10, %v120_v37  ;;  %v126_v20 = vmul.u32 %v122_v9, %v121_v42  ;;  %v127_v22 = vmul.u32 %v123_v10, %v121_v42 }
  0x1b   :  { %v149_v39 = vmul.u32 %v145_v12, %v121_v42  ;;  %v150_v41 = vshll.u32 %v147_v28, 16  ;;  %v151_v43 = vshrl.u32 %v147_v28, 16  ;;  %v152_v45 = vshll.u32 %v148_v30, 16 }
  0x1c   :  { %v128_v32 = vshll.u32 %v125_v18, 16  ;;  %v129_v34 = vshrl.u32 %v125_v18, 16  ;;  %v130_v36 = vshll.u32 %v126_v20, 16  ;;  %v131_v40 = vshrl.u32 %v126_v20, 16 }
  0x1d   :  { %v153_v47 = vshrl.u32 %v148_v30, 16  ;;  %v252_v48 = vshll.u32 %v8413_v33, %v8488_v24  ;;  %v8416_v50 = vmov 0   ;;  %vm154_vm7 = vc.u32 %v146_v26, %v150_v41 }
  0x1e   :  { %vm132_vm6 = vc.u32 %v124_v17, %v128_v32  ;;  %v134_v46 = vadd.s32 %v128_v32, %v124_v17  ;;  %v156_v37 = vadd.s32 %v150_v41, %v146_v26  ;;  %v253_v52 = vshrl.u32 %v8414_v35, %v8509_v49 }
  0x1f   :  { %v133_v51 = vsel %vm132_vm6, 1, %v8416_v50  ;;  %v155_v42 = vsel %vm154_vm7, 1, %v8416_v50  ;;  %v255_v54 = vshll.u32 %v8414_v35, %v8488_v24  ;;  %v251_v58 = vor.u32 %v250_v21, %v249_v16 }
  0x20   :  { %v135_v53 = vadd.s32 %v133_v51, %v127_v22  ;;  %vm136_vm8 = vc.u32 %v134_v46, %v130_v36  ;;  %v157_v57 = vadd.s32 %v155_v42, %v149_v39  ;;  %vm158_vm9 = vc.u32 %v156_v37, %v152_v45 }
  0x21   :  { %v137_v56 = vsel %vm136_vm8, 1, %v8416_v50  ;;  %v159_v60 = vsel %vm158_vm9, 1, %v8416_v50  ;;  %v254_v61 = vor.u32 %v253_v52, %v252_v48  ;;  %v256_v62 = vshrl.u32 %v8415_v44, %v8509_v49 }
  0x22   :  { %v139_v59 = vadd.s32 %v137_v56, %v135_v53  ;;  %v8566_v63 = vadd.s32 %v156_v37, %v152_v45  ;;  %v161_v5 = vadd.s32 %v159_v60, %v157_v57  ;;  %vm258_vm10 = vcmp.lt.s32.totalorder %v8518_v55, 1 }
  0x23   :  { %vm260_vm11 = vcmp.lt.s32.totalorder %v8518_v55, 3  ;;  %v257_v6 = vor.u32 %v256_v62, %v255_v54  ;;  %vm259_vm12 = vcmp.lt.s32.totalorder %v8518_v55, 2  ;;  %vm261_vm13 = vcmp.lt.s32.totalorder %v8518_v55, 4 }
  0x24   :  { %v140_v24 = vadd.s32 %v139_v59, %v129_v34  ;;  %v110_v7 = vsel %vm104_vm5, %v107_v3, %v109_v13  ;;  %v162_v9 = vadd.s32 %v161_v5, %v151_v43  ;;  %v266_v10 = vsel %vm258_vm10, %v8546_v14, %v8548_v15 }
  0x25   :  { %v267_v11 = vsel %vm261_vm13, %v254_v61, 920167782  ;;  %v270_v17 = vsel %vm258_vm10, %v8548_v15, %v251_v58  ;;  %v275_v23 = vand.u32 65535, %v8490_v25  ;;  %v271_v18 = vsel %vm261_vm13, %v257_v6, 1326507024 }
  0x26   :  { %v8580_v12 = vadd.s32 %v140_v24, %v131_v40  ;;  %v268_v16 = vsel %vm260_vm11, %v251_v58, %v267_v11  ;;  %v163_v3 = vadd.s32 %v162_v9, %v153_v47  ;;  %v276_v20 = vshrl.u32 %v8490_v25, 16 }
  0x27   :  { %v269_v13 = vsel %vm259_vm12, %v266_v10, %v268_v16  ;;  %v164_v21 = vmul.u32 %v8484_v19, %v110_v7  ;;  %v272_v22 = vsel %vm260_vm11, %v254_v61, %v271_v18  ;;  %v242_v30 = vshrl.u32 %v8410_v27, %v8509_v49 }
  0x28   :  { %vm166_vm14 = vc.u32 %v8580_v12, %v8566_v63  ;;  %v299_v26 = vand.u32 65535, %v269_v13  ;;  %v167_v28 = vadd.s32 1, %v163_v3  ;;  %v273_v32 = vsel %vm259_vm12, %v270_v17, %v272_v22 }
  0x29   :  { %v300_v34 = vshrl.u32 %v269_v13, 16  ;;  %v277_v36 = vand.u32 65535, %v273_v32  ;;  %v278_v39 = vshrl.u32 %v273_v32, 16  ;;  %v391_v40 = vadd.s32 1, %v8498_v38 }
  0x2a   :  { %v168_v19 = vsel %vm166_vm14, %v167_v28, %v163_v3  ;;  %v263_v41 = vsel %vm261_vm13, %v251_v58, 2102212464  ;;  %v303_v45 = vmul.u32 %v299_v26, %v276_v20  ;;  %v301_v51 = vmul.u32 %v299_v26, %v275_v23 }
  0x2b   :  { %v302_v43 = vmul.u32 %v300_v34, %v275_v23  ;;  %v169_v46 = vadd.s32 %v168_v19, %v164_v21  ;;  %v279_v47 = vmul.u32 %v277_v36, %v275_v23  ;;  %v280_v48 = vmul.u32 %v278_v39, %v275_v23 }
  0x2c   :  { %v262_v49 = vsel %vm258_vm10, %v242_v30, %v8546_v14  ;;  %v281_v37 = vmul.u32 %v277_v36, %v276_v20  ;;  %v381_v53 = vand.u32 2147483647, %v8479_v8  ;;  %v264_v38 = vsel %vm260_vm11, %v8548_v15, %v263_v41 }
  0x2d   :  { %v305_v52 = vshll.u32 %v302_v43, 16  ;;  %v170_v42 = vadd.s32 536870912, %v169_v46  ;;  %v282_v54 = vmul.u32 %v278_v39, %v276_v20  ;;  %v283_v56 = vshll.u32 %v280_v48, 16 }
  0x2e   :  { %v285_v57 = vshll.u32 %v281_v37, 16  ;;  %v304_v58 = vmul.u32 %v300_v34, %v276_v20  ;;  %v307_v59 = vshll.u32 %v303_v45, 16  ;;  %vm392_vm15 = vcmp.gt.s32.totalorder %v391_v40, 0 }
  0x2f   :  { %v171_v60 = vshrl.u32 %v170_v42, 30  ;;  %vm287_vm0 = vc.u32 %v279_v47, %v283_v56  ;;  %v289_v61 = vadd.s32 %v283_v56, %v279_v47  ;;  %vm309_vm1 = vc.u32 %v301_v51, %v305_v52 }
  0x30   :  { %v284_v14 = vshrl.u32 %v280_v48, 16  ;;  %v288_v62 = vsel %vm287_vm0, 1, %v8416_v50  ;;  %v310_v5 = vsel %vm309_vm1, 1, %v8416_v50  ;;  %v311_v24 = vadd.s32 %v305_v52, %v301_v51 }
  0x31   :  { %v172_v6 = vshll.u32 %v171_v60, 30  ;;  %v290_v7 = vadd.s32 %v288_v62, %v282_v54  ;;  %vm291_vm2 = vc.u32 %v289_v61, %v285_v57  ;;  %v306_v15 = vshrl.u32 %v302_v43, 16 }
  0x32   :  { %v292_v9 = vsel %vm291_vm2, 1, %v8416_v50  ;;  %v312_v10 = vadd.s32 %v310_v5, %v304_v58  ;;  %vm313_vm3 = vc.u32 %v311_v24, %v307_v59  ;;  %v393_v11 = vsel %vm392_vm15, %v391_v40, 0 }
  0x33   :  { %v173_v16 = vsub.s32 %v169_v46, %v172_v6  ;;  %v286_v17 = vshrl.u32 %v281_v37, 16  ;;  %v294_v23 = vadd.s32 %v292_v9, %v290_v7  ;;  %v314_v3 = vsel %vm313_vm3, 1, %v8416_v50 }
  0x34   :  { %v308_v13 = vshrl.u32 %v303_v45, 16  ;;  %v8617_v18 = vadd.s32 %v311_v24, %v307_v59  ;;  %v316_v20 = vadd.s32 %v314_v3, %v312_v10  ;;  %v395_v26 = vand.u32 31, %v393_v11 }
  0x35   :  { %vm174_vm4 = vcmp.lt.s32.totalorder %v173_v16, 0  ;;  %v175_v21 = vsub.s32 0, %v173_v16  ;;  %v295_v22 = vadd.s32 %v294_v23, %v284_v14  ;;  %v265_v28 = vsel %vm259_vm12, %v262_v49, %v264_v38 }
  0x36   :  { %v317_v30 = vadd.s32 %v316_v20, %v306_v15  ;;  %v195_v34 = vsub.s32 4, %v171_v60  ;;  %v388_v39 = vand.u32 8388607, %v381_v53  ;;  %v319_v41 = vmul.u32 %v8490_v25, %v265_v28 }
  0x37   :  { %v176_v32 = vsel %vm174_vm4, %v175_v21, %v173_v16  ;;  %v8621_v36 = vadd.s32 %v295_v22, %v286_v17  ;;  %v396_v43 = vsub.s32 32, %v395_v26  ;;  %vm8630_vm6 = vcmp.le.f32.partialorder %v71_v2, 0.7853982 }
  0x38   :  { %v177_v40 = vclz %v176_v32  ;;  %v318_v19 = vadd.s32 %v317_v30, %v308_v13  ;;  %vm73_vm7 = vcmp.lt.s32.totalorder %v8463_v0, 0  ;;  %v165_v47 = vadd.s32 %v8566_v63, %v8580_v12 }
  0x39   :  { %vm321_vm5 = vc.u32 %v8621_v36, %v8617_v18  ;;  %v196_v25 = vsel %vm73_vm7, %v195_v34, %v171_v60  ;;  %v389_v48 = vor.u32 8388608, %v388_v39  ;;  %v401_v51 = vshll.u32 %v8411_v29, %v395_v26 }
  0x3a   :  { %v6379_v45 = vadd.s32 4294967294, %v177_v40  ;;  %v322_v46 = vadd.s32 1, %v318_v19  ;;  %v404_v2 = vshll.u32 %v8412_v31, %v395_v26  ;;  %v407_v37 = vshll.u32 %v8413_v33, %v395_v26 }
  0x3b   :  { %v402_v38 = vshrl.u32 %v8412_v31, %v396_v43  ;;  %v405_v54 = vshrl.u32 %v8413_v33, %v396_v43  ;;  %v408_v57 = vshrl.u32 %v8414_v35, %v396_v43  ;;  %v8645_v59 = vshrl.u32 %v393_v11, 5 }
  0x3c   :  { %vm6380_vm8 = vcmp.lt.s32.totalorder %v6379_v45, 0  ;;  %v323_v49 = vsel %vm321_vm5, %v322_v46, %v318_v19  ;;  %v410_v60 = vshll.u32 %v8414_v35, %v395_v26  ;;  %v411_v61 = vshrl.u32 %v8415_v44, %v396_v43 }
  0x3d   :  { %v180_v52 = vsel %vm6380_vm8, 0, %v6379_v45  ;;  %v324_v42 = vadd.s32 %v323_v49, %v319_v41  ;;  %v398_v5 = vshll.u32 %v8410_v27, %v395_v26  ;;  %v399_v24 = vshrl.u32 %v8411_v29, %v396_v43 }
  0x3e   :  { %v181_v56 = vsub.s32 32, %v180_v52  ;;  %v182_v63 = vshll.u32 %v173_v16, %v180_v52  ;;  %v185_v12 = vsub.s32 4294967266, %v180_v52  ;;  %v8653_v6 = vsel %vm8630_vm6, 0, %v196_v25 }
  0x3f   :  { %v325_v58 = vadd.s32 536870912, %v324_v42  ;;  %v403_v15 = vor.u32 %v402_v38, %v401_v51  ;;  %v406_v11 = vor.u32 %v405_v54, %v404_v2  ;;  %v409_v16 = vor.u32 %v408_v57, %v407_v37 }
  0x40   :  { %v183_v14 = vshrl.u32 %v165_v47, %v181_v56  ;;  %v186_v62 = vadd.s32 127, %v185_v12  ;;  %v412_v23 = vor.u32 %v411_v61, %v410_v60  ;;  %vm413_vm9 = vcmp.lt.s32.totalorder %v8645_v59, 1 }
  0x41   :  { %v8655_v7 = vshrl.u32 %v325_v58, 30  ;;  %vm416_vm10 = vcmp.lt.s32.totalorder %v8645_v59, 4  ;;  %v400_v20 = vor.u32 %v399_v24, %v398_v5  ;;  %v8660_v21 = vshll.u32 %v389_v48, 8 }
  0x42   :  { %v184_v9 = vor.u32 %v183_v14, %v182_v63  ;;  %v187_v10 = vshll.u32 %v186_v62, 23  ;;  %v397_v26 = vshrl.u32 %v8410_v27, %v396_v43  ;;  %vm415_vm11 = vcmp.lt.s32.totalorder %v8645_v59, 3 }
  0x43   :  { %v327_v17 = vshll.u32 %v8655_v7, 30  ;;  %vm414_vm12 = vcmp.lt.s32.totalorder %v8645_v59, 2  ;;  %v422_v30 = vsel %vm416_vm10, %v409_v16, 920167782  ;;  %v425_v32 = vsel %vm413_vm9, %v403_v15, %v406_v11 }
  0x44   :  { %v188_v3 = vor.u32 4788187, %v187_v10  ;;  %v191_v13 = vcvt.s32.f32 %v184_v9  ;;  %v215_v34 = vadd.s32 3, %v8653_v6  ;;  %v426_v40 = vsel %vm416_vm10, %v412_v23, 1326507024 }
  0x45   :  { %v328_v22 = vsub.s32 %v324_v42, %v327_v17  ;;  %v421_v41 = vsel %vm413_vm9, %v400_v20, %v403_v15  ;;  %v427_v43 = vsel %vm415_vm11, %v409_v16, %v426_v40  ;;  %v430_v45 = vand.u32 65535, %v8660_v21 }
  0x46   :  { %v189_v28 = vand.u32 2147483647, %v188_v3  ;;  %v423_v47 = vsel %vm415_vm11, %v406_v11, %v422_v30  ;;  %v428_v25 = vsel %vm414_vm12, %v425_v32, %v427_v43  ;;  %v431_v48 = vshrl.u32 %v8660_v21, 16 }
  0x47   :  { %vm329_vm13 = vcmp.lt.s32.totalorder %v328_v22, 0  ;;  %v330_v39 = vsub.s32 0, %v328_v22  ;;  %v432_v2 = vand.u32 65535, %v428_v25  ;;  %v433_v37 = vshrl.u32 %v428_v25, 16 }
  0x48   :  { %v192_v19 = vmul.f32 %v191_v13, %v189_v28  ;;  %vm228_vm14 = vcmp.lt.s32.totalorder %v8468_v1, 0  ;;  %v320_v52 = vadd.s32 %v8617_v18, %v8621_v36  ;;  %v418_v42 = vsel %vm416_vm10, %v406_v11, 2102212464 }
  0x49   :  { %v331_v46 = vsel %vm329_vm13, %v330_v39, %v328_v22  ;;  %v424_v56 = vsel %vm414_vm12, %v421_v41, %v423_v47  ;;  %v8691_v63 = vmul.u32 %v433_v37, %v430_v45  ;;  %v8696_v57 = vand.u32 3, %v215_v34 }
  0x4a   :  { %v193_v51 = vxor.u32 2147483648, %v192_v19  ;;  %v332_v49 = vclz %v331_v46  ;;  %v417_v18 = vsel %vm413_vm9, %v397_v26, %v400_v20  ;;  %v434_v36 = vmul.u32 %v432_v2, %v430_v45 }
  0x4b   :  { %v8700_v60 = vmul.u32 %v432_v2, %v431_v48  ;;  %v438_v61 = vshll.u32 %v8691_v63, 16  ;;  %vm8705_vm0 = vcmp.le.f32.partialorder %v226_v4, 0.7853982  ;;  %v350_v62 = vsub.s32 4, %v8655_v7 }
  0x4c   :  { %v194_v38 = vsel %vm73_vm7, %v193_v51, %v192_v19  ;;  %v6382_v54 = vadd.s32 4294967294, %v332_v49  ;;  %v419_v5 = vsel %vm415_vm11, %v403_v15, %v418_v42  ;;  %v455_v24 = vshrl.u32 %v424_v56, 16 }
  0x4d   :  { %v197_v12 = vsel %vm8630_vm6, %v8463_v0, %v194_v38  ;;  %v437_v23 = vmul.u32 %v433_v37, %v431_v48  ;;  %vm442_vm1 = vc.u32 %v434_v36, %v438_v61  ;;  %v454_v3 = vand.u32 65535, %v424_v56 }
  0x4e   :  { %v199_v58 = vmul.f32 %v197_v12, %v197_v12  ;;  %vm6383_vm15 = vcmp.lt.s32.totalorder %v6382_v54, 0  ;;  %v440_v26 = vshll.u32 %v8700_v60, 16  ;;  %v351_v30 = vsel %vm228_vm14, %v350_v62, %v8655_v7 }
  0x4f   :  { %v335_v55 = vsel %vm6383_vm15, 0, %v6382_v54  ;;  %v443_v15 = vsel %vm442_vm1, 1, %v8416_v50  ;;  %v457_v32 = vmul.u32 %v455_v24, %v430_v45  ;;  %v444_v40 = vadd.s32 %v438_v61, %v434_v36 }
  0x50   :  { %v200_v9 = vmul.f32 -0.001358992, %v199_v58  ;;  %v207_v10 = vmul.f32 -0.00019511016, %v199_v58  ;;  %v336_v11 = vsub.s32 32, %v335_v55  ;;  %v337_v16 = vshll.u32 %v328_v22, %v335_v55 }
  0x51   :  { %v340_v17 = vsub.s32 4294967266, %v335_v55  ;;  %v8719_v41 = vsel %vm414_vm12, %v417_v18, %v419_v5  ;;  %v456_v43 = vmul.u32 %v454_v3, %v430_v45  ;;  %v458_v46 = vmul.u32 %v454_v3, %v431_v48 }
  0x52   :  { %v201_v13 = vadd.f32 0.041655596, %v200_v9  ;;  %v208_v4 = vadd.f32 0.008332121, %v207_v10  ;;  %v338_v20 = vshrl.u32 %v320_v52, %v336_v11  ;;  %v445_v51 = vadd.s32 %v443_v15, %v437_v23 }
  0x53   :  { %v341_v28 = vadd.s32 127, %v340_v17  ;;  %vm446_vm2 = vc.u32 %v444_v40, %v440_v26  ;;  %v835_v2 = vand.u32 3, %v8653_v6  ;;  %v460_v37 = vshll.u32 %v457_v32, 16 }
  0x54   :  { %v202_v34 = vmul.f32 %v201_v13, %v199_v58  ;;  %v209_v39 = vmul.f32 %v208_v4, %v199_v58  ;;  %v339_v22 = vor.u32 %v338_v20, %v337_v16  ;;  %v353_v38 = vsel %vm8705_vm0, 0, %v351_v30 }
  0x55   :  { %v342_v19 = vshll.u32 %v341_v28, 23  ;;  %v459_v54 = vmul.u32 %v455_v24, %v431_v48  ;;  %vm214_vm3 = vweird.f32 %v8463_v0  ;;  %v439_v45 = vshrl.u32 %v8691_v63, 16  ;;  %v8731_v48 = vld [vmem:[%s12452_s0 + $0x38] sm:$0xff] }
  0x56   :  { %v203_v47 = vadd.f32 -0.4999988, %v202_v34  ;;  %v210_v25 = vadd.f32 -0.16666654, %v209_v39  ;;  %v346_v7 = vcvt.s32.f32 %v339_v22  ;;  %v441_v56 = vshrl.u32 %v8700_v60, 16 }
  0x57   :  { %v343_v49 = vor.u32 4788187, %v342_v19  ;;  %v447_v18 = vsel %vm446_vm2, 1, %v8416_v50  ;;  %v462_v6 = vshll.u32 %v458_v46, 16  ;;  %vm840_vm4 = vcmp.eq.s32.totalorder %v835_v2, 2 }
  0x58   :  { %v204_v52 = vmul.f32 %v203_v47, %v199_v58  ;;  %v211_v42 = vmul.f32 %v210_v25, %v199_v58  ;;  %v449_v55 = vadd.s32 %v447_v18, %v445_v51  ;;  %vm464_vm5 = vc.u32 %v456_v43, %v460_v37 }
  0x59   :  { %v344_v59 = vand.u32 2147483647, %v343_v49  ;;  %v466_v58 = vadd.s32 %v460_v37, %v456_v43  ;;  %vm837_vm6 = vcmp.eq.s32.totalorder %v835_v2, 0  ;;  %v465_v63 = vsel %vm464_vm5, 1, %v8416_v50 }
  0x5a   :  { %v205_v36 = vadd.f32 1.0, %v204_v52  ;;  %v212_v61 = vadd.f32 1.0, %v211_v42  ;;  %v450_v24 = vadd.s32 %v449_v55, %v439_v45  ;;  %v467_v10 = vadd.s32 %v465_v63, %v459_v54 }
  0x5b   :  { %v347_v62 = vmul.f32 %v346_v7, %v344_v59  ;;  %vm468_vm7 = vc.u32 %v466_v58, %v462_v6  ;;  %vm836_vm8 = vcmp.lt.s32.totalorder %v835_v2, 2  ;;  %v461_v17 = vshrl.u32 %v457_v32, 16 }
  0x5c   :  { %v213_v5 = vmul.f32 %v212_v61, %v197_v12  ;;  %v222_v9 = vxor.u32 2147483648, %v205_v36  ;;  %v370_v23 = vadd.s32 3, %v353_v38  ;;  %v469_v3 = vsel %vm468_vm7, 1, %v8416_v50 }
  0x5d   :  { %v348_v60 = vxor.u32 2147483648, %v347_v62  ;;  %v539_v13 = vand.u32 2139095040, %v8731_v48  ;;  %v463_v26 = vshrl.u32 %v458_v46, 16  ;;  %v471_v28 = vadd.s32 %v469_v3, %v467_v10 }
  0x5e   :  { %v219_v11 = vxor.u32 2147483648, %v213_v5  ;;  %v842_v16 = vsel %vm840_vm4, %v222_v9, %v213_v5  ;;  %v8742_v34 = vadd.s32 %v450_v24, %v441_v56  ;;  %v8744_v32 = vadd.s32 %v466_v58, %v462_v6 }
  0x5f   :  { %v349_v12 = vsel %vm228_vm14, %v348_v60, %v347_v62  ;;  %v472_v22 = vadd.s32 %v471_v28, %v461_v17  ;;  %vm221_vm9 = vcmp.eq.s32.totalorder %v8696_v57, 2  ;;  %v540_v19 = vshrl.u32 %v539_v13, 23 }
  0x60   :  { %v352_v4 = vsel %vm8705_vm0, %v8468_v1, %v349_v12  ;;  %v839_v20 = vsel %vm837_vm6, %v205_v36, %v219_v11  ;;  %vm218_vm10 = vcmp.eq.s32.totalorder %v8696_v57, 0  ;;  %v8752_v43 = vand.u32 3, %v370_v23 }
  0x61   :  { %v354_v30 = vmul.f32 %v352_v4, %v352_v4  ;;  %v843_v15 = vsel %vm836_vm8, %v839_v20, %v842_v16  ;;  %v473_v46 = vadd.s32 %v472_v22, %v463_v26  ;;  %v474_v47 = vmul.u32 %v8660_v21, %v8719_v41 }
  0x62   :  { %v8748_v39 = vsel %vm214_vm3, nan, %v843_v15  ;;  %vm476_vm11 = vc.u32 %v8742_v34, %v8744_v32  ;;  %v6387_v49 = vadd.s32 4294967169, %v540_v19  ;;  %vm217_vm12 = vcmp.lt.s32.totalorder %v8696_v57, 2 }
  0x63   :  { %v355_v40 = vmul.f32 -0.001358992, %v354_v30  ;;  %v362_v14 = vmul.f32 -0.00019511016, %v354_v30  ;;  %v223_v7 = vsel %vm221_vm9, %v222_v9, %v213_v5  ;;  %v477_v2 = vadd.s32 1, %v473_v46 }
  0x64   :  { %v536_v37 = vand.u32 2147483647, %v8731_v48  ;;  %v220_v52 = vsel %vm218_vm10, %v205_v36, %v219_v11  ;;  %v546_v59 = vadd.s32 1, %v6387_v49  ;;  %v989_v45 = vand.u32 3, %v353_v38 }
  0x65   :  { %v356_v25 = vadd.f32 0.041655596, %v355_v40  ;;  %v363_v51 = vadd.f32 0.008332121, %v362_v14  ;;  %v478_v56 = vsel %vm476_vm11, %v477_v2, %v473_v46  ;;  %v8761_v21 = vmul.f32 2.0, %v8463_v0 }
  0x66   :  { %vm372_vm13 = vcmp.lt.s32.totalorder %v8752_v43, 2  ;;  %v479_v61 = vadd.s32 %v478_v56, %v474_v47  ;;  %vm547_vm14 = vcmp.gt.s32.totalorder %v546_v59, 0  ;;  %v224_v55 = vsel %vm217_vm12, %v220_v52, %v223_v7 }
  0x67   :  { %v357_v42 = vmul.f32 %v356_v25, %v354_v30  ;;  %v364_v54 = vmul.f32 %v363_v51, %v354_v30  ;;  %vm369_vm15 = vweird.f32 %v8468_v1  ;;  %vm373_vm0 = vcmp.eq.s32.totalorder %v8752_v43, 0 }
  0x68   :  { %vm376_vm1 = vcmp.eq.s32.totalorder %v8752_v43, 2  ;;  %v548_v38 = vsel %vm547_vm14, %v546_v59, 0  ;;  %v480_v62 = vadd.s32 536870912, %v479_v61  ;;  %v543_v58 = vand.u32 8388607, %v536_v37 }
  0x69   :  { %v358_v41 = vadd.f32 -0.4999988, %v357_v42  ;;  %v365_v18 = vadd.f32 -0.16666654, %v364_v54  ;;  %vm990_vm2 = vcmp.lt.s32.totalorder %v989_v45, 2  ;;  %vm991_vm4 = vcmp.eq.s32.totalorder %v989_v45, 0 }
  0x6a   :  { %v550_v5 = vand.u32 31, %v548_v38  ;;  %v1314_v9 = vand.u32 2139095040, %v8761_v21  ;;  %vm994_vm5 = vcmp.eq.s32.totalorder %v989_v45, 2  ;;  %v8772_v60 = vshrl.u32 %v480_v62, 30 }
  0x6b   :  { %v359_v36 = vmul.f32 %v358_v41, %v354_v30  ;;  %v366_v6 = vmul.f32 %v365_v18, %v354_v30  ;;  %v225_v24 = vsel %vm214_vm3, nan, %v224_v55  ;;  %v8776_v10 = vshrl.u32 %v548_v38, 5 }
  0x6c   :  { %v551_v11 = vsub.s32 32, %v550_v5  ;;  %v553_v16 = vshll.u32 %v8410_v27, %v550_v5  ;;  %v482_v23 = vshll.u32 %v8772_v60, 30  ;;  %v544_v3 = vor.u32 8388608, %v543_v58 }
  0x6d   :  { %v360_v57 = vadd.f32 1.0, %v359_v36  ;;  %v367_v63 = vadd.f32 1.0, %v366_v6  ;;  %v556_v20 = vshll.u32 %v8411_v29, %v550_v5  ;;  %v1315_v28 = vshrl.u32 %v1314_v9, 23 }
  0x6e   :  { %v554_v13 = vshrl.u32 %v8411_v29, %v551_v11  ;;  %v557_v26 = vshrl.u32 %v8412_v31, %v551_v11  ;;  %v483_v22 = vsub.s32 %v479_v61, %v482_v23  ;;  %v560_v14 = vshrl.u32 %v8413_v33, %v551_v11 }
  0x6f   :  { %v368_v17 = vmul.f32 %v367_v63, %v352_v4  ;;  %v377_v12 = vxor.u32 2147483648, %v360_v57  ;;  %v559_v4 = vshll.u32 %v8412_v31, %v550_v5  ;;  %vm568_vm3 = vcmp.lt.s32.totalorder %v8776_v10, 1 }
  0x70   :  { %v555_v40 = vor.u32 %v554_v13, %v553_v16  ;;  %vm484_vm6 = vcmp.lt.s32.totalorder %v483_v22, 0  ;;  %v485_v47 = vsub.s32 0, %v483_v22  ;;  %v558_v49 = vor.u32 %v557_v26, %v556_v20 }
  0x71   :  { %v374_v30 = vxor.u32 2147483648, %v368_v17  ;;  %v378_v0 = vsel %vm376_vm1, %v377_v12, %v368_v17  ;;  %v996_v15 = vsel %vm994_vm5, %v377_v12, %v368_v17  ;;  %v562_v7 = vshll.u32 %v8413_v33, %v550_v5 }
  0x72   :  { %v486_v42 = vsel %vm484_vm6, %v485_v47, %v483_v22  ;;  %v563_v54 = vshrl.u32 %v8414_v35, %v551_v11  ;;  %v565_v43 = vshll.u32 %v8414_v35, %v550_v5  ;;  %v566_v45 = vshrl.u32 %v8415_v44, %v551_v11 }
  0x73   :  { %v375_v19 = vsel %vm373_vm0, %v360_v57, %v374_v30  ;;  %v993_v46 = vsel %vm991_vm4, %v360_v57, %v374_v30  ;;  %v487_v56 = vclz %v486_v42  ;;  %v561_v41 = vor.u32 %v560_v14, %v559_v4 }
  0x74   :  { %v379_v25 = vsel %vm372_vm13, %v375_v19, %v378_v0  ;;  %v997_v51 = vsel %vm990_vm2, %v993_v46, %v996_v15  ;;  %v564_v18 = vor.u32 %v563_v54, %v562_v7  ;;  %vm571_vm7 = vcmp.lt.s32.totalorder %v8776_v10, 4 }
  0x75   :  { %v380_v2 = vsel %vm369_vm15, nan, %v379_v25  ;;  %v8800_v52 = vsel %vm369_vm15, nan, %v997_v51  ;;  %v8806_v61 = vshll.u32 %v544_v3, 8  ;;  %v6385_v1 = vadd.s32 4294967294, %v487_v56 }
  0x76   :  { %v8371_v59 = vpack.i.bf16 %v380_v2, %v225_v24  ;;  %vm570_vm8 = vcmp.lt.s32.totalorder %v8776_v10, 3  ;;  %vm569_vm9 = vcmp.lt.s32.totalorder %v8776_v10, 2  ;;  %v576_v55 = vsel %vm568_vm3, %v555_v40, %v558_v49 }
  0x77   :  { %v577_v38 = vsel %vm571_vm7, %v564_v18, 920167782  ;;  %v6402_v36 = vadd.s32 4294967169, %v1315_v28  ;;  %v475_v6 = vadd.s32 %v8744_v32, %v8742_v34  ;;  %vm6386_vm10 = vcmp.lt.s32.totalorder %v6385_v1, 0 }
  0x78   :  { %8372 = vrot.lane.b32.xlu0 %v8371_v59, %s8417_s9  ;;  %v567_v62 = vor.u32 %v566_v45, %v565_v43  ;;  %v490_v58 = vsel %vm6386_vm10, 0, %v6385_v1  ;;  %v552_v5 = vshrl.u32 %v8410_v27, %v551_v11  ;;  %v578_v9 = vsel %vm570_vm8, %v561_v41, %v577_v38 }
  0x79   :  { %v585_v57 = vand.u32 65535, %v8806_v61  ;;  %v491_v63 = vsub.s32 32, %v490_v58  ;;  %v492_v24 = vshll.u32 %v483_v22, %v490_v58  ;;  %v495_v16 = vsub.s32 4294967266, %v490_v58 }
  0x7a   :  { %v579_v17 = vsel %vm569_vm9, %v576_v55, %v578_v9  ;;  %v573_v12 = vsel %vm571_vm7, %v561_v41, 2102212464  ;;  %v580_v34 = vsel %vm568_vm3, %v558_v49, %v561_v41  ;;  %v586_v32 = vshrl.u32 %v8806_v61, 16 }
  0x7b   :  { %v1321_v11 = vadd.s32 1, %v6402_v36  ;;  %v493_v23 = vshrl.u32 %v475_v6, %v491_v63  ;;  %v496_v3 = vadd.s32 127, %v495_v16  ;;  %v581_v13 = vsel %vm571_vm7, %v567_v62, 1326507024 }
  0x7c   :  { %v609_v20 = vand.u32 65535, %v579_v17  ;;  %vm383_vm11 = vcmp.lt.s32.totalorder %v8479_v8, 0  ;;  %v572_v26 = vsel %vm568_vm3, %v552_v5, %v555_v40  ;;  %v582_v28 = vsel %vm570_vm8, %v564_v18, %v581_v13 }
  0x7d   :  { %v610_v30 = vshrl.u32 %v579_v17, 16  ;;  %vm8837_vm12 = vcmp.le.f32.partialorder %v381_v53, 0.7853982  ;;  %v494_v15 = vor.u32 %v493_v23, %v492_v24  ;;  %v497_v22 = vshll.u32 %v496_v3, 23 }
  0x7e   :  { %v574_v4 = vsel %vm570_vm8, %v558_v49, %v573_v12  ;;  %v583_v14 = vsel %vm569_vm9, %v580_v34, %v582_v28  ;;  %v613_v47 = vmul.u32 %v609_v20, %v586_v32  ;;  %v611_v7 = vmul.u32 %v609_v20, %v585_v57 }
  0x7f   :  { %v587_v19 = vand.u32 65535, %v583_v14  ;;  %v588_v40 = vshrl.u32 %v583_v14, 16  ;;  %v612_v46 = vmul.u32 %v610_v30, %v585_v57  ;;  %v498_v25 = vor.u32 4788187, %v497_v22 }
  0x80   :  { %v501_v51 = vcvt.s32.f32 %v494_v15  ;;  %vm1322_vm13 = vcmp.gt.s32.totalorder %v1321_v11, 0  ;;  %v575_v53 = vsel %vm569_vm9, %v572_v26, %v574_v4  ;;  %v614_v56 = vmul.u32 %v610_v30, %v586_v32 }
  0x81   :  { %v589_v2 = vmul.u32 %v587_v19, %v585_v57  ;;  %v590_v42 = vmul.u32 %v588_v40, %v585_v57  ;;  %v591_v54 = vmul.u32 %v587_v19, %v586_v32  ;;  %v499_v59 = vand.u32 2147483647, %v498_v25 }
  0x82   :  { %v615_v49 = vshll.u32 %v612_v46, 16  ;;  %v617_v43 = vshll.u32 %v613_v47, 16  ;;  %v592_v45 = vmul.u32 %v588_v40, %v586_v32  ;;  %v1323_v1 = vsel %vm1322_vm13, %v1321_v11, 0  ;;  %v8856_v32 = vld [vmem:[%s12452_s0 + $0x28] sm:$0xff] }
  0x83   :  { %v593_v41 = vshll.u32 %v590_v42, 16  ;;  %v595_v18 = vshll.u32 %v591_v54, 16  ;;  %v502_v55 = vmul.f32 %v501_v51, %v499_v59  ;;  %v616_v38 = vshrl.u32 %v612_v46, 16 }
  0x84   :  { %vm619_vm14 = vc.u32 %v611_v7, %v615_v49  ;;  %v621_v36 = vadd.s32 %v615_v49, %v611_v7  ;;  %v594_v6 = vshrl.u32 %v590_v42, 16  ;;  %v618_v63 = vshrl.u32 %v613_v47, 16 }
  0x85   :  { %vm597_vm15 = vc.u32 %v589_v2, %v593_v41  ;;  %v599_v62 = vadd.s32 %v593_v41, %v589_v2  ;;  %v620_v10 = vsel %vm619_vm14, 1, %v8416_v50  ;;  %v503_v58 = vxor.u32 2147483648, %v502_v55 }
  0x86   :  { %v598_v5 = vsel %vm597_vm15, 1, %v8416_v50  ;;  %v622_v9 = vadd.s32 %v620_v10, %v614_v56  ;;  %vm623_vm0 = vc.u32 %v621_v36, %v617_v43  ;;  %v1325_v34 = vand.u32 31, %v1323_v1 }
  0x87   :  { %v600_v57 = vadd.s32 %v598_v5, %v592_v45  ;;  %vm601_vm1 = vc.u32 %v599_v62, %v595_v18  ;;  %v624_v24 = vsel %vm623_vm0, 1, %v8416_v50  ;;  %v504_v16 = vsel %vm383_vm11, %v503_v58, %v502_v55 }
  0x88   :  { %v602_v17 = vsel %vm601_vm1, 1, %v8416_v50  ;;  %v626_v12 = vadd.s32 %v624_v24, %v622_v9  ;;  %v8861_v11 = vsel %vm8837_vm12, %v8856_v32, %v504_v16  ;;  %v596_v23 = vshrl.u32 %v591_v54, 16 }
  0x89   :  { %v604_v3 = vadd.s32 %v602_v17, %v600_v57  ;;  %v1311_v20 = vand.u32 2147483647, %v8761_v21  ;;  %v8864_v26 = vsub.s32 32, %v1325_v34  ;;  %v8866_v30 = vadd.s32 %v621_v36, %v617_v43 }
  0x8a   :  { %v627_v13 = vadd.s32 %v626_v12, %v616_v38  ;;  %v629_v15 = vmul.u32 %v8806_v61, %v575_v53  ;;  %v8869_v22 = vshrl.u32 %v1323_v1, 5  ;;  %v8873_v4 = vmul.f32 %v8861_v11, %v8861_v11 }
  0x8b   :  { %v605_v28 = vadd.s32 %v604_v3, %v594_v6  ;;  %v1328_v19 = vshll.u32 %v8410_v27, %v1325_v34  ;;  %v1331_v40 = vshll.u32 %v8411_v29, %v1325_v34  ;;  %v1329_v47 = vshrl.u32 %v8411_v29, %v8864_v26 }
  0x8c   :  { %v628_v14 = vadd.s32 %v627_v13, %v618_v63  ;;  %v1334_v25 = vshll.u32 %v8412_v31, %v1325_v34  ;;  %v1337_v61 = vshll.u32 %v8413_v33, %v1325_v34  ;;  %v1332_v7 = vshrl.u32 %v8412_v31, %v8864_v26 }
  0x8d   :  { %v8877_v46 = vadd.s32 %v605_v28, %v596_v23  ;;  %v1335_v53 = vshrl.u32 %v8413_v33, %v8864_v26  ;;  %v1338_v2 = vshrl.u32 %v8414_v35, %v8864_v26  ;;  %v517_v42 = vmul.f32 -0.00019511016, %v8873_v4 }
  0x8e   :  { %v632_v51 = vadd.s32 1, %v628_v14  ;;  %v1318_v59 = vand.u32 8388607, %v1311_v20  ;;  %v1340_v43 = vshll.u32 %v8414_v35, %v1325_v34  ;;  %v1341_v45 = vshrl.u32 %v8415_v44, %v8864_v26 }
  0x8f   :  { %vm631_vm2 = vc.u32 %v8877_v46, %v8866_v30  ;;  %v1339_v49 = vor.u32 %v1338_v2, %v1337_v61  ;;  %v8897_v41 = vor.u32 %v1329_v47, %v1328_v19  ;;  %v8899_v18 = vor.u32 %v1332_v7, %v1331_v40 }
  0x90   :  { %v633_v54 = vsel %vm631_vm2, %v632_v51, %v628_v14  ;;  %v8901_v1 = vor.u32 %v1335_v53, %v1334_v25  ;;  %vm1346_vm4 = vcmp.lt.s32.totalorder %v8869_v22, 4  ;;  %vm1343_vm5 = vcmp.lt.s32.totalorder %v8869_v22, 1 }
  0x91   :  { %v634_v56 = vadd.s32 %v633_v54, %v629_v15  ;;  %vm1345_vm3 = vcmp.lt.s32.totalorder %v8869_v22, 3  ;;  %v510_v38 = vmul.f32 -0.001358992, %v8873_v4  ;;  %v1319_v36 = vor.u32 8388608, %v1318_v59 }
  0x92   :  { %v1342_v6 = vor.u32 %v1341_v45, %v1340_v43  ;;  %v518_v62 = vadd.f32 0.008332121, %v517_v42  ;;  %v1352_v58 = vsel %vm1346_vm4, %v1339_v49, 920167782  ;;  %v505_v5 = vsub.s32 4, %v8772_v60 }
  0x93   :  { %v635_v55 = vadd.s32 536870912, %v634_v56  ;;  %vm1344_vm6 = vcmp.lt.s32.totalorder %v8869_v22, 2  ;;  %v1351_v9 = vsel %vm1343_vm5, %v8897_v41, %v8899_v18  ;;  %v1353_v57 = vsel %vm1345_vm3, %v8901_v1, %v1352_v58 }
  0x94   :  { %v1355_v24 = vsel %vm1343_vm5, %v8899_v18, %v8901_v1  ;;  %v511_v16 = vadd.f32 0.041655596, %v510_v38  ;;  %v1356_v17 = vsel %vm1346_vm4, %v1342_v6, 1326507024  ;;  %v8927_v12 = vshll.u32 %v1319_v36, 8 }
  0x95   :  { %v8907_v10 = vshrl.u32 %v635_v55, 30  ;;  %v519_v34 = vmul.f32 %v518_v62, %v8873_v4  ;;  %v1354_v3 = vsel %vm1344_vm6, %v1351_v9, %v1353_v57  ;;  %v1357_v13 = vsel %vm1345_vm3, %v1339_v49, %v1356_v17 }
  0x96   :  { %v506_v28 = vsel %vm383_vm11, %v505_v5, %v8772_v60  ;;  %v1358_v15 = vsel %vm1344_vm6, %v1355_v24, %v1357_v13  ;;  %v1360_v19 = vand.u32 65535, %v8927_v12  ;;  %v1361_v40 = vshrl.u32 %v8927_v12, 16 }
  0x97   :  { %v637_v63 = vshll.u32 %v8907_v10, 30  ;;  %v1362_v47 = vand.u32 65535, %v1358_v15  ;;  %v1363_v25 = vshrl.u32 %v1358_v15, 16  ;;  %v1385_v61 = vshrl.u32 %v1354_v3, 16 }
  0x98   :  { %v8943_v51 = vsel %vm8837_vm12, 0, %v506_v28  ;;  %v512_v7 = vmul.f32 %v511_v16, %v8873_v4  ;;  %v520_v8 = vadd.f32 -0.16666654, %v519_v34  ;;  %v1384_v54 = vand.u32 65535, %v1354_v3 }
  0x99   :  { %v638_v23 = vsub.s32 %v634_v56, %v637_v63  ;;  %v1364_v2 = vmul.u32 %v1362_v47, %v1360_v19  ;;  %v1365_v42 = vmul.u32 %v1363_v25, %v1360_v19  ;;  %v8946_v59 = vmul.u32 %v1362_v47, %v1361_v40 }
  0x9a   :  { %v8948_v56 = vmul.u32 %v1385_v61, %v1360_v19  ;;  %v525_v49 = vadd.s32 3, %v8943_v51  ;;  %v1367_v45 = vmul.u32 %v1363_v25, %v1361_v40  ;;  %v513_v0 = vadd.f32 -0.4999988, %v512_v7 }
  0x9b   :  { %vm639_vm7 = vcmp.lt.s32.totalorder %v638_v23, 0  ;;  %v640_v14 = vsub.s32 0, %v638_v23  ;;  %v1368_v55 = vshll.u32 %v1365_v42, 16  ;;  %v521_v38 = vmul.f32 %v520_v8, %v8873_v4 }
  0x9c   :  { %v630_v36 = vadd.s32 %v8866_v30, %v8877_v46  ;;  %v1370_v6 = vshll.u32 %v8946_v59, 16  ;;  %v8955_v58 = vmul.u32 %v1384_v54, %v1361_v40  ;;  %v1386_v57 = vmul.u32 %v1384_v54, %v1360_v19  ;;  %v8403_v30 = vld [vmem:[%s12452_s0 + $0x18] sm:$0xff] }
  0x9d   :  { %v641_v60 = vsel %vm639_vm7, %v640_v14, %v638_v23  ;;  %vm1372_vm9 = vc.u32 %v1364_v2, %v1368_v55  ;;  %v1374_v62 = vadd.s32 %v1368_v55, %v1364_v2  ;;  %v1390_v63 = vshll.u32 %v8948_v56, 16 }
  0x9e   :  { %v642_v53 = vclz %v641_v60  ;;  %v1373_v9 = vsel %vm1372_vm9, 1, %v8416_v50  ;;  %v514_v3 = vmul.f32 %v513_v0, %v8873_v4  ;;  %v8963_v46 = vmul.f32 2.0, %v8403_v30 }
  0x9f   :  { %v1375_v34 = vadd.s32 %v1373_v9, %v1367_v45  ;;  %vm1376_vm10 = vc.u32 %v1374_v62, %v1370_v6  ;;  %v1392_v14 = vshll.u32 %v8955_v58, 16  ;;  %v522_v19 = vadd.f32 1.0, %v521_v38 }
  0xa0   :  { %v6388_v43 = vadd.s32 4294967294, %v642_v53  ;;  %v1377_v15 = vsel %vm1376_vm10, 1, %v8416_v50  ;;  %v526_v47 = vand.u32 3, %v525_v49  ;;  %vm1394_vm11 = vc.u32 %v1386_v57, %v1390_v63 }
  0xa1   :  { %v1369_v4 = vshrl.u32 %v1365_v42, 16  ;;  %v1379_v8 = vadd.s32 %v1377_v15, %v1375_v34  ;;  %v8967_v60 = vadd.f32 1.0, %v514_v3  ;;  %v660_v53 = vsub.s32 4, %v8907_v10 }
  0xa2   :  { %vm6389_vm8 = vcmp.lt.s32.totalorder %v6388_v43, 0  ;;  %v1327_v2 = vshrl.u32 %v8410_v27, %v8864_v26  ;;  %v1389_v54 = vmul.u32 %v1385_v61, %v1361_v40  ;;  %v1395_v55 = vsel %vm1394_vm11, 1, %v8416_v50 }
  0xa3   :  { %v645_v5 = vsel %vm6389_vm8, 0, %v6388_v43  ;;  %v8974_v49 = vmul.f32 %v522_v19, %v8861_v11  ;;  %vm8978_vm13 = vcmp.le.f32.partialorder %v536_v37, 0.7853982  ;;  %vm538_vm14 = vcmp.lt.s32.totalorder %v8731_v48, 0 }
  0xa4   :  { %v646_v24 = vsub.s32 32, %v645_v5  ;;  %v647_v16 = vshll.u32 %v638_v23, %v645_v5  ;;  %v650_v17 = vsub.s32 4294967266, %v645_v5  ;;  %v1396_v23 = vadd.s32 %v1390_v63, %v1386_v57 }
  0xa5   :  { %v1348_v26 = vsel %vm1346_vm4, %v8901_v1, 2102212464  ;;  %vm531_vm15 = vcmp.eq.s32.totalorder %v526_v47, 2  ;;  %v1371_v61 = vshrl.u32 %v8946_v59, 16  ;;  %v1380_v0 = vadd.s32 %v1379_v8, %v1369_v4 }
  0xa6   :  { %v648_v13 = vshrl.u32 %v630_v36, %v646_v24  ;;  %v651_v28 = vadd.s32 127, %v650_v17  ;;  %vm1398_vm12 = vc.u32 %v1396_v23, %v1392_v14  ;;  %v661_v11 = vsel %vm538_vm14, %v660_v53, %v8907_v10 }
  0xa7   :  { %v1391_v37 = vshrl.u32 %v8948_v56, 16  ;;  %v1397_v38 = vadd.s32 %v1395_v55, %v1389_v54  ;;  %v1399_v36 = vsel %vm1398_vm12, 1, %v8416_v50  ;;  %v532_v6 = vxor.u32 2147483648, %v8967_v60 }
  0xa8   :  { %v649_v25 = vor.u32 %v648_v13, %v647_v16  ;;  %v652_v7 = vshll.u32 %v651_v28, 23  ;;  %v1347_v1 = vsel %vm1343_vm5, %v1327_v2, %v8897_v41  ;;  %v1349_v59 = vsel %vm1345_vm3, %v8899_v18, %v1348_v26 }
  0xa9   :  { %v529_v5 = vxor.u32 2147483648, %v8974_v49  ;;  %v1393_v10 = vshrl.u32 %v8955_v58, 16  ;;  %v1401_v9 = vadd.s32 %v1399_v36, %v1397_v38  ;;  %v1469_v56 = vand.u32 2139095040, %v8963_v46 }
  0xaa   :  { %v653_v43 = vor.u32 4788187, %v652_v7  ;;  %v656_v45 = vcvt.s32.f32 %v649_v25  ;;  %v663_v63 = vsel %vm8978_vm13, 0, %v661_v11  ;;  %v9004_v24 = vadd.s32 %v1380_v0, %v1371_v61 }
  0xab   :  { %v9006_v16 = vadd.s32 %v1396_v23, %v1392_v14  ;;  %vm528_vm0 = vcmp.eq.s32.totalorder %v526_v47, 0  ;;  %v1350_v41 = vsel %vm1344_vm6, %v1347_v1, %v1349_v59  ;;  %v1402_v18 = vadd.s32 %v1401_v9, %v1391_v37 }
  0xac   :  { %v654_v40 = vand.u32 2147483647, %v653_v43  ;;  %v1470_v17 = vshrl.u32 %v1469_v56, 23  ;;  %vm527_vm1 = vcmp.lt.s32.totalorder %v526_v47, 2  ;;  %v533_v58 = vsel %vm531_vm15, %v532_v6, %v8974_v49 }
  0xad   :  { %v680_v30 = vadd.s32 3, %v663_v63  ;;  %v1403_v13 = vadd.s32 %v1402_v18, %v1393_v10  ;;  %v530_v22 = vsel %vm528_vm0, %v8967_v60, %v529_v5  ;;  %v1404_v14 = vmul.u32 %v8927_v12, %v1350_v41 }
  0xae   :  { %v657_v62 = vmul.f32 %v656_v45, %v654_v40  ;;  %v6405_v28 = vadd.s32 4294967169, %v1470_v17  ;;  %vm1406_vm2 = vc.u32 %v9004_v24, %v9006_v16  ;;  %vm524_vm4 = vweird.f32 %v8856_v32 }
  0xaf   :  { %v1407_v19 = vadd.s32 1, %v1403_v13  ;;  %v534_v4 = vsel %vm527_vm1, %v530_v22, %v533_v58  ;;  %v9027_v8 = vand.u32 3, %v680_v30  ;;  %v9030_v12 = vand.u32 3, %v8943_v51 }
  0xb0   :  { %v658_v57 = vxor.u32 2147483648, %v657_v62  ;;  %v1476_v23 = vadd.s32 1, %v6405_v28  ;;  %v1466_v55 = vand.u32 2147483647, %v8963_v46  ;;  %v9035_v47 = vsel %vm524_vm4, nan, %v534_v4 }
  0xb1   :  { %v1408_v53 = vsel %vm1406_vm2, %v1407_v19, %v1403_v13  ;;  %vm683_vm3 = vcmp.eq.s32.totalorder %v9027_v8, 0  ;;  %vm686_vm6 = vcmp.eq.s32.totalorder %v9027_v8, 2  ;;  %vm682_vm7 = vcmp.lt.s32.totalorder %v9027_v8, 2 }
  0xb2   :  { %v659_v34 = vsel %vm538_vm14, %v658_v57, %v657_v62  ;;  %vm1477_vm5 = vcmp.gt.s32.totalorder %v1476_v23, 0  ;;  %v1409_v43 = vadd.s32 %v1408_v53, %v1404_v14  ;;  %v9040_v51 = vand.u32 3, %v663_v63 }
  0xb3   :  { %v662_v3 = vsel %vm8978_vm13, %v8731_v48, %v659_v34  ;;  %v1478_v45 = vsel %vm1477_vm5, %v1476_v23, 0  ;;  %vm679_vm8 = vweird.f32 %v8731_v48  ;;  %vm1145_vm9 = vcmp.eq.s32.totalorder %v9030_v12, 0 }
  0xb4   :  { %v664_v15 = vmul.f32 %v662_v3, %v662_v3  ;;  %v1480_v42 = vand.u32 31, %v1478_v45  ;;  %v1410_v61 = vadd.s32 536870912, %v1409_v43  ;;  %v1473_v36 = vand.u32 8388607, %v1466_v55 }
  0xb5   :  { %v9050_v1 = vmul.f32 2.0, %v8856_v32  ;;  %v9063_v34 = vsel %vm1145_vm9, %v8967_v60, %v529_v5  ;;  %v9065_v13 = vshrl.u32 %v1478_v45, 5  ;;  %vm1148_vm13 = vcmp.eq.s32.totalorder %v9030_v12, 2 }
  0xb6   :  { %v665_v25 = vmul.f32 -0.001358992, %v664_v15  ;;  %v672_v7 = vmul.f32 -0.00019511016, %v664_v15  ;;  %v1481_v0 = vsub.s32 32, %v1480_v42  ;;  %v9042_v38 = vshrl.u32 %v1410_v61, 30 }
  0xb7   :  { %v1483_v62 = vshll.u32 %v8410_v27, %v1480_v42  ;;  %v1486_v56 = vshll.u32 %v8411_v29, %v1480_v42  ;;  %v1492_v41 = vshll.u32 %v8413_v33, %v1480_v42  ;;  %v1489_v28 = vshll.u32 %v8412_v31, %v1480_v42 }
  0xb8   :  { %v666_v2 = vadd.f32 0.041655596, %v665_v25  ;;  %v673_v54 = vadd.f32 0.008332121, %v672_v7  ;;  %v1412_v9 = vshll.u32 %v9042_v38, 30  ;;  %v1484_v57 = vshrl.u32 %v8411_v29, %v1481_v0 }
  0xb9   :  { %v1487_v63 = vshrl.u32 %v8412_v31, %v1481_v0  ;;  %v1493_v18 = vshrl.u32 %v8414_v35, %v1481_v0  ;;  %v1490_v22 = vshrl.u32 %v8413_v33, %v1481_v0  ;;  %v1474_v25 = vor.u32 8388608, %v1473_v36 }
  0xba   :  { %v667_v26 = vmul.f32 %v666_v2, %v664_v15  ;;  %v674_v40 = vmul.f32 %v673_v54, %v664_v15  ;;  %v1413_v30 = vsub.s32 %v1409_v43, %v1412_v9  ;;  %v1485_v7 = vor.u32 %v1484_v57, %v1483_v62 }
  0xbb   :  { %v9073_v4 = vor.u32 %v1487_v63, %v1486_v56  ;;  %v1494_v5 = vor.u32 %v1493_v18, %v1492_v41  ;;  %v1496_v45 = vshrl.u32 %v8415_v44, %v1481_v0  ;;  %vm1498_vm11 = vcmp.lt.s32.totalorder %v9065_v13, 1 }
  0xbc   :  { %v668_v11 = vadd.f32 -0.4999988, %v667_v26  ;;  %v675_v37 = vadd.f32 -0.16666654, %v674_v40  ;;  %vm1414_vm10 = vcmp.lt.s32.totalorder %v1413_v30, 0  ;;  %v1415_v23 = vsub.s32 0, %v1413_v30 }
  0xbd   :  { %vm1501_vm12 = vcmp.lt.s32.totalorder %v9065_v13, 4  ;;  %v1491_v40 = vor.u32 %v1490_v22, %v1489_v28  ;;  %vm1500_vm14 = vcmp.lt.s32.totalorder %v9065_v13, 3  ;;  %vm1499_vm15 = vcmp.lt.s32.totalorder %v9065_v13, 2 }
  0xbe   :  { %v669_v59 = vmul.f32 %v668_v11, %v664_v15  ;;  %v676_v10 = vmul.f32 %v675_v37, %v664_v15  ;;  %v1624_v15 = vand.u32 2139095040, %v9050_v1  ;;  %v1416_v54 = vsel %vm1414_vm10, %v1415_v23, %v1413_v30 }
  0xbf   :  { %v1417_v43 = vclz %v1416_v54  ;;  %v1507_v37 = vsel %vm1501_vm12, %v1494_v5, 920167782  ;;  %v1506_v62 = vsel %vm1498_vm11, %v1485_v7, %v9073_v4  ;;  %v1482_v57 = vshrl.u32 %v8410_v27, %v1481_v0 }
  0xc0   :  { %v9058_v17 = vadd.f32 1.0, %v669_v59  ;;  %v677_v58 = vadd.f32 1.0, %v676_v10  ;;  %v1625_v61 = vshrl.u32 %v1624_v15, 23  ;;  %v9102_v59 = vshll.u32 %v1474_v25, 8 }
  0xc1   :  { %v6403_v11 = vadd.s32 4294967294, %v1417_v43  ;;  %v1405_v10 = vadd.s32 %v9006_v16, %v9004_v24  ;;  %v1508_v63 = vsel %vm1500_vm14, %v1491_v40, %v1507_v37  ;;  %v9118_v24 = vsel %vm1148_vm13, %v532_v6, %v8974_v49 }
  0xc2   :  { %v9070_v14 = vmul.f32 %v677_v58, %v662_v3  ;;  %v687_v19 = vxor.u32 2147483648, %v9058_v17  ;;  %v1495_v3 = vshll.u32 %v8414_v35, %v1480_v42  ;;  %v6408_v41 = vadd.s32 4294967169, %v1625_v61 }
  0xc3   :  { %vm6404_vm0 = vcmp.lt.s32.totalorder %v6403_v11, 0  ;;  %v1510_v16 = vsel %vm1498_vm11, %v9073_v4, %v1491_v40  ;;  %v1515_v0 = vand.u32 65535, %v9102_v59  ;;  %v1516_v22 = vshrl.u32 %v9102_v59, 16 }
  0xc4   :  { %v684_v53 = vxor.u32 2147483648, %v9070_v14  ;;  %v688_v2 = vsel %vm686_vm6, %v687_v19, %v9070_v14  ;;  %v1497_v9 = vor.u32 %v1496_v45, %v1495_v3  ;;  %v1420_v56 = vsel %vm6404_vm0, 0, %v6403_v11 }
  0xc5   :  { %v1421_v18 = vsub.s32 32, %v1420_v56  ;;  %v1422_v58 = vshll.u32 %v1413_v30, %v1420_v56  ;;  %v1425_v28 = vsub.s32 4294967266, %v1420_v56  ;;  %vm1313_vm1 = vcmp.lt.s32.totalorder %v8761_v21, 0 }
  0xc6   :  { %v685_v26 = vsel %vm683_vm3, %v9058_v17, %v684_v53  ;;  %v1511_v23 = vsel %vm1501_vm12, %v1497_v9, 1326507024  ;;  %v1621_v6 = vand.u32 2147483647, %v9050_v1  ;;  %vm9133_vm2 = vcmp.le.f32.partialorder %v1311_v20, 0.7853982 }
  0xc7   :  { %v689_v42 = vsel %vm682_vm7, %v685_v26, %v688_v2  ;;  %v1423_v30 = vshrl.u32 %v1405_v10, %v1421_v18  ;;  %v1426_v15 = vadd.s32 127, %v1425_v28  ;;  %v1512_v60 = vsel %vm1500_vm14, %v1494_v5, %v1511_v23 }
  0xc8   :  { %v690_v36 = vsel %vm679_vm8, nan, %v689_v42  ;;  %v1631_v2 = vadd.s32 1, %v6408_v41  ;;  %v1502_v45 = vsel %vm1498_vm11, %v1482_v57, %v1485_v7  ;;  %v1513_v26 = vsel %vm1499_vm15, %v1510_v16, %v1512_v60 }
  0xc9   :  { %v8381_v8 = vpack.i.bf16 %v690_v36, %v9035_v47  ;;  %v1509_v47 = vsel %vm1499_vm15, %v1506_v62, %v1508_v63  ;;  %v1424_v3 = vor.u32 %v1423_v30, %v1422_v58  ;;  %v1427_v43 = vshll.u32 %v1426_v15, 23 }
  0xca   :  { %v1539_v25 = vand.u32 65535, %v1509_v47  ;;  %v1540_v49 = vshrl.u32 %v1509_v47, 16  ;;  %v1517_v61 = vand.u32 65535, %v1513_v26  ;;  %v1518_v5 = vshrl.u32 %v1513_v26, 16 }
  0xcb   :  { %8382 = vrot.lane.b32.xlu1 %v8381_v8, %s8417_s9  ;;  %v1428_v37 = vor.u32 4788187, %v1427_v43  ;;  %v1431_v36 = vcvt.s32.f32 %v1424_v3  ;;  %v1503_v20 = vsel %vm1501_vm12, %v1491_v40, 2102212464  ;;  %vm1632_vm5 = vcmp.gt.s32.totalorder %v1631_v2, 0 }
  0xcc   :  { %v1542_v42 = vmul.u32 %v1540_v49, %v1515_v0  ;;  %v1543_v11 = vmul.u32 %v1539_v25, %v1516_v22  ;;  %v1541_v62 = vmul.u32 %v1539_v25, %v1515_v0  ;;  %v1519_v8 = vmul.u32 %v1517_v61, %v1515_v0 }
  0xcd   :  { %v1520_v10 = vmul.u32 %v1518_v5, %v1515_v0  ;;  %v1521_v9 = vmul.u32 %v1517_v61, %v1516_v22  ;;  %v1544_v56 = vmul.u32 %v1540_v49, %v1516_v22  ;;  %v1429_v63 = vand.u32 2147483647, %v1428_v37 }
  0xce   :  { %v1545_v41 = vshll.u32 %v1542_v42, 16  ;;  %v1547_v7 = vshll.u32 %v1543_v11, 16  ;;  %v1504_v57 = vsel %vm1500_vm14, %v9073_v4, %v1503_v20  ;;  %v1522_v18 = vmul.u32 %v1518_v5, %v1516_v22 }
  0xcf   :  { %v1523_v58 = vshll.u32 %v1520_v10, 16  ;;  %v1525_v28 = vshll.u32 %v1521_v9, 16  ;;  %v1432_v47 = vmul.f32 %v1431_v36, %v1429_v63  ;;  %v1546_v16 = vshrl.u32 %v1542_v42, 16 }
  0xd0   :  { %vm1549_vm3 = vc.u32 %v1541_v62, %v1545_v41  ;;  %v1551_v40 = vadd.s32 %v1545_v41, %v1541_v62  ;;  %v1633_v15 = vsel %vm1632_vm5, %v1631_v2, 0  ;;  %v1524_v49 = vshrl.u32 %v1520_v10, 16 }
  0xd1   :  { %vm1527_vm6 = vc.u32 %v1519_v8, %v1523_v58  ;;  %v1529_v30 = vadd.s32 %v1523_v58, %v1519_v8  ;;  %v1550_v0 = vsel %vm1549_vm3, 1, %v8416_v50  ;;  %v1433_v23 = vxor.u32 2147483648, %v1432_v47 }
  0xd2   :  { %v1528_v25 = vsel %vm1527_vm6, 1, %v8416_v50  ;;  %v1552_v60 = vadd.s32 %v1550_v0, %v1544_v56  ;;  %vm1553_vm7 = vc.u32 %v1551_v40, %v1547_v7  ;;  %v1548_v26 = vshrl.u32 %v1543_v11, 16 }
  0xd3   :  { %v1530_v3 = vadd.s32 %v1528_v25, %v1522_v18  ;;  %vm1531_vm9 = vc.u32 %v1529_v30, %v1525_v28  ;;  %v1554_v4 = vsel %vm1553_vm7, 1, %v8416_v50  ;;  %v1434_v22 = vsel %vm1313_vm1, %v1433_v23, %v1432_v47 }
  0xd4   :  { %v1532_v43 = vsel %vm1531_vm9, 1, %v8416_v50  ;;  %v1556_v61 = vadd.s32 %v1554_v4, %v1552_v60  ;;  %vm1299_vm10 = vcmp.eq.s32.totalorder %v9040_v51, 0  ;;  %v9156_v2 = vsel %vm9133_vm2, %v8761_v21, %v1434_v22 }
  0xd5   :  { %v1526_v5 = vshrl.u32 %v1521_v9, 16  ;;  %v1534_v42 = vadd.s32 %v1532_v43, %v1530_v3  ;;  %v1635_v37 = vand.u32 31, %v1633_v15  ;;  %vm1302_vm11 = vcmp.eq.s32.totalorder %v9040_v51, 2 }
  0xd6   :  { %v9161_v36 = vmul.f32 %v9156_v2, %v9156_v2  ;;  %v1505_v11 = vsel %vm1499_vm15, %v1502_v45, %v1504_v57  ;;  %v1557_v20 = vadd.s32 %v1556_v61, %v1546_v16  ;;  %v9165_v8 = vadd.s32 %v1551_v40, %v1547_v7 }
  0xd7   :  { %v1535_v62 = vadd.s32 %v1534_v42, %v1524_v49  ;;  %v1628_v10 = vand.u32 8388607, %v1621_v6  ;;  %v9169_v56 = vsub.s32 32, %v1635_v37  ;;  %v1435_v9 = vsub.s32 4, %v9042_v38 }
  0xd8   :  { %v1440_v63 = vmul.f32 -0.001358992, %v9161_v36  ;;  %v1447_v41 = vmul.f32 -0.00019511016, %v9161_v36  ;;  %v1558_v18 = vadd.s32 %v1557_v20, %v1548_v26  ;;  %vm1144_vm12 = vcmp.lt.s32.totalorder %v9030_v12, 2 }
  0xd9   :  { %vm1298_vm13 = vcmp.lt.s32.totalorder %v9040_v51, 2  ;;  %v9176_v13 = vadd.s32 %v1535_v62, %v1526_v5  ;;  %v1559_v45 = vmul.u32 %v9102_v59, %v1505_v11  ;;  %v1638_v7 = vshll.u32 %v8410_v27, %v1635_v37 }
  0xda   :  { %v1641_v57 = vshll.u32 %v8411_v29, %v1635_v37  ;;  %v1448_v58 = vadd.f32 0.008332121, %v1447_v41  ;;  %v1562_v28 = vadd.s32 1, %v1558_v18  ;;  %v1639_v47 = vshrl.u32 %v8411_v29, %v9169_v56 }
  0xdb   :  { %v1642_v16 = vshrl.u32 %v8412_v31, %v9169_v56  ;;  %vm1561_vm14 = vc.u32 %v9176_v13, %v9165_v8  ;;  %v9187_v40 = vshrl.u32 %v1633_v15, 5  ;;  %v1644_v30 = vshll.u32 %v8412_v31, %v1635_v37 }
  0xdc   :  { %v1645_v59 = vshrl.u32 %v8413_v33, %v9169_v56  ;;  %v1304_v0 = vsel %vm1302_vm11, %v687_v19, %v9070_v14  ;;  %v1441_v23 = vadd.f32 0.041655596, %v1440_v63  ;;  %v1563_v25 = vsel %vm1561_vm14, %v1562_v28, %v1558_v18 }
  0xdd   :  { %v1629_v60 = vor.u32 8388608, %v1628_v10  ;;  %v1564_v49 = vadd.s32 %v1563_v25, %v1559_v45  ;;  %v1647_v3 = vshll.u32 %v8413_v33, %v1635_v37  ;;  %v1648_v15 = vshrl.u32 %v8414_v35, %v9169_v56  ;;  %v9271_v25 = vld [vmem:[%s12452_s0 + $0x38] sm:$0xff] }
  0xde   :  { %v1650_v4 = vshll.u32 %v8414_v35, %v1635_v37  ;;  %v1449_v22 = vmul.f32 %v1448_v58, %v9161_v36  ;;  %v9202_v43 = vor.u32 %v1639_v47, %v1638_v7  ;;  %v9204_v26 = vor.u32 %v1642_v16, %v1641_v57 }
  0xdf   :  { %v1651_v19 = vshrl.u32 %v8415_v44, %v9169_v56  ;;  %v1565_v61 = vadd.s32 536870912, %v1564_v49  ;;  %v9208_v5 = vor.u32 %v1645_v59, %v1644_v30  ;;  %v1649_v42 = vor.u32 %v1648_v15, %v1647_v3 }
  0xe0   :  { %vm1656_vm15 = vcmp.lt.s32.totalorder %v9187_v40, 4  ;;  %v1301_v37 = vsel %vm1299_vm10, %v9058_v17, %v684_v53  ;;  %vm1653_vm0 = vcmp.lt.s32.totalorder %v9187_v40, 1  ;;  %vm1655_vm5 = vcmp.lt.s32.totalorder %v9187_v40, 3 }
  0xe1   :  { %v1652_v11 = vor.u32 %v1651_v19, %v1650_v4  ;;  %v1442_v20 = vmul.f32 %v1441_v23, %v9161_v36  ;;  %v9219_v62 = vshrl.u32 %v1565_v61, 30  ;;  %v1662_v10 = vsel %vm1656_vm15, %v1649_v42, 920167782 }
  0xe2   :  { %v9223_v63 = vshll.u32 %v1629_v60, 8  ;;  %v1450_v41 = vadd.f32 -0.16666654, %v1449_v22  ;;  %vm1654_vm3 = vcmp.lt.s32.totalorder %v9187_v40, 2  ;;  %v1661_v17 = vsel %vm1653_vm0, %v9202_v43, %v9204_v26 }
  0xe3   :  { %v1567_v14 = vshll.u32 %v9219_v62, 30  ;;  %v1663_v53 = vsel %vm1655_vm5, %v9208_v5, %v1662_v10  ;;  %v1665_v18 = vsel %vm1653_vm0, %v9204_v26, %v9208_v5  ;;  %v1151_v45 = vsel %vm1144_vm12, %v9063_v34, %v9118_v24 }
  0xe4   :  { %v1305_v7 = vsel %vm1298_vm13, %v1301_v37, %v1304_v0  ;;  %v1436_v57 = vsel %vm1313_vm1, %v1435_v9, %v9042_v38  ;;  %v1666_v58 = vsel %vm1656_vm15, %v1652_v11, 1326507024  ;;  %v1443_v28 = vadd.f32 -0.4999988, %v1442_v20 }
  0xe5   :  { %v9249_v47 = vsub.s32 %v1564_v49, %v1567_v14  ;;  %v1667_v16 = vsel %vm1655_vm5, %v1649_v42, %v1666_v58  ;;  %v1670_v30 = vand.u32 65535, %v9223_v63  ;;  %v1451_v12 = vmul.f32 %v1450_v41, %v9161_v36 }
  0xe6   :  { %v1664_v51 = vsel %vm1654_vm3, %v1661_v17, %v1663_v53  ;;  %v1668_v34 = vsel %vm1654_vm3, %v1665_v18, %v1667_v16  ;;  %v1671_v38 = vshrl.u32 %v9223_v63, 16  ;;  %v9264_v0 = vsel %vm524_vm4, nan, %v1151_v45 }
  0xe7   :  { %vm1569_vm1 = vcmp.lt.s32.totalorder %v9249_v47, 0  ;;  %v1570_v24 = vsub.s32 0, %v9249_v47  ;;  %v1672_v9 = vand.u32 65535, %v1668_v34  ;;  %v1673_v59 = vshrl.u32 %v1668_v34, 16 }
  0xe8   :  { %v1438_v23 = vsel %vm9133_vm2, 0, %v1436_v57  ;;  %v9274_v60 = vmul.f32 2.0, %v9271_v25  ;;  %v1444_v49 = vmul.f32 %v1443_v28, %v9161_v36  ;;  %v9280_v32 = vsel %vm679_vm8, nan, %v1305_v7 }
  0xe9   :  { %v1571_v3 = vsel %vm1569_vm1, %v1570_v24, %v9249_v47  ;;  %v1674_v15 = vmul.u32 %v1672_v9, %v1670_v30  ;;  %v1675_v4 = vmul.u32 %v1673_v59, %v1670_v30  ;;  %v9282_v22 = vmul.u32 %v1672_v9, %v1671_v38 }
  0xea   :  { %v1572_v54 = vclz %v1571_v3  ;;  %v1695_v19 = vshrl.u32 %v1664_v51, 16  ;;  %v1452_v61 = vadd.f32 1.0, %v1451_v12  ;;  %v1455_v42 = vadd.s32 3, %v1438_v23 }
  0xeb   :  { %v1677_v37 = vmul.u32 %v1673_v59, %v1671_v38  ;;  %v1678_v11 = vshll.u32 %v1675_v4, 16  ;;  %vm1468_vm4 = vcmp.lt.s32.totalorder %v8963_v46, 0  ;;  %v1560_v36 = vadd.s32 %v9165_v8, %v9176_v13 }
  0xec   :  { %v6406_v20 = vadd.s32 4294967294, %v1572_v54  ;;  %v1680_v10 = vshll.u32 %v9282_v22, 16  ;;  %v9288_v41 = vadd.f32 1.0, %v1444_v49  ;;  %v1694_v14 = vand.u32 65535, %v1664_v51 }
  0xed   :  { %vm1682_vm8 = vc.u32 %v1674_v15, %v1678_v11  ;;  %v1684_v48 = vadd.s32 %v1678_v11, %v1674_v15  ;;  %v1590_v17 = vsub.s32 4, %v9219_v62  ;;  %v9292_v18 = vmul.u32 %v1695_v19, %v1670_v30 }
  0xee   :  { %vm6407_vm2 = vcmp.lt.s32.totalorder %v6406_v20, 0  ;;  %v1683_v53 = vsel %vm1682_vm8, 1, %v8416_v50  ;;  %v9295_v45 = vmul.f32 %v1452_v61, %v9156_v2  ;;  %vm1454_vm7 = vweird.f32 %v8761_v21 }
  0xef   :  { %v1575_v7 = vsel %vm6407_vm2, 0, %v6406_v20  ;;  %v1685_v8 = vadd.s32 %v1683_v53, %v1677_v37  ;;  %vm1686_vm6 = vc.u32 %v1684_v48, %v1680_v10  ;;  %v9300_v16 = vand.u32 3, %v1455_v42 }
  0xf0   :  { %v1576_v13 = vsub.s32 32, %v1575_v7  ;;  %v1577_v57 = vshll.u32 %v9249_v47, %v1575_v7  ;;  %v1580_v58 = vsub.s32 4294967266, %v1575_v7  ;;  %v1687_v28 = vsel %vm1686_vm6, 1, %v8416_v50 }
  0xf1   :  { %v1637_v12 = vshrl.u32 %v8410_v27, %v9169_v56  ;;  %v1696_v51 = vmul.u32 %v1694_v14, %v1670_v30  ;;  %v9304_v34 = vmul.u32 %v1694_v14, %v1671_v38  ;;  %v1658_v9 = vsel %vm1656_vm15, %v9208_v5, 2102212464 }
  0xf2   :  { %v1578_v2 = vshrl.u32 %v1560_v36, %v1576_v13  ;;  %v1581_v24 = vadd.s32 127, %v1580_v58  ;;  %v1700_v47 = vshll.u32 %v9292_v18, 16  ;;  %v1462_v59 = vxor.u32 2147483648, %v9288_v41 }
  0xf3   :  { %vm9313_vm9 = vcmp.le.f32.partialorder %v1466_v55, 0.7853982  ;;  %v1591_v56 = vsel %vm1468_vm4, %v1590_v17, %v9219_v62  ;;  %v1679_v30 = vshrl.u32 %v1675_v4, 16  ;;  %v1689_v3 = vadd.s32 %v1687_v28, %v1685_v8 }
  0xf4   :  { %v1459_v15 = vxor.u32 2147483648, %v9295_v45  ;;  %v1579_v54 = vor.u32 %v1578_v2, %v1577_v57  ;;  %v1582_v5 = vshll.u32 %v1581_v24, 23  ;;  %v2075_v61 = vand.u32 3, %v1438_v23 }
  0xf5   :  { %v1699_v42 = vmul.u32 %v1695_v19, %v1671_v38  ;;  %v1702_v37 = vshll.u32 %v9304_v34, 16  ;;  %vm9322_vm10 = vc.u32 %v1696_v51, %v1700_v47  ;;  %v1706_v55 = vadd.s32 %v1700_v47, %v1696_v51 }
  0xf6   :  { %v1583_v36 = vor.u32 4788187, %v1582_v5  ;;  %v1586_v20 = vcvt.s32.f32 %v1579_v54  ;;  %vm2076_vm11 = vcmp.lt.s32.totalorder %v2075_v61, 2  ;;  %vm2077_vm12 = vcmp.eq.s32.totalorder %v2075_v61, 0 }
  0xf7   :  { %v2079_v62 = vsel %vm2077_vm12, %v9288_v41, %v1459_v15  ;;  %vm2080_vm13 = vcmp.eq.s32.totalorder %v2075_v61, 2  ;;  %v1681_v4 = vshrl.u32 %v9282_v22, 16  ;;  %v1690_v10 = vadd.s32 %v1689_v3, %v1679_v30 }
  0xf8   :  { %v1584_v48 = vand.u32 2147483647, %v1583_v36  ;;  %v2082_v38 = vsel %vm2080_vm13, %v1462_v59, %v9295_v45  ;;  %v8376_v23 = vpack.i.bf16 %v8800_v52, %v8748_v39  ;;  %v1701_v19 = vshrl.u32 %v9292_v18, 16 }
  0xf9   :  { %v2083_v14 = vsel %vm2076_vm11, %v2079_v62, %v2082_v38  ;;  %v8386_v17 = vpack.i.bf16 %v9280_v32, %v9264_v0  ;;  %v1705_v53 = vsel %vm9322_vm10, 1, %v8416_v50  ;;  %vm1708_vm14 = vc.u32 %v1706_v55, %v1702_v37 }
  0xfa   :  { %v1587_v7 = vmul.f32 %v1586_v20, %v1584_v48  ;;  %v9339_v22 = vsel %vm1454_vm7, nan, %v2083_v14  ;;  %8377 = vrot.lane.b32.xlu0 %v8376_v23, %s8418_s16  ;;  %v1707_v8 = vadd.s32 %v1705_v53, %v1699_v42  ;;  %v1709_v39 = vsel %vm1708_vm14, 1, %v8416_v50 }
  0xfb   :  { %vm1458_vm15 = vcmp.eq.s32.totalorder %v9300_v16, 0  ;;  %8387 = vrot.lane.b32.xlu1 %v8386_v17, %s8418_s16  ;;  %v1657_v52 = vsel %vm1653_vm0, %v1637_v12, %v9202_v43  ;;  %v1659_v0 = vsel %vm1655_vm5, %v9204_v26, %v1658_v9  ;;  %v1779_v32 = vand.u32 2139095040, %v9274_v60 }
  0xfc   :  { %v1588_v18 = vxor.u32 2147483648, %v1587_v7  ;;  %v1593_v13 = vsel %vm9313_vm9, 0, %v1591_v56  ;;  %v1703_v57 = vshrl.u32 %v9304_v34, 16  ;;  %v1711_v58 = vadd.s32 %v1709_v39, %v1707_v8 }
  0xfd   :  { %vm1461_vm1 = vcmp.eq.s32.totalorder %v9300_v16, 2  ;;  %v9354_v28 = vadd.s32 %v1690_v10, %v1681_v4  ;;  %v9356_v51 = vadd.s32 %v1706_v55, %v1702_v37  ;;  %v1780_v43 = vshrl.u32 %v1779_v32, 23 }
  0xfe   :  { %v1589_v12 = vsel %vm1468_vm4, %v1588_v18, %v1587_v7  ;;  %v1660_v26 = vsel %vm1654_vm3, %v1657_v52, %v1659_v0  ;;  %v1712_v2 = vadd.s32 %v1711_v58, %v1701_v19  ;;  %vm1457_vm0 = vcmp.lt.s32.totalorder %v9300_v16, 2 }
  0xff   :  { %v1592_v34 = vsel %vm9313_vm9, %v8963_v46, %v1589_v12  ;;  %v1610_v24 = vadd.s32 3, %v1593_v13  ;;  %v6411_v9 = vadd.s32 4294967169, %v1780_v43  ;;  %v1460_v47 = vsel %vm1458_vm15, %v9288_v41, %v1459_v15 }
 0x100   :  { %v1463_v56 = vsel %vm1461_vm1, %v1462_v59, %v9295_v45  ;;  %v1594_v30 = vmul.f32 %v1592_v34, %v1592_v34  ;;  %v1713_v3 = vadd.s32 %v1712_v2, %v1703_v57  ;;  %v1714_v40 = vmul.u32 %v9223_v63, %v1660_v26 }
 0x101   :  { %vm1716_vm5 = vc.u32 %v9354_v28, %v9356_v51  ;;  %v1776_v54 = vand.u32 2147483647, %v9274_v60  ;;  %v1786_v5 = vadd.s32 1, %v6411_v9  ;;  %v1464_v37 = vsel %vm1457_vm0, %v1460_v47, %v1463_v56 }
 0x102   :  { %v1595_v49 = vmul.f32 -0.001358992, %v1594_v30  ;;  %v1602_v61 = vmul.f32 -0.00019511016, %v1594_v30  ;;  %v1717_v42 = vadd.s32 1, %v1713_v3  ;;  %v9374_v11 = vand.u32 3, %v1610_v24 }
 0x103   :  { %v9376_v16 = vand.u32 3, %v1593_v13  ;;  %vm1787_vm3 = vcmp.gt.s32.totalorder %v1786_v5, 0  ;;  %v1783_v55 = vand.u32 8388607, %v1776_v54  ;;  %v9382_v4 = vsel %vm1454_vm7, nan, %v1464_v37 }
 0x104   :  { %v1596_v41 = vadd.f32 0.041655596, %v1595_v49  ;;  %v1603_v45 = vadd.f32 0.008332121, %v1602_v61  ;;  %v1718_v59 = vsel %vm1716_vm5, %v1717_v42, %v1713_v3  ;;  %v1788_v15 = vsel %vm1787_vm3, %v1786_v5, 0 }
 0x105   :  { %v1719_v63 = vadd.s32 %v1718_v59, %v1714_v40  ;;  %v1790_v36 = vand.u32 31, %v1788_v15  ;;  %vm1613_vm4 = vcmp.eq.s32.totalorder %v9374_v11, 0  ;;  %vm1612_vm8 = vcmp.lt.s32.totalorder %v9374_v11, 2 }
 0x106   :  { %v1597_v20 = vmul.f32 %v1596_v41, %v1594_v30  ;;  %v1604_v62 = vmul.f32 %v1603_v45, %v1594_v30  ;;  %vm1616_vm2 = vcmp.eq.s32.totalorder %v9374_v11, 2  ;;  %vm2230_vm6 = vcmp.lt.s32.totalorder %v9376_v16, 2 }
 0x107   :  { %v1720_v10 = vadd.s32 536870912, %v1719_v63  ;;  %v9385_v48 = vsub.s32 32, %v1790_v36  ;;  %vm1609_vm9 = vweird.f32 %v8963_v46  ;;  %vm2234_vm10 = vcmp.eq.s32.totalorder %v9376_v16, 2 }
 0x108   :  { %v1598_v38 = vadd.f32 -0.4999988, %v1597_v20  ;;  %v1605_v23 = vadd.f32 -0.16666654, %v1604_v62  ;;  %v1784_v19 = vor.u32 8388608, %v1783_v55  ;;  %v9394_v14 = vshrl.u32 %v1788_v15, 5 }
 0x109   :  { %v9392_v21 = vshrl.u32 %v1720_v10, 30  ;;  %v1793_v7 = vshll.u32 %v8410_v27, %v1790_v36  ;;  %v1796_v8 = vshll.u32 %v8411_v29, %v1790_v36  ;;  %v1794_v52 = vshrl.u32 %v8411_v29, %v9385_v48 }
 0x10a   :  { %v1599_v17 = vmul.f32 %v1598_v38, %v1594_v30  ;;  %v1606_v53 = vmul.f32 %v1605_v23, %v1594_v30  ;;  %v1797_v0 = vshrl.u32 %v8412_v31, %v9385_v48  ;;  %v1799_v32 = vshll.u32 %v8412_v31, %v1790_v36 }
 0x10b   :  { %v1722_v39 = vshll.u32 %v9392_v21, 30  ;;  %v1800_v57 = vshrl.u32 %v8413_v33, %v9385_v48  ;;  %v1802_v58 = vshll.u32 %v8413_v33, %v1790_v36  ;;  %v1803_v12 = vshrl.u32 %v8414_v35, %v9385_v48 }
 0x10c   :  { %v1600_v18 = vadd.f32 1.0, %v1599_v17  ;;  %v1607_v13 = vadd.f32 1.0, %v1606_v53  ;;  %v1805_v26 = vshll.u32 %v8414_v35, %v1790_v36  ;;  %v1806_v29 = vshrl.u32 %v8415_v44, %v9385_v48 }
 0x10d   :  { %v1723_v43 = vsub.s32 %v1719_v63, %v1722_v39  ;;  %vm2231_vm7 = vcmp.eq.s32.totalorder %v9376_v16, 0  ;;  %v9413_v31 = vshll.u32 %v1784_v19, 8  ;;  %v9415_v47 = vor.u32 %v1794_v52, %v1793_v7 }
 0x10e   :  { %v1608_v2 = vmul.f32 %v1607_v13, %v1592_v34  ;;  %v1617_v24 = vxor.u32 2147483648, %v1600_v18  ;;  %v9417_v33 = vor.u32 %v1797_v0, %v1796_v8  ;;  %v9423_v44 = vor.u32 %v1800_v57, %v1799_v32 }
 0x10f   :  { %vm1724_vm11 = vcmp.lt.s32.totalorder %v1723_v43, 0  ;;  %v1725_v9 = vsub.s32 0, %v1723_v43  ;;  %v1804_v3 = vor.u32 %v1803_v12, %v1802_v58  ;;  %v1807_v40 = vor.u32 %v1806_v29, %v1805_v26 }
 0x110   :  { %v1614_v56 = vxor.u32 2147483648, %v1608_v2  ;;  %v1618_v30 = vsel %vm1616_vm2, %v1617_v24, %v1608_v2  ;;  %v2236_v35 = vsel %vm2234_vm10, %v1617_v24, %v1608_v2  ;;  %vm1808_vm12 = vcmp.lt.s32.totalorder %v9394_v14, 1  ;;  %v6640_v24 = vld [vmem:[%s12453_s1 + $0x170] sm:$0xf] }
 0x111   :  { %v1726_v34 = vsel %vm1724_vm11, %v1725_v9, %v1723_v43  ;;  %vm1811_vm13 = vcmp.lt.s32.totalorder %v9394_v14, 4  ;;  %vm1809_vm14 = vcmp.lt.s32.totalorder %v9394_v14, 2  ;;  %vm1810_vm15 = vcmp.lt.s32.totalorder %v9394_v14, 3 }
 0x112   :  { %v1615_v5 = vsel %vm1613_vm4, %v1600_v18, %v1614_v56  ;;  %v2233_v49 = vsel %vm2231_vm7, %v1600_v18, %v1614_v56  ;;  %v1727_v61 = vclz %v1726_v34  ;;  %v1816_v11 = vsel %vm1808_vm12, %v9415_v47, %v9417_v33 }
 0x113   :  { %v1619_v42 = vsel %vm1612_vm8, %v1615_v5, %v1618_v30  ;;  %v2237_v37 = vsel %vm2230_vm6, %v2233_v49, %v2236_v35  ;;  %v1817_v15 = vsel %vm1811_vm13, %v1804_v3, 920167782  ;;  %v1715_v63 = vadd.s32 %v9356_v51, %v9354_v28 }
 0x114   :  { %v1620_v41 = vsel %vm1609_vm9, nan, %v1619_v42  ;;  %v9439_v45 = vsel %vm1609_vm9, nan, %v2237_v37  ;;  %v6409_v59 = vadd.s32 4294967294, %v1727_v61  ;;  %v1818_v46 = vsel %vm1810_vm15, %v9423_v44, %v1817_v15 }
 0x115   :  { %v8391_v16 = vpack.i.bf16 %v1620_v41, %v9382_v4  ;;  %v1820_v55 = vsel %vm1808_vm12, %v9417_v33, %v9423_v44  ;;  %v1819_v20 = vsel %vm1809_vm14, %v1816_v11, %v1818_v46  ;;  %v1821_v28 = vsel %vm1811_vm13, %v1807_v40, 1326507024 }
 0x116   :  { %vm6410_vm1 = vcmp.lt.s32.totalorder %v6409_v59, 0  ;;  %v1825_v51 = vand.u32 65535, %v9413_v31  ;;  %v1822_v38 = vsel %vm1810_vm15, %v1804_v3, %v1821_v28  ;;  %v1826_v19 = vshrl.u32 %v9413_v31, 16 }
 0x117   :  { %8392 = vrot.lane.b32.xlu2 %v8391_v16, %s8419_s17  ;;  %v1730_v36 = vsel %vm6410_vm1, 0, %v6409_v59  ;;  %v1823_v23 = vsel %vm1809_vm14, %v1820_v55, %v1822_v38  ;;  %v1849_v39 = vand.u32 65535, %v1819_v20  ;;  %v1850_v52 = vshrl.u32 %v1819_v20, 16 }
 0x118   :  { %v1731_v62 = vsub.s32 32, %v1730_v36  ;;  %v1732_v4 = vshll.u32 %v1723_v43, %v1730_v36  ;;  %v1735_v10 = vsub.s32 4294967266, %v1730_v36  ;;  %v1827_v7 = vand.u32 65535, %v1823_v23 }
 0x119   :  { %v1828_v8 = vshrl.u32 %v1823_v23, 16  ;;  %vm1623_vm0 = vcmp.lt.s32.totalorder %v9050_v1, 0  ;;  %v1852_v43 = vmul.u32 %v1850_v52, %v1825_v51  ;;  %v1851_v2 = vmul.u32 %v1849_v39, %v1825_v51 }
 0x11a   :  { %v1733_v17 = vshrl.u32 %v1715_v63, %v1731_v62  ;;  %v1736_v53 = vadd.s32 127, %v1735_v10  ;;  %v1829_v18 = vmul.u32 %v1827_v7, %v1825_v51  ;;  %v1831_v57 = vmul.u32 %v1827_v7, %v1826_v19 }
 0x11b   :  { %v1830_v13 = vmul.u32 %v1828_v8, %v1825_v51  ;;  %v1832_v58 = vmul.u32 %v1828_v8, %v1826_v19  ;;  %vm9471_vm5 = vcmp.le.f32.partialorder %v1621_v6, 0.7853982  ;;  %v1853_v56 = vmul.u32 %v1849_v39, %v1826_v19 }
 0x11c   :  { %v1734_v0 = vor.u32 %v1733_v17, %v1732_v4  ;;  %v1737_v32 = vshll.u32 %v1736_v53, 23  ;;  %v1835_v9 = vshll.u32 %v1831_v57, 16  ;;  %v1854_v30 = vmul.u32 %v1850_v52, %v1826_v19 }
 0x11d   :  { %v1833_v29 = vshll.u32 %v1830_v13, 16  ;;  %v1855_v3 = vshll.u32 %v1852_v43, 16  ;;  %v1792_v40 = vshrl.u32 %v8410_v27, %v9385_v48  ;;  %v1834_v5 = vshrl.u32 %v1830_v13, 16 }
 0x11e   :  { %v1738_v12 = vor.u32 4788187, %v1737_v32  ;;  %v1741_v26 = vcvt.s32.f32 %v1734_v0  ;;  %v1857_v61 = vshll.u32 %v1853_v56, 16  ;;  %v1813_v6 = vsel %vm1811_vm13, %v9423_v44, 2102212464 }
 0x11f   :  { %vm1837_vm3 = vc.u32 %v1829_v18, %v1833_v29  ;;  %v1839_v34 = vadd.s32 %v1833_v29, %v1829_v18  ;;  %vm1859_vm8 = vc.u32 %v1851_v2, %v1855_v3  ;;  %v1861_v11 = vadd.s32 %v1855_v3, %v1851_v2 }
 0x120   :  { %v1739_v35 = vand.u32 2147483647, %v1738_v12  ;;  %v1838_v49 = vsel %vm1837_vm3, 1, %v8416_v50  ;;  %v1860_v59 = vsel %vm1859_vm8, 1, %v8416_v50  ;;  %v1836_v15 = vshrl.u32 %v1831_v57, 16 }
 0x121   :  { %v1840_v37 = vadd.s32 %v1838_v49, %v1832_v58  ;;  %vm1841_vm4 = vc.u32 %v1839_v34, %v1835_v9  ;;  %v1862_v48 = vadd.s32 %v1860_v59, %v1854_v30  ;;  %v1812_v63 = vsel %vm1808_vm12, %v1792_v40, %v9415_v47 }
 0x122   :  { %v1742_v42 = vmul.f32 %v1741_v26, %v1739_v35  ;;  %v1842_v41 = vsel %vm1841_vm4, 1, %v8416_v50  ;;  %v1856_v46 = vshrl.u32 %v1852_v43, 16  ;;  %vm1863_vm2 = vc.u32 %v1861_v11, %v1857_v61 }
 0x123   :  { %v1844_v27 = vadd.s32 %v1842_v41, %v1840_v37  ;;  %v1814_v44 = vsel %vm1810_vm15, %v9417_v33, %v1813_v6  ;;  %v1864_v20 = vsel %vm1863_vm2, 1, %v8416_v50  ;;  %v1858_v51 = vshrl.u32 %v1853_v56, 16 }
 0x124   :  { %v1743_v16 = vxor.u32 2147483648, %v1742_v42  ;;  %v1866_v62 = vadd.s32 %v1864_v20, %v1862_v48  ;;  %v1865_v10 = vadd.s32 %v1861_v11, %v1857_v61  ;;  %v1815_v38 = vsel %vm1809_vm14, %v1812_v63, %v1814_v44  ;;  %v8042_v44 = vld [vmem:[%s12453_s1 + $0x174] sm:$0xf0] }
 0x125   :  { %v1845_v36 = vadd.s32 %v1844_v27, %v1834_v5  ;;  %v1869_v33 = vmul.u32 %v9413_v31, %v1815_v38  ;;  %v1745_v2 = vsub.s32 4, %v9392_v21  ;;  %vm27_vm13 = vcmask 1040384   ;;  %v6600_v38 = vld [vmem:[%s12453_s1 + $0x120] sm:$0xf] }
 0x126   :  { %v1744_v55 = vsel %vm1623_vm0, %v1743_v16, %v1742_v42  ;;  %v1867_v23 = vadd.s32 %v1866_v62, %v1856_v46  ;;  %vm1764_vm14 = vweird.f32 %v9050_v1  ;;  %v6641_v20 = vor.u32 %v8042_v44, %v6640_v24  ;;  %v6608_v44 = vld [vmem:[%s12453_s1 + $0x130] sm:$0xf] }
 0x127   :  { %v1747_v28 = vsel %vm9471_vm5, %v9050_v1, %v1744_v55  ;;  %v1846_v47 = vadd.s32 %v1845_v36, %v1836_v15  ;;  %v1746_v3 = vsel %vm1623_vm0, %v1745_v2, %v9392_v21  ;;  %vm28_vm15 = vsmask.f32 256 }
 0x128   :  { %v1749_v4 = vmul.f32 %v1747_v28, %v1747_v28  ;;  %v1868_v19 = vadd.s32 %v1867_v23, %v1858_v51  ;;  %v1748_v41 = vsel %vm9471_vm5, 0, %v1746_v3  ;;  %v8040_v51 = vld [vmem:[%s12453_s1 + $0x164] sm:$0xf0]  ;;  %vm1778_vm1 = vcmp.lt.s32.totalorder %v9274_v60, 0  ;;  %vm9539_vm0 = vmand %vm27_vm13, %vm28_vm15  ;;  %3879 = vmatpush.bf16.msra.mxu2 %v6641_v20 }
 0x129   :  { %vm1871_vm6 = vc.u32 %v1846_v47, %v1865_v10  ;;  %v1870_v35 = vadd.s32 %v1865_v10, %v1846_v47  ;;  %v2383_v16 = vand.u32 3, %v1748_v41  ;;  %v37_v10 = vld [vmem:[#allocation2 + $0x8] sm:$0x1]  ;;  %vm9545_vm5 = vcmp.le.f32.partialorder %v1776_v54, 0.7853982 }
 0x12a   :  { %v1757_v17 = vmul.f32 -0.00019511016, %v1749_v4  ;;  %v1872_v53 = vadd.s32 1, %v1868_v19  ;;  %v1750_v7 = vmul.f32 -0.001358992, %v1749_v4 }
 0x12b   :  { %vm2384_vm7 = vcmp.lt.s32.totalorder %v2383_v16, 2  ;;  %vm2385_vm11 = vcmp.eq.s32.totalorder %v2383_v16, 0  ;;  %vm2388_vm12 = vcmp.eq.s32.totalorder %v2383_v16, 2  ;;  %vm46_vm3 = vsmask.f32 7938 }
 0x12c   :  { %v1873_v50 = vsel %vm1871_vm6, %v1872_v53, %v1868_v19  ;;  %v1758_v8 = vadd.f32 0.008332121, %v1757_v17  ;;  %v1751_v0 = vadd.f32 0.041655596, %v1750_v7  ;;  %v38_v17 = vsel %vm9539_vm0, 0, %v37_v10  ;;  %vm9556_vm4 = vmand %vm27_vm13, %vm46_vm3 }
 0x12d   :  { %v1874_v39 = vadd.s32 %v1873_v50, %v1869_v33  ;;  %39 = vst [vmem:[#allocation2 + $0x8] sm:$0x1] %v38_v17  ;;  %v54_v53 = vld [vmem:[#allocation2 + $0x20] sm:$0x1]  ;;  %v60_v50 = vld [vmem:[#allocation2 + $0x44] sm:$0x1] }
 0x12e   :  { %v1759_v32 = vmul.f32 %v1758_v8, %v1749_v4  ;;  %v1752_v14 = vmul.f32 %v1751_v0, %v1749_v4  ;;  %v61_v0 = vsel %vm9556_vm4, 0, %v60_v50  ;;  %v8036_v16 = vld [vmem:[%s12453_s1 + $0x144] sm:$0xf0] }
 0x12f   :  { %v1875_v52 = vadd.s32 536870912, %v1874_v39  ;;  %62 = vst [vmem:[#allocation2 + $0x44] sm:$0x1] %v61_v0 }
 0x130   :  { %v1760_v57 = vadd.f32 -0.16666654, %v1759_v32  ;;  %v1753_v12 = vadd.f32 -0.4999988, %v1752_v14 }
 0x131   :  { %v9498_v18 = vshrl.u32 %v1875_v52, 30  ;;  %v55_v52 = vsel %vm9556_vm4, 0, %v54_v53 }
 0x132   :  { %v1761_v31 = vmul.f32 %v1760_v57, %v1749_v4  ;;  %v1754_v56 = vmul.f32 %v1753_v12, %v1749_v4  ;;  %56 = vst [vmem:[#allocation2 + $0x20] sm:$0x1] %v55_v52  ;;  %v9625_v52 = vld [vmem:[%s12452_s0 + $0x8] sm:$0xff] }
 0x133   :  { %v1877_v13 = vshll.u32 %v9498_v18, 30  ;;  %v1900_v23 = vsub.s32 4, %v9498_v18 }
 0x134   :  { %v1762_v30 = vadd.f32 1.0, %v1761_v31  ;;  %v9505_v61 = vadd.f32 1.0, %v1754_v56 }
 0x135   :  { %v1878_v58 = vsub.s32 %v1874_v39, %v1877_v13  ;;  %v1901_v8 = vsel %vm1778_vm1, %v1900_v23, %v9498_v18  ;;  %v1765_v13 = vadd.s32 3, %v1748_v41  ;;  %v6624_v41 = vld [vmem:[%s12453_s1 + $0x150] sm:$0xf]  ;;  %v8032_v23 = vld [vmem:[%s12453_s1 + $0x124] sm:$0xf0] }
 0x136   :  { %v9507_v42 = vmul.f32 %v1762_v30, %v1747_v28  ;;  %v1772_v27 = vxor.u32 2147483648, %v9505_v61  ;;  %v6632_v28 = vld [vmem:[%s12453_s1 + $0x160] sm:$0xf]  ;;  %v1903_v14 = vsel %vm9545_vm5, 0, %v1901_v8  ;;  %v9618_v8 = vld [vmem:[%s12452_s0 + $0x18] sm:$0xff] }
 0x137   :  { %vm1879_vm9 = vcmp.lt.s32.totalorder %v1878_v58, 0  ;;  %v1880_v43 = vsub.s32 0, %v1878_v58  ;;  %v6633_v19 = vor.u32 %v8040_v51, %v6632_v28  ;;  %v1766_v12 = vand.u32 3, %v1765_v13 }
 0x138   :  { %v1769_v15 = vxor.u32 2147483648, %v9507_v42  ;;  %v2390_v55 = vsel %vm2388_vm12, %v1772_v27, %v9507_v42  ;;  %v1920_v31 = vadd.s32 3, %v1903_v14  ;;  %v2537_v30 = vand.u32 3, %v1903_v14 }
 0x139   :  { %v1881_v26 = vsel %vm1879_vm9, %v1880_v43, %v1878_v58  ;;  %3880 = vmatpush.bf16.msra.mxu2 %v6633_v19  ;;  %vm1768_vm8 = vcmp.eq.s32.totalorder %v1766_v12, 0  ;;  %vm1771_vm2 = vcmp.eq.s32.totalorder %v1766_v12, 2  ;;  %vm1767_vm6 = vcmp.lt.s32.totalorder %v1766_v12, 2 }
 0x13a   :  { %v1882_v29 = vclz %v1881_v26  ;;  %v2387_v63 = vsel %vm2385_vm11, %v9505_v61, %v1769_v15  ;;  %v1921_v56 = vand.u32 3, %v1920_v31  ;;  %v1770_v3 = vsel %vm1768_vm8, %v9505_v61, %v1769_v15  ;;  %v2712_v31 = vld [vmem:[#allocation2 + $0x8] sm:$0xf] }
 0x13b   :  { %v2391_v36 = vsel %vm2384_vm7, %v2387_v63, %v2390_v55  ;;  %vm2539_vm12 = vcmp.eq.s32.totalorder %v2537_v30, 0  ;;  %vm2538_vm13 = vcmp.lt.s32.totalorder %v2537_v30, 2  ;;  %v43_v63 = vld [vmem:[#allocation2 + $0x2c] sm:$0x1]  ;;  %v6601_v19 = vor.u32 %v8032_v23, %v6600_v38 }
 0x13c   :  { %v6412_v9 = vadd.s32 4294967294, %v1882_v29  ;;  %v9535_v4 = vsel %vm1764_vm14, nan, %v2391_v36  ;;  %vm1926_vm9 = vcmp.eq.s32.totalorder %v1921_v56, 2  ;;  %vm1922_vm7 = vcmp.lt.s32.totalorder %v1921_v56, 2  ;;  %v8034_v36 = vld [vmem:[%s12453_s1 + $0x134] sm:$0xf0] }
 0x13d   :  { %vm1923_vm11 = vcmp.eq.s32.totalorder %v1921_v56, 0  ;;  %v44_v20 = vsel %vm9539_vm0, 0, %v43_v63  ;;  %v6609_v10 = vor.u32 %v8034_v36, %v6608_v44  ;;  %vm2622_vm8 = vsmask.f32 4368  ;;  %v6568_v63 = vld [vmem:[%s12453_s1 + $0xe0] sm:$0xf] }
 0x13e   :  { %vm6413_vm10 = vcmp.lt.s32.totalorder %v6412_v9, 0  ;;  %45 = vst [vmem:[#allocation2 + $0x2c] sm:$0x1] %v44_v20 }
 0x13f   :  { %v1885_v34 = vsel %vm6413_vm10, 0, %v6412_v9  ;;  %vm2542_vm10 = vcmp.eq.s32.totalorder %v2537_v30, 2 }
 0x140   :  { %v1886_v40 = vsub.s32 32, %v1885_v34  ;;  %v1887_v5 = vshll.u32 %v1878_v58, %v1885_v34  ;;  %v1890_v49 = vsub.s32 4294967266, %v1885_v34 }
 0x142   :  { %v1888_v37 = vshrl.u32 %v1870_v35, %v1886_v40  ;;  %v1891_v6 = vadd.s32 127, %v1890_v49  ;;  %v1773_v40 = vsel %vm1771_vm2, %v1772_v27, %v9507_v42  ;;  %v6616_v42 = vld [vmem:[%s12453_s1 + $0x140] sm:$0xf]  ;;  %vm2704_vm2 = vcmask 1043456  }
 0x144   :  { %v1889_v59 = vor.u32 %v1888_v37, %v1887_v5  ;;  %v1892_v11 = vshll.u32 %v1891_v6, 23 }
 0x146   :  { %v1893_v21 = vor.u32 4788187, %v1892_v11  ;;  %v1896_v48 = vcvt.s32.f32 %v1889_v59  ;;  %v8038_v59 = vld [vmem:[%s12453_s1 + $0x154] sm:$0xf0]  ;;  %v1774_v11 = vsel %vm1767_vm6, %v1770_v3, %v1773_v40  ;;  %vm9630_vm6 = vmor %vm28_vm15, %vm2622_vm8  ;;  %v6592_v3 = vld [vmem:[%s12453_s1 + $0x110] sm:$0xf] }
 0x147   :  { %v6625_v61 = vor.u32 %v8038_v59, %v6624_v41  ;;  %v1775_v24 = vsel %vm1764_vm14, nan, %v1774_v11  ;;  %vm2605_vm14 = vcmask 261120   ;;  %v8030_v40 = vld [vmem:[%s12453_s1 + $0x114] sm:$0xf0]  ;;  %v6584_v11 = vld [vmem:[%s12453_s1 + $0x100] sm:$0xf] }
 0x148   :  { %v1894_v46 = vand.u32 2147483647, %v1893_v21  ;;  %v8026_v59 = vld [vmem:[%s12453_s1 + $0xf4] sm:$0xf0]  ;;  %vm30_vm15 = vcmask 1044484   ;;  %vm2600_vm8 = vcmask 785408  }
 0x149   :  { %3881 = vmatpush.bf16.msra.mxu2 %v6625_v61  ;;  %v8028_v61 = vld [vmem:[%s12453_s1 + $0x104] sm:$0xf0] }
 0x14a   :  { %v1897_v62 = vmul.f32 %v1896_v48, %v1894_v46  ;;  %v6617_v48 = vor.u32 %v8036_v16, %v6616_v42  ;;  %v6585_v16 = vor.u32 %v8028_v61, %v6584_v11  ;;  %v63_v61 = vld [vmem:[%s12452_s0] sm:$0xff] }
 0x14c   :  { %v1898_v33 = vxor.u32 2147483648, %v1897_v62 }
 0x14d   :  { %3882 = vmatpush.bf16.msra.mxu2 %v6617_v48  ;;  %v8008_v48 = vld [vmem:[%s12453_s1 + $0x64] sm:$0xf0] }
 0x14e   :  { %v1899_v7 = vsel %vm1778_vm1, %v1898_v33, %v1897_v62  ;;  %vm1919_vm1 = vweird.f32 %v9274_v60 }
 0x14f   :  { %v1902_v39 = vsel %vm9545_vm5, %v9274_v60, %v1899_v7  ;;  %vm2595_vm5 = vcmask 523264  }
 0x150   :  { %v1904_v32 = vmul.f32 %v1902_v39, %v1902_v39 }
 0x151   :  { %3883 = vmatpush.bf16.msra.mxu2 %v6609_v10 }
 0x152   :  { %v1905_v57 = vmul.f32 -0.001358992, %v1904_v32  ;;  %v1912_v18 = vmul.f32 -0.00019511016, %v1904_v32 }
 0x154   :  { %v1906_v58 = vadd.f32 0.041655596, %v1905_v57  ;;  %v1913_v43 = vadd.f32 0.008332121, %v1912_v18  ;;  %v7583_v18 = vld [vmem:[%s12455_s2 + $0x348] sm:$0xf0] }
 0x155   :  { %3884 = vmatpush.bf16.msra.mxu2 %v6601_v19  ;;  %v6704_v19 = vld [vmem:[%s12453_s1 + $0x1f0] sm:$0xf] }
 0x156   :  { %v1907_v26 = vmul.f32 %v1906_v58, %v1904_v32  ;;  %v1914_v29 = vmul.f32 %v1913_v43, %v1904_v32 }
 0x158   :  { %v1908_v2 = vadd.f32 -0.4999988, %v1907_v26  ;;  %v1915_v9 = vadd.f32 -0.16666654, %v1914_v29  ;;  %v2720_v26 = vld [vmem:[#allocation2 + $0x20] sm:$0x1] }
 0x15a   :  { %v1909_v35 = vmul.f32 %v1908_v2, %v1904_v32  ;;  %v1916_v34 = vmul.f32 %v1915_v9, %v1904_v32 }
 0x15c   :  { %v1910_v5 = vadd.f32 1.0, %v1909_v35  ;;  %v1917_v49 = vadd.f32 1.0, %v1916_v34 }
 0x15e   :  { %v1918_v37 = vmul.f32 %v1917_v49, %v1902_v39  ;;  %v1927_v6 = vxor.u32 2147483648, %v1910_v5  ;;  %v6512_v49 = vld [vmem:[%s12453_s1 + $0x70] sm:$0xf] }
 0x160   :  { %v1924_v15 = vxor.u32 2147483648, %v1918_v37  ;;  %v1928_v27 = vsel %vm1926_vm9, %v1927_v6, %v1918_v37  ;;  %v2544_v21 = vsel %vm2542_vm10, %v1927_v6, %v1918_v37  ;;  %vm9635_vm9 = vmand %vm2704_vm2, %vm46_vm3  ;;  %v8010_v37 = vld [vmem:[%s12453_s1 + $0x74] sm:$0xf0]  ;;  %v6576_v6 = vld [vmem:[%s12453_s1 + $0xf0] sm:$0xf] }
 0x161   :  { %v6513_v41 = vor.u32 %v8010_v37, %v6512_v49  ;;  %v6577_v42 = vor.u32 %v8026_v59, %v6576_v6  ;;  %vm31_vm3 = vsmask.f32 4352  ;;  %vm48_vm10 = vsmask.f32 7954  ;;  %v34_v49 = vld [vmem:[#allocation2] sm:$0x11] }
 0x162   :  { %v1925_v46 = vsel %vm1923_vm11, %v1910_v5, %v1924_v15  ;;  %v2541_v55 = vsel %vm2539_vm12, %v1910_v5, %v1924_v15  ;;  %v6593_v5 = vor.u32 %v8030_v40, %v6592_v3  ;;  %v8373_v15 = vpop.permute.xlu0 %8372  ;;  %vm9696_vm11 = vmand %vm30_vm15, %vm48_vm10  ;;  %v9758_v40 = vld [vmem:[%s12452_s0 + $0x28] sm:$0xff]  ;;  %v51_v37 = vld [vmem:[#allocation2 + $0x18] sm:$0x11] }
 0x163   :  { %v1929_v60 = vsel %vm1922_vm7, %v1925_v46, %v1928_v27  ;;  %v2545_v28 = vsel %vm2538_vm13, %v2541_v55, %v2544_v21  ;;  %3841 = vmatpush.bf16.msra.mxu0 %v6513_v41  ;;  %v8383_v27 = vpop.permute.xlu1 %8382  ;;  %3860 = vmatpush.bf16.msra.mxu1 %v6577_v42  ;;  %v6504_v21 = vld [vmem:[%s12453_s1 + $0x60] sm:$0xf]  ;;  %v8024_v46 = vld [vmem:[%s12453_s1 + $0xe4] sm:$0xf0]  ;;  %vm9682_vm7 = vmand %vm30_vm15, %vm31_vm3  ;;  %v8375_v10 = vunpack.i.h.bf16 %v8373_v15  ;;  %v8374_v38 = vunpack.i.l.bf16 %v8373_v15 }
 0x164   :  { %v1930_v51 = vsel %vm1919_vm1, nan, %v1929_v60  ;;  %v9602_v1 = vsel %vm1919_vm1, nan, %v2545_v28  ;;  %3885 = vmatpush.bf16.msra.mxu2 %v6593_v5  ;;  %v6569_v20 = vor.u32 %v8024_v46, %v6568_v63  ;;  %v6896_v28 = vld [vmem:[%s12453_s1 + $0x370] sm:$0xf]  ;;  %vm9729_vm12 = vmor %vm9682_vm7, %vm9539_vm0  ;;  %vm2706_vm13 = vcmask 1047556   ;;  %v67_v46 = vld [vmem:[%s12452_s0 + $0x20] sm:$0xff] }
 0x165   :  { %v8396_v62 = vpack.i.bf16 %v1930_v51, %v1775_v24  ;;  %v6505_v24 = vor.u32 %v8008_v48, %v6504_v21  ;;  %v8106_v51 = vld [vmem:[%s12453_s1 + $0x374] sm:$0xf0]  ;;  %vm50_vm1 = vmor %vm9696_vm11, %vm9556_vm4  ;;  %v65_v6 = vld [vmem:[%s12452_s0 + $0x10] sm:$0xff]  ;;  %v35_v59 = vsel %vm9729_vm12, 0, %v34_v49 }
 0x166   :  { %v6897_v23 = vor.u32 %v8106_v51, %v6896_v28  ;;  %v52_v11 = vsel %vm50_vm1, 0, %v51_v37  ;;  %v40_v15 = vld [vmem:[#allocation2 + $0x24] sm:$0x11]  ;;  %36 = vst [vmem:[#allocation2] sm:$0x11] %v35_v59  ;;  %vm9800_vm2 = vmand %vm2706_vm13, %vm48_vm10 }
 0x167   :  { %8397 = vrot.lane.b32.xlu2 %v8396_v62, %s8419_s17  ;;  %3842 = vmatpush.bf16.msra.mxu0 %v6505_v24  ;;  %v41_v63 = vsel %vm9729_vm12, 0, %v40_v15  ;;  %v57_v24 = vld [vmem:[#allocation2 + $0x3c] sm:$0x11]  ;;  %53 = vst [vmem:[#allocation2 + $0x18] sm:$0x11] %v52_v11  ;;  %vm9817_vm4 = vmor %vm9800_vm2, %vm9635_vm9 }
 0x168   :  { %3886 = vmatpush.bf16.msra.mxu2 %v6585_v16  ;;  %3861 = vmatpush.bf16.msra.mxu1 %v6569_v20  ;;  %v8020_v28 = vld [vmem:[%s12453_s1 + $0xc4] sm:$0xf0]  ;;  %42 = vst [vmem:[#allocation2 + $0x24] sm:$0x11] %v41_v63  ;;  %v6472_v63 = vld [vmem:[%s12453_s1 + $0x20] sm:$0xf] }
 0x169   :  { %v8100_v15 = vld [vmem:[%s12453_s1 + $0x344] sm:$0xf0] }
 0x16c   :  { %3955 = vmatpush.bf16.msrb.mxu2 %v6897_v23 }
 0x16f   :  { %v2723_v11 = vld [vmem:[#allocation2 + $0x24] sm:$0xff] }
 0x171   :  { %v8393_v17 = vpop.permute.xlu2 %8392 }
 0x172   :  { %v8395_v33 = vunpack.i.h.bf16 %v8393_v17  ;;  %v8394_v53 = vunpack.i.l.bf16 %v8393_v17  ;;  %v8058_v17 = vld [vmem:[%s12453_s1 + $0x1f4] sm:$0xf0] }
 0x174   :  { %v2607_v50 = vsel %vm2605_vm14, %v8395_v33, %v9439_v45  ;;  %v2606_v7 = vsel %vm2605_vm14, %v8394_v53, %v9339_v22  ;;  %v6496_v33 = vld [vmem:[%s12453_s1 + $0x50] sm:$0xf]  ;;  %v8006_v53 = vld [vmem:[%s12453_s1 + $0x54] sm:$0xf0] }
 0x175   :  { %v2611_v39 = vsel %vm2595_vm5, %v2607_v50, %v9618_v8  ;;  %v2610_v0 = vsel %vm2595_vm5, %v2606_v7, %v9625_v52  ;;  %v6560_v50 = vld [vmem:[%s12453_s1 + $0xd0] sm:$0xf]  ;;  %v6705_v7 = vor.u32 %v8058_v17, %v6704_v19 }
 0x176   :  { %v2617_v45 = vpack.c.bf16 %v2611_v39, %v2611_v39  ;;  %v2615_v32 = vpack.c.bf16 %v2610_v0, %v2610_v0  ;;  %v6497_v39 = vor.u32 %v8006_v53, %v6496_v33  ;;  %v8022_v0 = vld [vmem:[%s12453_s1 + $0xd4] sm:$0xf0] }
 0x177   :  { %3898 = vmatpush.bf16.msra.mxu3 %v6705_v7 }
 0x178   :  { %v2649_v22 = vshrl.u32 %v2617_v45, 16  ;;  %v2652_v13 = vshll.u32 %v2617_v45, 16  ;;  %v2632_v14 = vshrl.u32 %v2615_v32, 16  ;;  %v2635_v57 = vshll.u32 %v2615_v32, 16  ;;  %v6888_v45 = vld [vmem:[%s12453_s1 + $0x360] sm:$0xf]  ;;  %3843 = vmatpush.bf16.msra.mxu0 %v6497_v39 }
 0x179   :  { %v8104_v32 = vld [vmem:[%s12453_s1 + $0x364] sm:$0xf0] }
 0x17a   :  { %v2651_v58 = vrot.slane %v2649_v22, 7  ;;  %v2634_v43 = vrot.slane %v2632_v14, 7  ;;  %v6889_v14 = vor.u32 %v8104_v32, %v6888_v45  ;;  %v6480_v45 = vld [vmem:[%s12453_s1 + $0x30] sm:$0xf]  ;;  %v8269_v22 = vld [vmem:[%s12455_s2 + $0x3c4] sm:$0xf] }
 0x17c   :  { %v2654_v29 = vor.u32 %v2652_v13, %v2651_v58  ;;  %v2657_v2 = vrot.slane %v2651_v58, 4  ;;  %v2637_v9 = vor.u32 %v2635_v57, %v2634_v43  ;;  %v2647_v56 = vrot.slane %v2634_v43, 4  ;;  %3956 = vmatpush.bf16.msrb.mxu2 %v6889_v14 }
 0x17d   :  { %v6561_v13 = vor.u32 %v8022_v0, %v6560_v50  ;;  %v2597_v57 = vsel %vm2595_vm5, %v9618_v8, %v8375_v10  ;;  %v2596_v58 = vsel %vm2595_vm5, %v9625_v52, %v8374_v38  ;;  %v8385_v43 = vunpack.i.h.bf16 %v8383_v27  ;;  %v6488_v8 = vld [vmem:[%s12453_s1 + $0x40] sm:$0xf]  ;;  %v8004_v52 = vld [vmem:[%s12453_s1 + $0x44] sm:$0xf0]  ;;  %v6880_v50 = vld [vmem:[%s12453_s1 + $0x350] sm:$0xf] }
 0x17e   :  { %v2721_v30 = vsel %vm9539_vm0, %v2657_v2, %v2720_v26  ;;  %v2655_v35 = vsel %vm9630_vm6, %v2647_v56, %v2654_v29  ;;  %v2713_v34 = vsel %vm9635_vm9, %v2637_v9, %v2712_v31  ;;  %v8384_v31 = vunpack.i.l.bf16 %v8383_v27  ;;  %v8378_v26 = vpop.permute.xlu0 %8377  ;;  %v8388_v29 = vpop.permute.xlu1 %8387  ;;  %v6696_v2 = vld [vmem:[%s12453_s1 + $0x1e0] sm:$0xf]  ;;  %v69_v27 = vld [vmem:[%s12452_s0 + $0x30] sm:$0xff]  ;;  %v8102_v0 = vld [vmem:[%s12453_s1 + $0x354] sm:$0xf0] }
 0x17f   :  { %2722 = vst [vmem:[#allocation2 + $0x20] sm:$0x1] %v2721_v30  ;;  %3862 = vmatpush.bf16.msra.mxu1 %v6561_v13  ;;  %v8380_v9 = vunpack.i.h.bf16 %v8378_v26  ;;  %v8379_v56 = vunpack.i.l.bf16 %v8378_v26  ;;  %v8390_v30 = vunpack.i.h.bf16 %v8388_v29  ;;  %v2599_v3 = vsel %vm2595_vm5, %v9271_v25, %v8385_v43  ;;  %v6552_v25 = vld [vmem:[%s12453_s1 + $0xc0] sm:$0xf]  ;;  %v8002_v43 = vld [vmem:[%s12453_s1 + $0x34] sm:$0xf0] }
 0x180   :  { %2714 = vst [vmem:[#allocation2 + $0x8] sm:$0xf] %v2713_v34  ;;  %v8056_v34 = vld [vmem:[%s12453_s1 + $0x1e4] sm:$0xf0]  ;;  %v2598_v5 = vsel %vm2595_vm5, %v9758_v40, %v8384_v31  ;;  %v6489_v41 = vor.u32 %v8004_v52, %v6488_v8  ;;  %v6553_v53 = vor.u32 %v8020_v28, %v6552_v25  ;;  %v6872_v25 = vld [vmem:[%s12453_s1 + $0x340] sm:$0xf] }
 0x181   :  { %2716 = vst [vmem:[#allocation2 + $0x14] sm:$0xf] %v2655_v35  ;;  %v8389_v35 = vunpack.i.l.bf16 %v8388_v29  ;;  %v2601_v42 = vsel %vm2600_vm8, %v2596_v58, %v8379_v56  ;;  %v2602_v16 = vsel %vm2600_vm8, %v2597_v57, %v8380_v9  ;;  %v2604_v36 = vsel %vm2600_vm8, %v2599_v3, %v8390_v30  ;;  %v6544_v9 = vld [vmem:[%s12453_s1 + $0xb0] sm:$0xf]  ;;  %v8018_v56 = vld [vmem:[%s12453_s1 + $0xb4] sm:$0xf0] }
 0x182   :  { %v2614_v21 = vpack.c.bf16 %v2601_v42, %v63_v61  ;;  %v2616_v48 = vpack.c.bf16 %v2602_v16, %v65_v6  ;;  %3844 = vmatpush.bf16.msra.mxu0 %v6489_v41  ;;  %v6697_v51 = vor.u32 %v8056_v34, %v6696_v2  ;;  %v2620_v19 = vpack.c.bf16 %v2604_v36, %v69_v27  ;;  %v2709_v30 = vld [vmem:[#allocation2] sm:$0xff]  ;;  %v6688_v3 = vld [vmem:[%s12453_s1 + $0x1d0] sm:$0xf]  ;;  %v8054_v41 = vld [vmem:[%s12453_s1 + $0x1d4] sm:$0xf0] }
 0x183   :  { %3863 = vmatpush.bf16.msra.mxu1 %v6553_v53  ;;  %v6881_v58 = vor.u32 %v8102_v0, %v6880_v50  ;;  %v6481_v34 = vor.u32 %v8002_v43, %v6480_v45  ;;  %v6545_v6 = vor.u32 %v8018_v56, %v6544_v9  ;;  %v6689_v16 = vor.u32 %v8054_v41, %v6688_v3  ;;  %v6680_v28 = vld [vmem:[%s12453_s1 + $0x1c0] sm:$0xf]  ;;  %v8052_v10 = vld [vmem:[%s12453_s1 + $0x1c4] sm:$0xf0]  ;;  %v8014_v0 = vld [vmem:[%s12453_s1 + $0x94] sm:$0xf0] }
 0x184   :  { %v2625_v38 = vshrl.u32 %v2614_v21, 16  ;;  %v2628_v62 = vshll.u32 %v2614_v21, 16  ;;  %v2640_v23 = vshrl.u32 %v2616_v48, 16  ;;  %v2643_v54 = vshll.u32 %v2616_v48, 16  ;;  %3899 = vmatpush.bf16.msra.mxu3 %v6697_v51  ;;  %v7996_v9 = vld [vmem:[%s12453_s1 + $0x4] sm:$0xf0] }
 0x185   :  { %v2674_v14 = vshrl.u32 %v2620_v19, 16  ;;  %v2677_v57 = vshll.u32 %v2620_v19, 16  ;;  %3957 = vmatpush.bf16.msrb.mxu2 %v6881_v58  ;;  %v6873_v48 = vor.u32 %v8100_v15, %v6872_v25  ;;  %v8098_v19 = vld [vmem:[%s12453_s1 + $0x334] sm:$0xf0]  ;;  %v6856_v58 = vld [vmem:[%s12453_s1 + $0x320] sm:$0xf] }
 0x186   :  { %v2627_v7 = vrot.slane %v2625_v38, 7  ;;  %v2642_v39 = vrot.slane %v2640_v23, 7  ;;  %3845 = vmatpush.bf16.msra.mxu0 %v6481_v34  ;;  %v6864_v38 = vld [vmem:[%s12453_s1 + $0x330] sm:$0xf] }
 0x187   :  { %v6440_v55 = vld [vmem:[#allocation2 + $0x8] sm:$0xf]  ;;  %v2676_v52 = vrot.slane %v2674_v14, 7  ;;  %3864 = vmatpush.bf16.msra.mxu1 %v6545_v6  ;;  %v6865_v50 = vor.u32 %v8098_v19, %v6864_v38  ;;  %v6672_v14 = vld [vmem:[%s12453_s1 + $0x1b0] sm:$0xf] }
 0x188   :  { %v8141_v44 = vld [vmem:[#allocation2 + $0x10] sm:$0xf0]  ;;  %v2630_v31 = vor.u32 %v2628_v62, %v2627_v7  ;;  %v2638_v26 = vrot.slane %v2627_v7, 4  ;;  %v2645_v29 = vor.u32 %v2643_v54, %v2642_v39  ;;  %v2656_v2 = vrot.slane %v2642_v39, 4  ;;  %3900 = vmatpush.bf16.msra.mxu3 %v6689_v16  ;;  %v7998_v7 = vld [vmem:[%s12453_s1 + $0x14] sm:$0xf0] }
 0x189   :  { %v9686_v60 = vor.u32 %v8141_v44, %v6440_v55  ;;  %v2603_v55 = vsel %vm2600_vm8, %v2598_v5, %v8389_v35  ;;  %v58_v44 = vsel %vm50_vm1, 0, %v57_v24  ;;  %v2717_v5 = vld [vmem:[#allocation2 + $0x18] sm:$0x11]  ;;  %v2679_v61 = vor.u32 %v2677_v57, %v2676_v52  ;;  %3958 = vmatpush.bf16.msrb.mxu2 %v6873_v48  ;;  %v6528_v39 = vld [vmem:[%s12453_s1 + $0x90] sm:$0xf] }
 0x18a   :  { %v2618_v20 = vpack.c.bf16 %v2603_v55, %v67_v46  ;;  %59 = vst [vmem:[#allocation2 + $0x3c] sm:$0x11] %v58_v44  ;;  %v9835_v49 = vsel %vm9630_vm6, %v2638_v26, %v2645_v29  ;;  %v9839_v37 = vsel %vm9817_vm4, %v2630_v31, %v2709_v30  ;;  %v2718_v59 = vsel %vm9729_vm12, %v2656_v2, %v2717_v5  ;;  %v8000_v46 = vld [vmem:[%s12453_s1 + $0x24] sm:$0xf0]  ;;  %v6536_v55 = vld [vmem:[%s12453_s1 + $0xa0] sm:$0xf] }
 0x18b   :  { %3887 = vmatmul.bf16.vlgmr.msra.gmra.mxu2 %v9686_v60  ;;  %2711 = vst [vmem:[#allocation2] sm:$0xff] %v9839_v37  ;;  %v2690_v42 = vrot.slane %v2676_v52, 4  ;;  %v6473_v36 = vor.u32 %v8000_v46, %v6472_v63  ;;  %v3014_v62 = vrot.slane %v9835_v49, 5  ;;  %v6681_v54 = vor.u32 %v8052_v10, %v6680_v28  ;;  %v8050_v57 = vld [vmem:[%s12453_s1 + $0x1b4] sm:$0xf0] }
 0x18c   :  { %v2659_v17 = vshrl.u32 %v2618_v20, 16  ;;  %v2662_v33 = vshll.u32 %v2618_v20, 16  ;;  %2715 = vst [vmem:[#allocation2 + $0xc] sm:$0xff] %v9835_v49  ;;  %v8016_v20 = vld [vmem:[%s12453_s1 + $0xa4] sm:$0xf0]  ;;  %v6673_v26 = vor.u32 %v8050_v57, %v6672_v14 }
 0x18d   :  { %2719 = vst [vmem:[#allocation2 + $0x18] sm:$0x11] %v2718_v59  ;;  %v6537_v51 = vor.u32 %v8016_v20, %v6536_v55  ;;  %3846 = vmatpush.bf16.msra.mxu0 %v6473_v36  ;;  %3901 = vmatpush.bf16.msra.mxu3 %v6681_v54  ;;  %v8096_v29 = vld [vmem:[%s12453_s1 + $0x324] sm:$0xf0]  ;;  %v6456_v2 = vld [vmem:[%s12453_s1] sm:$0xf] }
 0x18e   :  { %v2661_v13 = vrot.slane %v2659_v17, 7  ;;  %v6464_v17 = vld [vmem:[%s12453_s1 + $0x10] sm:$0xf]  ;;  %3959 = vmatpush.bf16.msrb.mxu2 %v6865_v50  ;;  %v6857_v30 = vor.u32 %v8096_v29, %v6856_v58  ;;  %v8012_v52 = vld [vmem:[%s12453_s1 + $0x84] sm:$0xf0] }
 0x18f   :  { %3865 = vmatpush.bf16.msra.mxu1 %v6537_v51  ;;  %v6465_v45 = vor.u32 %v7998_v7, %v6464_v17  ;;  %v8074_v63 = vld [vmem:[%s12453_s1 + $0x274] sm:$0xf0]  ;;  %v2734_v46 = vld [vmem:[#allocation2 + $0x44] sm:$0x1]  ;;  %v6848_v28 = vld [vmem:[%s12453_s1 + $0x310] sm:$0xf] }
 0x190   :  { %v2664_v35 = vor.u32 %v2662_v33, %v2661_v13  ;;  %v2672_v8 = vrot.slane %v2661_v13, 4  ;;  %v6529_v13 = vor.u32 %v8014_v0, %v6528_v39  ;;  %v8094_v51 = vld [vmem:[%s12453_s1 + $0x314] sm:$0xf0]  ;;  %v6832_v10 = vld [vmem:[%s12453_s1 + $0x2f0] sm:$0xf] }
 0x191   :  { %v2731_v27 = vld [vmem:[#allocation2 + $0x3c] sm:$0x11]  ;;  %3847 = vmatpush.bf16.msra.mxu0 %v6465_v45  ;;  %3902 = vmatpush.bf16.msra.mxu3 %v6673_v26  ;;  %v6849_v54 = vor.u32 %v8094_v51, %v6848_v28  ;;  %v8090_v19 = vld [vmem:[%s12453_s1 + $0x2f4] sm:$0xf0]  ;;  %v6656_v17 = vld [vmem:[%s12453_s1 + $0x190] sm:$0xf] }
 0x192   :  { %v9856_v21 = vsel %vm9817_vm4, %v2664_v35, %v2723_v11  ;;  %v2732_v24 = vsel %vm9729_vm12, %v2690_v42, %v2731_v27  ;;  %v9871_v44 = vsel %vm9630_vm6, %v2672_v8, %v2679_v61  ;;  %v6457_v35 = vor.u32 %v7996_v9, %v6456_v2  ;;  %v6520_v8 = vld [vmem:[%s12453_s1 + $0x80] sm:$0xf]  ;;  %v8139_v25 = vld [vmem:[#allocation2 + $0x4] sm:$0xf]  ;;  %v8048_v61 = vld [vmem:[%s12453_s1 + $0x1a4] sm:$0xf0]  ;;  %3960 = vmatpush.bf16.msrb.mxu2 %v6857_v30 }
 0x193   :  { %2725 = vst [vmem:[#allocation2 + $0x24] sm:$0xff] %v9856_v21  ;;  %v6432_v34 = vld [vmem:[#allocation2] sm:$0xf]  ;;  %3866 = vmatpush.bf16.msra.mxu1 %v6529_v13  ;;  %v6521_v6 = vor.u32 %v8012_v52, %v6520_v8  ;;  %v8140_v41 = vld [vmem:[#allocation2 + $0x8] sm:$0xf0]  ;;  %v10010_v8 = vrot.slane %v3014_v62, 4 }
 0x194   :  { %2729 = vst [vmem:[#allocation2 + $0x30] sm:$0xff] %v9871_v44  ;;  %v6434_v59 = vld [vmem:[#allocation2 + $0xc] sm:$0xf0]  ;;  %v6664_v11 = vld [vmem:[%s12453_s1 + $0x1a0] sm:$0xf] }
 0x195   :  { %2733 = vst [vmem:[#allocation2 + $0x3c] sm:$0x11] %v2732_v24  ;;  %v6768_v42 = vld [vmem:[%s12453_s1 + $0x270] sm:$0xf]  ;;  %v2726_v24 = vld [vmem:[#allocation2 + $0x2c] sm:$0xf]  ;;  %3848 = vmatpush.bf16.msra.mxu0 %v6457_v35  ;;  %v9951_v55 = vor.u32 %v8139_v25, %v6434_v59  ;;  %v6665_v36 = vor.u32 %v8048_v61, %v6664_v11 }
 0x196   :  { %v6769_v20 = vor.u32 %v8074_v63, %v6768_v42  ;;  %v6760_v50 = vld [vmem:[%s12453_s1 + $0x260] sm:$0xf]  ;;  %v8072_v7 = vld [vmem:[%s12453_s1 + $0x264] sm:$0xf0]  ;;  %3961 = vmatpush.bf16.msrb.mxu2 %v6849_v54  ;;  %v10005_v47 = vld [vmem:[#allocation2 + $0x18] sm:$0x11] }
 0x197   :  { %3867 = vmatpush.bf16.msra.mxu1 %v6521_v6  ;;  %3903 = vmatpush.bf16.msra.mxu3 %v6665_v36  ;;  %v6840_v14 = vld [vmem:[%s12453_s1 + $0x300] sm:$0xf]  ;;  %v8092_v57 = vld [vmem:[%s12453_s1 + $0x304] sm:$0xf0]  ;;  %v8025_v6 = vld [vmem:[%s12453_s1 + $0xf4] sm:$0xf] }
 0x198   :  { %v6824_v26 = vld [vmem:[%s12453_s1 + $0x2e0] sm:$0xf]  ;;  %v8088_v29 = vld [vmem:[%s12453_s1 + $0x2e4] sm:$0xf0]  ;;  %v6816_v59 = vld [vmem:[%s12453_s1 + $0x2d0] sm:$0xf] }
 0x199   :  { %3917 = vmatpush.bf16.msrb.mxu0 %v6769_v20  ;;  %v6648_v30 = vld [vmem:[%s12453_s1 + $0x180] sm:$0xf]  ;;  %v8044_v35 = vld [vmem:[%s12453_s1 + $0x184] sm:$0xf0]  ;;  %v8086_v11 = vld [vmem:[%s12453_s1 + $0x2d4] sm:$0xf0] }
 0x19a   :  { %3868 = vmatmul.bf16.vlgmr.msra.gmra.mxu1 %v9951_v55  ;;  %v6649_v52 = vor.u32 %v8044_v35, %v6648_v30  ;;  %v6817_v61 = vor.u32 %v8086_v11, %v6816_v59  ;;  %v2898_v42 = vshrl.u32 %v9839_v37, 16  ;;  %v2925_v63 = vshrl.u32 %v9835_v49, 16  ;;  %v6960_v28 = vld [vmem:[%s12453_s1 + $0x3f0] sm:$0xf]  ;;  %v8122_v51 = vld [vmem:[%s12453_s1 + $0x3f4] sm:$0xf0] }
 0x19b   :  { %v6736_v30 = vld [vmem:[%s12453_s1 + $0x230] sm:$0xf]  ;;  %v2946_v35 = vshrl.u32 %v9856_v21, 16  ;;  %v8021_v59 = vld [vmem:[%s12453_s1 + $0xd4] sm:$0xf] }
 0x19c   :  { %v2900_v36 = vrot.slane %v2898_v42, 4  ;;  %v6562_v11 = vld [vmem:[%s12453_s1 + $0xd8] sm:$0xf0] }
 0x1c1   :  { %v8398_v23 = vpop.permute.xlu2 %8397 }
 0x1c2   :  { %v8400_v33 = vunpack.i.h.bf16 %v8398_v23  ;;  %v8399_v53 = vunpack.i.l.bf16 %v8398_v23 }
 0x1c4   :  { %v2609_v43 = vsel %vm2605_vm14, %v8400_v33, %v9602_v1  ;;  %v2608_v31 = vsel %vm2605_vm14, %v8399_v53, %v9535_v4  ;;  %v8408_v1 = vld [vmem:[%s12452_s0 + $0x38] sm:$0xff]  ;;  %v6833_v33 = vor.u32 %v8090_v19, %v6832_v10  ;;  %vm3010_vm14 = vcmask 1046532  }
 0x1c5   :  { %v2613_v4 = vsel %vm2595_vm5, %v2609_v43, %v8408_v1  ;;  %v2612_v56 = vsel %vm2595_vm5, %v2608_v31, %v9758_v40  ;;  %v9937_v40 = vor.u32 %v8140_v41, %v6432_v34  ;;  %v8046_v53 = vld [vmem:[%s12453_s1 + $0x194] sm:$0xf0]  ;;  %v6761_v43 = vor.u32 %v8072_v7, %v6760_v50  ;;  %v6752_v34 = vld [vmem:[%s12453_s1 + $0x250] sm:$0xf]  ;;  %v6578_v41 = vld [vmem:[%s12453_s1 + $0xf8] sm:$0xf0] }
 0x1c6   :  { %v2621_v3 = vpack.c.bf16 %v2613_v4, %v2613_v4  ;;  %v2619_v5 = vpack.c.bf16 %v2612_v56, %v2612_v56  ;;  %v6657_v58 = vor.u32 %v8046_v53, %v6656_v17  ;;  %v6841_v31 = vor.u32 %v8092_v57, %v6840_v14  ;;  %3936 = vmatpush.bf16.msrb.mxu1 %v6833_v33  ;;  %v9997_v56 = vld [vmem:[#allocation2] sm:$0xee]  ;;  %v6570_v50 = vld [vmem:[%s12453_s1 + $0xe8] sm:$0xf0] }
 0x1c7   :  { %3849 = vmatmul.bf16.vlgmr.msra.gmra.mxu0 %v9937_v40  ;;  %v6825_v4 = vor.u32 %v8088_v29, %v6824_v26  ;;  %v6426_v12 = vrot.slane %v9997_v56, 9  ;;  %v6581_v25 = vor.u32 %v8025_v6, %v6578_v41  ;;  %vm2894_vm5 = vsmask.f32 3328  ;;  %v8023_v17 = vld [vmem:[%s12453_s1 + $0xe4] sm:$0xf] }
 0x1c8   :  { %v2683_v16 = vshrl.u32 %v2621_v3, 16  ;;  %v2686_v15 = vshll.u32 %v2621_v3, 16  ;;  %v2666_v27 = vshrl.u32 %v2619_v5, 16  ;;  %v2669_v48 = vshll.u32 %v2619_v5, 16  ;;  %3904 = vmatpush.bf16.msra.mxu3 %v6657_v58  ;;  %3918 = vmatpush.bf16.msrb.mxu0 %v6761_v43  ;;  %v8070_v3 = vld [vmem:[%s12453_s1 + $0x254] sm:$0xf0] }
 0x1c9   :  { %3962 = vmatpush.bf16.msrb.mxu2 %v6841_v31  ;;  %v6753_v5 = vor.u32 %v8070_v3, %v6752_v34  ;;  %v6961_v19 = vor.u32 %v8122_v51, %v6960_v28  ;;  %v6808_v7 = vld [vmem:[%s12453_s1 + $0x2c0] sm:$0xf]  ;;  %v6444_v14 = vld [vmem:[#allocation2 + $0x24] sm:$0xf]  ;;  %v8143_v31 = vld [vmem:[#allocation2 + $0x2c] sm:$0xf0] }
 0x1ca   :  { %v2685_v38 = vrot.slane %v2683_v16, 7  ;;  %v2668_v23 = vrot.slane %v2666_v27, 7  ;;  %3937 = vmatpush.bf16.msrb.mxu1 %v6825_v4  ;;  %v2901_v16 = vshll.u32 %v9839_v37, 16  ;;  %v3021_v27 = vrot.slane %v10005_v47, 5  ;;  %v8142_v26 = vld [vmem:[#allocation2 + $0x28] sm:$0xf] }
 0x1cb   :  { %v3028_v29 = vrot.slane %v9871_v44, 5  ;;  %v6446_v4 = vld [vmem:[#allocation2 + $0x30] sm:$0xf0]  ;;  %v8066_v3 = vld [vmem:[%s12453_s1 + $0x234] sm:$0xf0] }
 0x1cc   :  { %v2688_v39 = vor.u32 %v2686_v15, %v2685_v38  ;;  %v2691_v0 = vrot.slane %v2685_v38, 4  ;;  %v2671_v45 = vor.u32 %v2669_v48, %v2668_v23  ;;  %v2681_v13 = vrot.slane %v2668_v23, 4  ;;  %3905 = vmatpush.bf16.msra.mxu3 %v6649_v52  ;;  %3919 = vmatpush.bf16.msrb.mxu0 %v6753_v5  ;;  %v6744_v15 = vld [vmem:[%s12453_s1 + $0x240] sm:$0xf]  ;;  %v8120_v6 = vld [vmem:[%s12453_s1 + $0x3e4] sm:$0xf0] }
 0x1cd   :  { %4031 = vmatpush.bf16.msra.mxu2 %v6581_v25  ;;  %v2907_v48 = vshll.u32 %v9835_v49, 16  ;;  %v2903_v20 = vrot.slane %v2901_v16, 5  ;;  %v2927_v23 = vrot.slane %v2925_v63, 4  ;;  %v10086_v34 = vor.u32 %v8142_v26, %v6446_v4  ;;  %v6952_v5 = vld [vmem:[%s12453_s1 + $0x3e0] sm:$0xf] }
 0x1ce   :  { %v2735_v2 = vsel %vm9539_vm0, %v2691_v0, %v2734_v46  ;;  %v2689_v9 = vsel %vm9630_vm6, %v2681_v13, %v2688_v39  ;;  %v2727_v1 = vsel %vm9635_vm9, %v2671_v45, %v2726_v24  ;;  %vm3009_vm0 = vcmask 1042432   ;;  %v8068_v46 = vld [vmem:[%s12453_s1 + $0x244] sm:$0xf0]  ;;  %3938 = vmatpush.bf16.msrb.mxu1 %v6817_v61  ;;  %v6800_v61 = vld [vmem:[%s12453_s1 + $0x2b0] sm:$0xf] }
 0x1cf   :  { %2736 = vst [vmem:[#allocation2 + $0x44] sm:$0x1] %v2735_v2  ;;  %vm2895_vm9 = vsmask.f32 7440  ;;  %v2931_v24 = vshll.u32 %v10005_v47, 16  ;;  %v6745_v37 = vor.u32 %v8068_v46, %v6744_v15  ;;  %v2909_v38 = vrot.slane %v2907_v48, 5  ;;  %vm10071_vm3 = vmor %vm3009_vm0, %vm3010_vm14  ;;  %3873 = vmatmul.bf16.gmra.mxu1 %v10086_v34 }
 0x1d0   :  { %2728 = vst [vmem:[#allocation2 + $0x2c] sm:$0xf] %v2727_v1  ;;  %vm10050_vm15 = vmor %vm2894_vm5, %vm2895_vm9  ;;  %v2904_v53 = vor.u32 %v2903_v20, %v2900_v36  ;;  %3974 = vmatpush.bf16.msrb.mxu3 %v6961_v19  ;;  %v6573_v45 = vor.u32 %v8023_v17, %v6570_v50  ;;  %v8084_v13 = vld [vmem:[%s12453_s1 + $0x2c4] sm:$0xf0]  ;;  %v10075_v1 = vor.u32 %v8143_v31, %v6444_v14  ;;  %v8082_v63 = vld [vmem:[%s12453_s1 + $0x2b4] sm:$0xf0] }
 0x1d1   :  { %2730 = vst [vmem:[#allocation2 + $0x38] sm:$0xf] %v2689_v9  ;;  %v2933_v54 = vrot.slane %v2931_v24, 5  ;;  %3920 = vmatpush.bf16.msrb.mxu0 %v6745_v37  ;;  %v2928_v0 = vor.u32 %v2927_v23, %v2909_v38  ;;  %v6809_v43 = vor.u32 %v8084_v13, %v6808_v7  ;;  %v6737_v25 = vor.u32 %v8066_v3, %v6736_v30  ;;  %v6728_v24 = vld [vmem:[%s12453_s1 + $0x220] sm:$0xf] }
 0x1d2   :  { %v2905_v58 = vrot.slane %v2904_v53, 4  ;;  %4032 = vmatpush.bf16.msra.mxu2 %v6573_v45  ;;  %v6953_v15 = vor.u32 %v8120_v6, %v6952_v5  ;;  %v6565_v48 = vor.u32 %v8021_v59, %v6562_v11  ;;  %v8064_v46 = vld [vmem:[%s12453_s1 + $0x224] sm:$0xf0]  ;;  %v10129_v36 = vsel %vm10071_vm3, %v6426_v12, %v3014_v62  ;;  %v6944_v28 = vld [vmem:[%s12453_s1 + $0x3d0] sm:$0xf] }
 0x1d3   :  { %v2929_v9 = vrot.slane %v2928_v0, 4  ;;  %3939 = vmatpush.bf16.msrb.mxu1 %v6809_v43  ;;  %v6801_v20 = vor.u32 %v8082_v63, %v6800_v61  ;;  %v6729_v37 = vor.u32 %v8064_v46, %v6728_v24  ;;  %v8118_v51 = vld [vmem:[%s12453_s1 + $0x3d4] sm:$0xf0]  ;;  %v8019_v49 = vld [vmem:[%s12453_s1 + $0xc4] sm:$0xf]  ;;  %v10145_v62 = vsel %vm10071_vm3, %v10010_v8, %v3021_v27 }
 0x1d4   :  { %v10084_v52 = vsel %vm10050_vm15, %v2905_v58, %v2909_v38  ;;  %3975 = vmatpush.bf16.msrb.mxu3 %v6953_v15  ;;  %v6945_v12 = vor.u32 %v8118_v51, %v6944_v28  ;;  %v6554_v38 = vld [vmem:[%s12453_s1 + $0xc8] sm:$0xf0]  ;;  %v6792_v23 = vld [vmem:[%s12453_s1 + $0x2a0] sm:$0xf]  ;;  %v8080_v47 = vld [vmem:[%s12453_s1 + $0x2a4] sm:$0xf0]  ;;  %v3095_v0 = vunpack.c.l.b16 %v10145_v62 }
 0x1d5   :  { %v10099_v41 = vsel %vm10050_vm15, %v2929_v9, %v2933_v54  ;;  %v3068_v42 = vunpack.c.l.b16 %v10084_v52  ;;  %3921 = vmatpush.bf16.msrb.mxu0 %v6737_v25  ;;  %v6557_v8 = vor.u32 %v8019_v49, %v6554_v38  ;;  %v6793_v27 = vor.u32 %v8080_v47, %v6792_v23  ;;  %v10158_v54 = vld [vmem:[#allocation2 + $0x3c] sm:$0x11]  ;;  %v10160_v19 = vld [vmem:[#allocation2 + $0x24] sm:$0xee]  ;;  %v6720_v53 = vld [vmem:[%s12453_s1 + $0x210] sm:$0xf] }
 0x1d6   :  { %v3071_v16 = vunpack.c.l.b16 %v10099_v41  ;;  %4033 = vmatpush.bf16.msra.mxu2 %v6565_v48  ;;  %v10164_v17 = vrot.slane %v3028_v29, 4  ;;  %v8062_v50 = vld [vmem:[%s12453_s1 + $0x214] sm:$0xf0]  ;;  %v2948_v7 = vrot.slane %v2946_v35, 4  ;;  %v6936_v13 = vld [vmem:[%s12453_s1 + $0x3c0] sm:$0xf]  ;;  %v3072_v4 = vunpack.c.h.b16 %v10099_v41 }
 0x1d7   :  { %v6452_v33 = vld [vmem:[#allocation2 + $0x2c] sm:$0xf]  ;;  %3854 = vmatmul.bf16.gmra.mxu0 %v10075_v1  ;;  %3940 = vmatpush.bf16.msrb.mxu1 %v6801_v20  ;;  %v6721_v45 = vor.u32 %v8062_v50, %v6720_v53  ;;  %v8116_v14 = vld [vmem:[%s12453_s1 + $0x3c4] sm:$0xf0]  ;;  %v8017_v58 = vld [vmem:[%s12453_s1 + $0xb4] sm:$0xf] }
 0x1d8   :  { %v8144_v39 = vld [vmem:[#allocation2 + $0x34] sm:$0xf0]  ;;  %v10147_v56 = vpack.c.b16 %v3071_v16, %v3068_v42  ;;  %3976 = vmatpush.bf16.msrb.mxu3 %v6945_v12  ;;  %v6937_v43 = vor.u32 %v8116_v14, %v6936_v13  ;;  %v6546_v31 = vld [vmem:[%s12453_s1 + $0xb8] sm:$0xf0]  ;;  %v6784_v26 = vld [vmem:[%s12453_s1 + $0x290] sm:$0xf]  ;;  %v3069_v16 = vunpack.c.h.b16 %v10084_v52 }
 0x1d9   :  { %v10066_v57 = vor.u32 %v8144_v39, %v6452_v33  ;;  %v6428_v33 = vrot.slane %v10160_v19, 9  ;;  %v3092_v39 = vunpack.c.l.b16 %v10129_v36  ;;  %3922 = vmatpush.bf16.msrb.mxu0 %v6729_v37  ;;  %v8078_v9 = vld [vmem:[%s12453_s1 + $0x294] sm:$0xf0]  ;;  %v6549_v30 = vor.u32 %v8017_v58, %v6546_v31  ;;  %v6712_v3 = vld [vmem:[%s12453_s1 + $0x200] sm:$0xf] }
 0x1da   :  { %3906 = vmatmul.bf16.vlgmr.msra.gmra.mxu3 %v10147_v56  ;;  %4034 = vmatpush.bf16.msra.mxu2 %v6557_v8  ;;  %v6785_v35 = vor.u32 %v8078_v9, %v6784_v26  ;;  %v8060_v5 = vld [vmem:[%s12453_s1 + $0x204] sm:$0xf0]  ;;  %v6928_v6 = vld [vmem:[%s12453_s1 + $0x3b0] sm:$0xf]  ;;  %v2949_v25 = vshll.u32 %v9856_v21, 16  ;;  %v2955_v59 = vshll.u32 %v9871_v44, 16  ;;  %v10226_v12 = vpack.c.b16 %v3072_v4, %v3069_v16 }
 0x1db   :  { %3892 = vmatmul.bf16.gmra.mxu2 %v10066_v57  ;;  %3941 = vmatpush.bf16.msrb.mxu1 %v6793_v27  ;;  %v2973_v41 = vshrl.u32 %v9871_v44, 16  ;;  %v2979_v11 = vshll.u32 %v10158_v54, 16  ;;  %v8114_v61 = vld [vmem:[%s12453_s1 + $0x3b4] sm:$0xf0]  ;;  %v10211_v42 = vpack.c.b16 %v3095_v0, %v3092_v39  ;;  %v6713_v15 = vor.u32 %v8060_v5, %v6712_v3  ;;  %v8015_v21 = vld [vmem:[%s12453_s1 + $0xa4] sm:$0xf] }
 0x1dc   :  { %v6929_v48 = vor.u32 %v8114_v61, %v6928_v6  ;;  %v6538_v63 = vld [vmem:[%s12453_s1 + $0xa8] sm:$0xf0]  ;;  %v6776_v24 = vld [vmem:[%s12453_s1 + $0x280] sm:$0xf]  ;;  %3977 = vmatpush.bf16.msrb.mxu3 %v6937_v43  ;;  %v2951_v46 = vrot.slane %v2949_v25, 5  ;;  %v2957_v20 = vrot.slane %v2955_v59, 5 }
 0x1dd   :  { %3923 = vmatpush.bf16.msrb.mxu0 %v6721_v45  ;;  %v2975_v52 = vrot.slane %v2973_v41, 4  ;;  %v2981_v37 = vrot.slane %v2979_v11, 5  ;;  %v8076_v28 = vld [vmem:[%s12453_s1 + $0x284] sm:$0xf0]  ;;  %v6541_v51 = vor.u32 %v8015_v21, %v6538_v63  ;;  %v10228_v23 = vld [vmem:[#allocation2 + $0x14] sm:$0xf] }
 0x1de   :  { %4035 = vmatpush.bf16.msra.mxu2 %v6549_v30  ;;  %v6777_v49 = vor.u32 %v8076_v28, %v6776_v24  ;;  %v2883_v38 = vld [vmem:[#allocation2 + $0x8] sm:$0xf]  ;;  %v10230_v47 = vld [vmem:[#allocation2 + $0x20] sm:$0x1]  ;;  %v2952_v8 = vor.u32 %v2951_v46, %v2948_v7  ;;  %v3035_v45 = vrot.slane %v10158_v54, 5  ;;  %v2921_v13 = vshll.u32 %v10228_v23, 16 }
 0x1df   :  { %3942 = vmatpush.bf16.msrb.mxu1 %v6785_v35  ;;  %v2976_v27 = vor.u32 %v2975_v52, %v2957_v20  ;;  %v2912_v53 = vshrl.u32 %v2883_v38, 16  ;;  %v2915_v50 = vshll.u32 %v2883_v38, 16  ;;  %v6920_v39 = vld [vmem:[%s12453_s1 + $0x3a0] sm:$0xf]  ;;  %v8112_v0 = vld [vmem:[%s12453_s1 + $0x3a4] sm:$0xf0] }
 0x1e0   :  { %v2935_v14 = vshrl.u32 %v10228_v23, 16  ;;  %v2941_v7 = vshll.u32 %v10230_v47, 16  ;;  %v7024_v58 = vld [vmem:[%s12453_s1 + $0x470] sm:$0xf]  ;;  %v2953_v43 = vrot.slane %v2952_v8, 4  ;;  %3978 = vmatpush.bf16.msrb.mxu3 %v6929_v48  ;;  %v2923_v4 = vrot.slane %v2921_v13, 5 }
 0x1e1   :  { %3924 = vmatpush.bf16.msrb.mxu0 %v6713_v15  ;;  %v2977_v31 = vrot.slane %v2976_v27, 4  ;;  %v2914_v26 = vrot.slane %v2912_v53, 4  ;;  %v2917_v9 = vrot.slane %v2915_v50, 5  ;;  %v8138_v54 = vld [vmem:[%s12453_s1 + $0x474] sm:$0xf0]  ;;  %v6921_v3 = vor.u32 %v8112_v0, %v6920_v39 }
 0x1e2   :  { %4036 = vmatpush.bf16.msra.mxu2 %v6541_v51  ;;  %v2937_v30 = vrot.slane %v2935_v14, 4  ;;  %v2943_v35 = vrot.slane %v2941_v7, 5  ;;  %v8013_v5 = vld [vmem:[%s12453_s1 + $0x94] sm:$0xf]  ;;  %v10254_v6 = vsel %vm10050_vm15, %v2953_v43, %v2957_v20  ;;  %v7025_v41 = vor.u32 %v8138_v54, %v7024_v58  ;;  %v6530_v11 = vld [vmem:[%s12453_s1 + $0x98] sm:$0xf0] }
 0x1e3   :  { %3943 = vmatpush.bf16.msrb.mxu1 %v6777_v49  ;;  %v10258_v25 = vsel %vm10050_vm15, %v2977_v31, %v2981_v37  ;;  %v2918_v59 = vor.u32 %v2917_v9, %v2914_v26  ;;  %v8009_v61 = vld [vmem:[%s12453_s1 + $0x74] sm:$0xf]  ;;  %v6514_v16 = vld [vmem:[%s12453_s1 + $0x78] sm:$0xf0]  ;;  %v3074_v15 = vunpack.c.l.b16 %v10254_v6  ;;  %v6533_v63 = vor.u32 %v8013_v5, %v6530_v11  ;;  %v6912_v24 = vld [vmem:[%s12453_s1 + $0x390] sm:$0xf] }
 0x1e4   :  { %v3077_v48 = vunpack.c.l.b16 %v10258_v25  ;;  %v2938_v21 = vor.u32 %v2937_v30, %v2923_v4  ;;  %v8110_v46 = vld [vmem:[%s12453_s1 + $0x394] sm:$0xf0]  ;;  %v7016_v20 = vld [vmem:[%s12453_s1 + $0x460] sm:$0xf]  ;;  %3979 = vmatpush.bf16.msrb.mxu3 %v6921_v3  ;;  %v6517_v37 = vor.u32 %v8009_v61, %v6514_v16  ;;  %v8136_v51 = vld [vmem:[%s12453_s1 + $0x464] sm:$0xf0]  ;;  %v10301_v39 = vsel %vm10071_vm3, %v6428_v33, %v3028_v29 }
 0x1e5   :  { %v2919_v52 = vrot.slane %v2918_v59, 4  ;;  %3993 = vmatpush.bf16.msra.mxu0 %v7025_v41  ;;  %v6913_v28 = vor.u32 %v8110_v46, %v6912_v24  ;;  %v8011_v49 = vld [vmem:[%s12453_s1 + $0x84] sm:$0xf]  ;;  %v7017_v27 = vor.u32 %v8136_v51, %v7016_v20  ;;  %v6522_v53 = vld [vmem:[%s12453_s1 + $0x88] sm:$0xf0]  ;;  %v10317_v29 = vsel %vm10071_vm3, %v10164_v17, %v3035_v45 }
 0x1e6   :  { %v10287_v38 = vpack.c.b16 %v3077_v48, %v3074_v15  ;;  %v2939_v8 = vrot.slane %v2938_v21, 4  ;;  %4037 = vmatpush.bf16.msra.mxu2 %v6533_v63  ;;  %v8007_v50 = vld [vmem:[%s12453_s1 + $0x64] sm:$0xf]  ;;  %v6525_v13 = vor.u32 %v8011_v49, %v6522_v53  ;;  %v6506_v14 = vld [vmem:[%s12453_s1 + $0x68] sm:$0xf0]  ;;  %v3098_v41 = vunpack.c.l.b16 %v10301_v39 }
 0x1e7   :  { %3925 = vmatmul.bf16.vlgmr.msrb.gmra.mxu0 %v10226_v12  ;;  %v2924_v0 = vsel %vm10050_vm15, %v2919_v52, %v2923_v4  ;;  %4012 = vmatpush.bf16.msra.mxu1 %v6517_v37  ;;  %v6904_v7 = vld [vmem:[%s12453_s1 + $0x380] sm:$0xf]  ;;  %v8108_v44 = vld [vmem:[%s12453_s1 + $0x384] sm:$0xf0]  ;;  %v6509_v58 = vor.u32 %v8007_v50, %v6506_v14  ;;  %v7008_v43 = vld [vmem:[%s12453_s1 + $0x450] sm:$0xf]  ;;  %v3101_v11 = vunpack.c.l.b16 %v10317_v29  ;;  %v3075_v37 = vunpack.c.h.b16 %v10254_v6 }
 0x1e8   :  { %v2944_v19 = vsel %vm10050_vm15, %v2939_v8, %v2943_v35  ;;  %v3070_v33 = vunpack.c.l.b16 %v2924_v0  ;;  %v8134_v31 = vld [vmem:[%s12453_s1 + $0x454] sm:$0xf0]  ;;  %v8089_v17 = vld [vmem:[%s12453_s1 + $0x2f4] sm:$0xf]  ;;  %3980 = vmatpush.bf16.msrb.mxu3 %v6913_v28  ;;  %v6905_v26 = vor.u32 %v8108_v44, %v6904_v7  ;;  %v6834_v9 = vld [vmem:[%s12453_s1 + $0x2f8] sm:$0xf0]  ;;  %v3078_v28 = vunpack.c.h.b16 %v10258_v25 }
 0x1e9   :  { %v3073_v45 = vunpack.c.l.b16 %v2944_v19  ;;  %3994 = vmatpush.bf16.msra.mxu0 %v7017_v27  ;;  %v8005_v54 = vld [vmem:[%s12453_s1 + $0x54] sm:$0xf]  ;;  %v6498_v4 = vld [vmem:[%s12453_s1 + $0x58] sm:$0xf0]  ;;  %v7009_v30 = vor.u32 %v8134_v31, %v7008_v43  ;;  %v6837_v35 = vor.u32 %v8089_v17, %v6834_v9  ;;  %v7000_v3 = vld [vmem:[%s12453_s1 + $0x440] sm:$0xf]  ;;  %v10381_v25 = vpack.c.b16 %v3101_v11, %v3098_v41 }
 0x1ea   :  { %3911 = vmatmul.bf16.gmra.mxu3 %v10287_v38  ;;  %4038 = vmatpush.bf16.msra.mxu2 %v6525_v13  ;;  %v8132_v5 = vld [vmem:[%s12453_s1 + $0x444] sm:$0xf0]  ;;  %v8041_v59 = vld [vmem:[%s12453_s1 + $0x174] sm:$0xf]  ;;  %v6501_v16 = vor.u32 %v8005_v54, %v6498_v4  ;;  %v6642_v15 = vld [vmem:[%s12453_s1 + $0x178] sm:$0xf0] }
 0x1eb   :  { %3963 = vmatmul.bf16.vlgmr.msrb.gmra.mxu2 %v10211_v42  ;;  %v10351_v61 = vpack.c.b16 %v3073_v45, %v3070_v33  ;;  %4013 = vmatpush.bf16.msra.mxu1 %v6509_v58  ;;  %v8087_v48 = vld [vmem:[%s12453_s1 + $0x2e4] sm:$0xf]  ;;  %v6826_v21 = vld [vmem:[%s12453_s1 + $0x2e8] sm:$0xf0]  ;;  %v6645_v63 = vor.u32 %v8041_v59, %v6642_v15  ;;  %v10371_v51 = vld [vmem:[#allocation2 + $0x38] sm:$0xf]  ;;  %v7001_v53 = vor.u32 %v8132_v5, %v7000_v3  ;;  %v3093_v45 = vunpack.c.h.b16 %v10129_v36 }
 0x1ec   :  { %v6829_v24 = vor.u32 %v8087_v48, %v6826_v21  ;;  %v8003_v46 = vld [vmem:[%s12453_s1 + $0x44] sm:$0xf]  ;;  %v6490_v20 = vld [vmem:[%s12453_s1 + $0x48] sm:$0xf0]  ;;  %3981 = vmatpush.bf16.msrb.mxu3 %v6905_v26  ;;  %v2969_v50 = vshll.u32 %v10371_v51, 16  ;;  %v2983_v0 = vshrl.u32 %v10371_v51, 16  ;;  %v10394_v26 = vpack.c.b16 %v3078_v28, %v3075_v37 }
 0x1ed   :  { %v2887_v52 = vld [vmem:[#allocation2 + $0x2c] sm:$0xf]  ;;  %3944 = vmatmul.bf16.vlgmr.msrb.gmra.mxu1 %v10351_v61  ;;  %v10373_v49 = vld [vmem:[#allocation2 + $0x44] sm:$0x1]  ;;  %3995 = vmatpush.bf16.msra.mxu0 %v7009_v30  ;;  %v6992_v6 = vld [vmem:[%s12453_s1 + $0x430] sm:$0xf]  ;;  %v6493_v14 = vor.u32 %v8003_v46, %v6490_v20  ;;  %v3096_v3 = vunpack.c.h.b16 %v10145_v62 }
 0x1ee   :  { %4107 = vmatpush.bf16.msrb.mxu2 %v6837_v35  ;;  %v2960_v8 = vshrl.u32 %v2887_v52, 16  ;;  %v2963_v27 = vshll.u32 %v2887_v52, 16  ;;  %v2989_v13 = vshll.u32 %v10373_v49, 16  ;;  %v8130_v19 = vld [vmem:[%s12453_s1 + $0x434] sm:$0xf0]  ;;  %v2971_v58 = vrot.slane %v2969_v50, 5 }
 0x1ef   :  { %4014 = vmatpush.bf16.msra.mxu1 %v6501_v16  ;;  %v8039_v33 = vld [vmem:[%s12453_s1 + $0x164] sm:$0xf]  ;;  %v2985_v43 = vrot.slane %v2983_v0, 4  ;;  %v6634_v17 = vld [vmem:[%s12453_s1 + $0x168] sm:$0xf0]  ;;  %v6993_v5 = vor.u32 %v8130_v19, %v6992_v6  ;;  %v3018_v20 = vrot.slane %v10228_v23, 5 }
 0x1f0   :  { %4050 = vmatpush.bf16.msra.mxu3 %v6645_v63  ;;  %v2962_v7 = vrot.slane %v2960_v8, 4  ;;  %v2965_v44 = vrot.slane %v2963_v27, 5  ;;  %v2991_v31 = vrot.slane %v2989_v13, 5  ;;  %v6637_v54 = vor.u32 %v8039_v33, %v6634_v17  ;;  %v8085_v4 = vld [vmem:[%s12453_s1 + $0x2d4] sm:$0xf] }
 0x1f1   :  { %v6818_v30 = vld [vmem:[%s12453_s1 + $0x2d8] sm:$0xf0]  ;;  %v8001_v35 = vld [vmem:[%s12453_s1 + $0x34] sm:$0xf]  ;;  %3996 = vmatpush.bf16.msra.mxu0 %v7001_v53  ;;  %v2986_v36 = vor.u32 %v2985_v43, %v2971_v58  ;;  %v6984_v11 = vld [vmem:[%s12453_s1 + $0x420] sm:$0xf]  ;;  %v10437_v53 = vpack.c.b16 %v3096_v3, %v3093_v45 }
 0x1f2   :  { %4108 = vmatpush.bf16.msrb.mxu2 %v6829_v24  ;;  %v2966_v9 = vor.u32 %v2965_v44, %v2962_v7  ;;  %v6821_v59 = vor.u32 %v8085_v4, %v6818_v30  ;;  %v6482_v41 = vld [vmem:[%s12453_s1 + $0x38] sm:$0xf0]  ;;  %v8128_v16 = vld [vmem:[%s12453_s1 + $0x424] sm:$0xf0]  ;;  %v8037_v48 = vld [vmem:[%s12453_s1 + $0x154] sm:$0xf] }
 0x1f3   :  { %4015 = vmatpush.bf16.msra.mxu1 %v6493_v14  ;;  %v6485_v15 = vor.u32 %v8001_v35, %v6482_v41  ;;  %v6626_v21 = vld [vmem:[%s12453_s1 + $0x158] sm:$0xf0]  ;;  %v2987_v63 = vrot.slane %v2986_v36, 4  ;;  %v8083_v24 = vld [vmem:[%s12453_s1 + $0x2c4] sm:$0xf]  ;;  %v6985_v23 = vor.u32 %v8128_v16, %v6984_v11  ;;  %v3024_v43 = vrot.slane %v10230_v47, 5 }
 0x1f4   :  { %v2967_v62 = vrot.slane %v2966_v9, 4  ;;  %4051 = vmatpush.bf16.msra.mxu3 %v6637_v54  ;;  %v6810_v46 = vld [vmem:[%s12453_s1 + $0x2c8] sm:$0xf0]  ;;  %v6629_v37 = vor.u32 %v8037_v48, %v6626_v21  ;;  %v7999_v8 = vld [vmem:[%s12453_s1 + $0x24] sm:$0xf]  ;;  %v3023_v9 = vrot.slane %v3018_v20, 4 }
 0x1f5   :  { %v6813_v28 = vor.u32 %v8083_v24, %v6810_v46  ;;  %v6474_v27 = vld [vmem:[%s12453_s1 + $0x28] sm:$0xf0]  ;;  %v2992_v50 = vsel %vm10050_vm15, %v2987_v63, %v2991_v31  ;;  %3997 = vmatpush.bf16.msra.mxu0 %v6993_v5  ;;  %v6976_v0 = vld [vmem:[%s12453_s1 + $0x410] sm:$0xf]  ;;  %v8035_v13 = vld [vmem:[%s12453_s1 + $0x144] sm:$0xf] }
 0x1f6   :  { %4109 = vmatpush.bf16.msrb.mxu2 %v6821_v59  ;;  %v2972_v52 = vsel %vm10050_vm15, %v2967_v62, %v2971_v58  ;;  %v6618_v6 = vld [vmem:[%s12453_s1 + $0x148] sm:$0xf0]  ;;  %v3079_v7 = vunpack.c.l.b16 %v2992_v50  ;;  %v6477_v44 = vor.u32 %v7999_v8, %v6474_v27  ;;  %v8126_v19 = vld [vmem:[%s12453_s1 + $0x414] sm:$0xf0]  ;;  %v8081_v33 = vld [vmem:[%s12453_s1 + $0x2b4] sm:$0xf]  ;;  %v3025_v21 = vsel %vm10071_vm3, %v3023_v9, %v3024_v43 }
 0x1f7   :  { %3930 = vmatmul.bf16.gmra.mxu0 %v10394_v26  ;;  %v3076_v14 = vunpack.c.l.b16 %v2972_v52  ;;  %4016 = vmatpush.bf16.msra.mxu1 %v6485_v15  ;;  %v6802_v58 = vld [vmem:[%s12453_s1 + $0x2b8] sm:$0xf0]  ;;  %v7997_v17 = vld [vmem:[%s12453_s1 + $0x14] sm:$0xf]  ;;  %v6621_v54 = vor.u32 %v8035_v13, %v6618_v6  ;;  %v6968_v4 = vld [vmem:[%s12453_s1 + $0x400] sm:$0xf]  ;;  %v6977_v35 = vor.u32 %v8126_v19, %v6976_v0  ;;  %v3099_v9 = vunpack.c.h.b16 %v10301_v39 }
 0x1f8   :  { %v6805_v31 = vor.u32 %v8081_v33, %v6802_v58  ;;  %v6466_v45 = vld [vmem:[%s12453_s1 + $0x18] sm:$0xf0]  ;;  %4052 = vmatpush.bf16.msra.mxu3 %v6629_v37  ;;  %v8124_v47 = vld [vmem:[%s12453_s1 + $0x404] sm:$0xf0]  ;;  %v8079_v30 = vld [vmem:[%s12453_s1 + $0x2a4] sm:$0xf] }
 0x1f9   :  { %3998 = vmatpush.bf16.msra.mxu0 %v6985_v23  ;;  %v8033_v3 = vld [vmem:[%s12453_s1 + $0x134] sm:$0xf]  ;;  %v6610_v36 = vld [vmem:[%s12453_s1 + $0x138] sm:$0xf0]  ;;  %v6794_v5 = vld [vmem:[%s12453_s1 + $0x2a8] sm:$0xf0]  ;;  %v10485_v59 = vpack.c.b16 %v3079_v7, %v3076_v14  ;;  %v6469_v41 = vor.u32 %v7997_v17, %v6466_v45  ;;  %v6969_v8 = vor.u32 %v8124_v47, %v6968_v4  ;;  %v3097_v14 = vunpack.c.l.b16 %v3025_v21 }
 0x1fa   :  { %3982 = vmatmul.bf16.vlgmr.msrb.gmra.mxu3 %v10437_v53  ;;  %4110 = vmatpush.bf16.msrb.mxu2 %v6813_v28  ;;  %v7995_v11 = vld [vmem:[%s12453_s1 + $0x4] sm:$0xf]  ;;  %v6458_v16 = vld [vmem:[%s12453_s1 + $0x8] sm:$0xf0]  ;;  %v2994_v62 = vld [vmem:[#allocation2 + $0x8] sm:$0xe]  ;;  %v6797_v15 = vor.u32 %v8079_v30, %v6794_v5  ;;  %v6613_v46 = vor.u32 %v8033_v3, %v6610_v36 }
 0x1fb   :  { %3968 = vmatmul.bf16.gmra.mxu2 %v10381_v25  ;;  %4017 = vmatpush.bf16.msra.mxu1 %v6477_v44  ;;  %v6427_v48 = vrot.slane %v2994_v62, 9  ;;  %v8057_v63 = vld [vmem:[%s12453_s1 + $0x1f4] sm:$0xf]  ;;  %v6706_v24 = vld [vmem:[%s12453_s1 + $0x1f8] sm:$0xf0]  ;;  %v6461_v13 = vor.u32 %v7995_v11, %v6458_v16  ;;  %v3032_v58 = vrot.slane %v10371_v51, 5  ;;  %v3102_v51 = vunpack.c.h.b16 %v10317_v29 }
 0x1fc   :  { %4053 = vmatpush.bf16.msra.mxu3 %v6621_v54  ;;  %v8077_v52 = vld [vmem:[%s12453_s1 + $0x294] sm:$0xf]  ;;  %v6786_v37 = vld [vmem:[%s12453_s1 + $0x298] sm:$0xf0]  ;;  %v8031_v50 = vld [vmem:[%s12453_s1 + $0x124] sm:$0xf]  ;;  %v6709_v7 = vor.u32 %v8057_v63, %v6706_v24 }
 0x1fd   :  { %3949 = vmatmul.bf16.gmra.mxu1 %v10485_v59  ;;  %v8073_v28 = vld [vmem:[%s12453_s1 + $0x274] sm:$0xf]  ;;  %3999 = vmatpush.bf16.msra.mxu0 %v6977_v35  ;;  %v3019_v27 = vsel %vm10071_vm3, %v6427_v48, %v3018_v20  ;;  %v6602_v23 = vld [vmem:[%s12453_s1 + $0x128] sm:$0xf0]  ;;  %v6770_v0 = vld [vmem:[%s12453_s1 + $0x278] sm:$0xf0]  ;;  %v6789_v44 = vor.u32 %v8077_v52, %v6786_v37  ;;  %v10559_v11 = vpack.c.b16 %v3102_v51, %v3099_v9 }
 0x1fe   :  { %4111 = vmatpush.bf16.msrb.mxu2 %v6805_v31  ;;  %v3094_v6 = vunpack.c.l.b16 %v3019_v27  ;;  %v6773_v20 = vor.u32 %v8073_v28, %v6770_v0  ;;  %v8055_v19 = vld [vmem:[%s12453_s1 + $0x1e4] sm:$0xf]  ;;  %v6698_v33 = vld [vmem:[%s12453_s1 + $0x1e8] sm:$0xf0]  ;;  %v6605_v43 = vor.u32 %v8031_v50, %v6602_v23  ;;  %v8029_v31 = vld [vmem:[%s12453_s1 + $0x114] sm:$0xf] }
 0x1ff   :  { %4018 = vmatpush.bf16.msra.mxu1 %v6469_v41  ;;  %v8075_v17 = vld [vmem:[%s12453_s1 + $0x284] sm:$0xf]  ;;  %v6778_v45 = vld [vmem:[%s12453_s1 + $0x288] sm:$0xf0]  ;;  %v6701_v39 = vor.u32 %v8055_v19, %v6698_v33  ;;  %v8053_v30 = vld [vmem:[%s12453_s1 + $0x1d4] sm:$0xf] }
 0x200   :  { %4054 = vmatpush.bf16.msra.mxu3 %v6613_v46  ;;  %v8071_v54 = vld [vmem:[%s12453_s1 + $0x264] sm:$0xf]  ;;  %v6762_v4 = vld [vmem:[%s12453_s1 + $0x268] sm:$0xf0]  ;;  %v10550_v47 = vpack.c.b16 %v3097_v14, %v3094_v6  ;;  %v6781_v29 = vor.u32 %v8075_v17, %v6778_v45  ;;  %v6690_v35 = vld [vmem:[%s12453_s1 + $0x1d8] sm:$0xf0] }
 0x201   :  { %4000 = vmatpush.bf16.msra.mxu0 %v6969_v8  ;;  %v6765_v36 = vor.u32 %v8071_v54, %v6762_v4  ;;  %v2996_v5 = vld [vmem:[#allocation2 + $0x2c] sm:$0xe]  ;;  %v3037_v41 = vrot.slane %v3032_v58, 4  ;;  %v8027_v16 = vld [vmem:[%s12453_s1 + $0x104] sm:$0xf]  ;;  %v6693_v48 = vor.u32 %v8053_v30, %v6690_v35  ;;  %v3038_v28 = vrot.slane %v10373_v49, 5 }
 0x202   :  { %4112 = vmatpush.bf16.msrb.mxu2 %v6797_v15  ;;  %v6586_v62 = vld [vmem:[%s12453_s1 + $0x108] sm:$0xf0]  ;;  %v8069_v15 = vld [vmem:[%s12453_s1 + $0x254] sm:$0xf]  ;;  %v6754_v21 = vld [vmem:[%s12453_s1 + $0x258] sm:$0xf0] }
 0x203   :  { %4019 = vmatpush.bf16.msra.mxu1 %v6461_v13  ;;  %v8105_v63 = vld [vmem:[%s12453_s1 + $0x374] sm:$0xf]  ;;  %v6898_v24 = vld [vmem:[%s12453_s1 + $0x378] sm:$0xf0]  ;;  %v8051_v46 = vld [vmem:[%s12453_s1 + $0x1c4] sm:$0xf]  ;;  %v6589_v8 = vor.u32 %v8027_v16, %v6586_v62  ;;  %v6757_v27 = vor.u32 %v8069_v15, %v6754_v21 }
 0x204   :  { %4055 = vmatpush.bf16.msra.mxu3 %v6605_v43  ;;  %v6682_v52 = vld [vmem:[%s12453_s1 + $0x1c8] sm:$0xf0]  ;;  %v6429_v37 = vrot.slane %v2996_v5, 9  ;;  %v6901_v50 = vor.u32 %v8105_v63, %v6898_v24  ;;  %v8067_v23 = vld [vmem:[%s12453_s1 + $0x244] sm:$0xf] }
 0x205   :  { %4069 = vmatpush.bf16.msrb.mxu0 %v6709_v7  ;;  %v6685_v0 = vor.u32 %v8051_v46, %v6682_v52  ;;  %v6746_v13 = vld [vmem:[%s12453_s1 + $0x248] sm:$0xf0]  ;;  %v8103_v6 = vld [vmem:[%s12453_s1 + $0x364] sm:$0xf]  ;;  %v3039_v7 = vsel %vm10071_vm3, %v3037_v41, %v3038_v28  ;;  %v6738_v45 = vld [vmem:[%s12453_s1 + $0x238] sm:$0xf0] }
 0x206   :  { %4113 = vmatpush.bf16.msrb.mxu2 %v6789_v44  ;;  %v6890_v49 = vld [vmem:[%s12453_s1 + $0x368] sm:$0xf0]  ;;  %v3033_v14 = vsel %vm10071_vm3, %v6429_v37, %v3032_v58  ;;  %v8049_v44 = vld [vmem:[%s12453_s1 + $0x1b4] sm:$0xf]  ;;  %v6749_v19 = vor.u32 %v8067_v23, %v6746_v13  ;;  %v6882_v9 = vld [vmem:[%s12453_s1 + $0x358] sm:$0xf0] }
 0x207   :  { %4088 = vmatpush.bf16.msrb.mxu1 %v6773_v20  ;;  %4001 = vmatmul.bf16.vlgmr.msra.gmra.mxu0 %v10550_v47  ;;  %v6674_v20 = vld [vmem:[%s12453_s1 + $0x1b8] sm:$0xf0]  ;;  %v6893_v33 = vor.u32 %v8103_v6, %v6890_v49  ;;  %v8065_v58 = vld [vmem:[%s12453_s1 + $0x234] sm:$0xf]  ;;  %v3100_v43 = vunpack.c.l.b16 %v3033_v14  ;;  %v8047_v51 = vld [vmem:[%s12453_s1 + $0x1a4] sm:$0xf] }
 0x208   :  { %v6677_v17 = vor.u32 %v8049_v44, %v6674_v20  ;;  %v6741_v54 = vor.u32 %v8065_v58, %v6738_v45  ;;  %v6730_v35 = vld [vmem:[%s12453_s1 + $0x228] sm:$0xf0]  ;;  %v6658_v5 = vld [vmem:[%s12453_s1 + $0x198] sm:$0xf0]  ;;  %v8061_v62 = vld [vmem:[%s12453_s1 + $0x214] sm:$0xf] }
 0x209   :  { %4070 = vmatpush.bf16.msrb.mxu0 %v6701_v39  ;;  %v8063_v39 = vld [vmem:[%s12453_s1 + $0x224] sm:$0xf]  ;;  %v8097_v21 = vld [vmem:[%s12453_s1 + $0x334] sm:$0xf]  ;;  %v6866_v63 = vld [vmem:[%s12453_s1 + $0x338] sm:$0xf0] }
 0x20a   :  { %3987 = vmatmul.bf16.gmra.mxu3 %v10559_v11  ;;  %4114 = vmatpush.bf16.msrb.mxu2 %v6781_v29  ;;  %v6733_v41 = vor.u32 %v8063_v39, %v6730_v35  ;;  %v8043_v24 = vld [vmem:[%s12453_s1 + $0x184] sm:$0xf]  ;;  %v6650_v46 = vld [vmem:[%s12453_s1 + $0x188] sm:$0xf0]  ;;  %v8121_v52 = vld [vmem:[%s12453_s1 + $0x3f4] sm:$0xf] }
 0x20b   :  { %4039 = vmatmul.bf16.vlgmr.msra.gmra.mxu2 %v9951_v55  ;;  %v6594_v55 = vld [vmem:[%s12453_s1 + $0x118] sm:$0xf0]  ;;  %4089 = vmatpush.bf16.msrb.mxu1 %v6765_v36  ;;  %v8045_v36 = vld [vmem:[%s12453_s1 + $0x194] sm:$0xf]  ;;  %v8095_v23 = vld [vmem:[%s12453_s1 + $0x324] sm:$0xf] }
 0x20c   :  { %v6597_v3 = vor.u32 %v8029_v31, %v6594_v55  ;;  %v3103_v31 = vunpack.c.l.b16 %v3039_v7  ;;  %v6666_v55 = vld [vmem:[%s12453_s1 + $0x1a8] sm:$0xf0]  ;;  %v6661_v15 = vor.u32 %v8045_v36, %v6658_v5  ;;  %v6962_v37 = vld [vmem:[%s12453_s1 + $0x3f8] sm:$0xf0]  ;;  %v8137_v6 = vld [vmem:[%s12453_s1 + $0x474] sm:$0xf] }
 0x20d   :  { %4071 = vmatpush.bf16.msrb.mxu0 %v6693_v48  ;;  %4020 = vmatmul.bf16.vlgmr.msra.gmra.mxu1 %v9937_v40  ;;  %v8101_v40 = vld [vmem:[%s12453_s1 + $0x354] sm:$0xf]  ;;  %v6669_v30 = vor.u32 %v8047_v51, %v6666_v55  ;;  %v6722_v48 = vld [vmem:[%s12453_s1 + $0x218] sm:$0xf0]  ;;  %v6965_v13 = vor.u32 %v8121_v52, %v6962_v37  ;;  %v8119_v14 = vld [vmem:[%s12453_s1 + $0x3e4] sm:$0xf] }
 0x20e   :  { %4056 = vmatpush.bf16.msra.mxu3 %v6597_v3  ;;  %v6885_v4 = vor.u32 %v8101_v40, %v6882_v9  ;;  %v10632_v29 = vpack.c.b16 %v3103_v31, %v3100_v43  ;;  %v6874_v3 = vld [vmem:[%s12453_s1 + $0x348] sm:$0xf0]  ;;  %v6725_v28 = vor.u32 %v8061_v62, %v6722_v48  ;;  %v7026_v49 = vld [vmem:[%s12453_s1 + $0x478] sm:$0xf0]  ;;  %v8135_v43 = vld [vmem:[%s12453_s1 + $0x464] sm:$0xf] }
 0x20f   :  { %4090 = vmatpush.bf16.msrb.mxu1 %v6757_v27  ;;  %v6653_v27 = vor.u32 %v8043_v24, %v6650_v46  ;;  %v6954_v7 = vld [vmem:[%s12453_s1 + $0x3e8] sm:$0xf0]  ;;  %v6946_v45 = vld [vmem:[%s12453_s1 + $0x3d8] sm:$0xf0]  ;;  %v8091_v51 = vld [vmem:[%s12453_s1 + $0x304] sm:$0xf] }
 0x210   :  { %v6957_v58 = vor.u32 %v8119_v14, %v6954_v7  ;;  %v7018_v31 = vld [vmem:[%s12453_s1 + $0x468] sm:$0xf0]  ;;  %v8115_v39 = vld [vmem:[%s12453_s1 + $0x3c4] sm:$0xf]  ;;  %v8113_v5 = vld [vmem:[%s12453_s1 + $0x3b4] sm:$0xf]  ;;  %v3888_v7 = vpop.f32.mrf.mxu2 }
 0x211   :  { %4072 = vmatpush.bf16.msrb.mxu0 %v6685_v0  ;;  %v6858_v0 = vld [vmem:[%s12453_s1 + $0x328] sm:$0xf0]  ;;  %v7021_v9 = vor.u32 %v8135_v43, %v7018_v31  ;;  %v8129_v62 = vld [vmem:[%s12453_s1 + $0x434] sm:$0xf]  ;;  %v8111_v48 = vld [vmem:[%s12453_s1 + $0x3a4] sm:$0xf] }
 0x212   :  { %4057 = vmatpush.bf16.msra.mxu3 %v6589_v8  ;;  %v8059_v8 = vld [vmem:[%s12453_s1 + $0x204] sm:$0xf]  ;;  %v6861_v20 = vor.u32 %v8095_v23, %v6858_v0  ;;  %v7002_v36 = vld [vmem:[%s12453_s1 + $0x448] sm:$0xf0]  ;;  %v8109_v52 = vld [vmem:[%s12453_s1 + $0x394] sm:$0xf] }
 0x213   :  { %4091 = vmatpush.bf16.msrb.mxu1 %v6749_v19  ;;  %v7029_v19 = vor.u32 %v8137_v6, %v7026_v49  ;;  %v8127_v46 = vld [vmem:[%s12453_s1 + $0x424] sm:$0xf]  ;;  %v6914_v37 = vld [vmem:[%s12453_s1 + $0x398] sm:$0xf0]  ;;  %v10800_v6 = vld [vmem:[%s12454_s4] sm:$0x3] }
 0x214   :  { %v8293_v2 = vld [vmem:[%s12455_s2 + $0x484] sm:$0xf] }
 0x215   :  { %4073 = vmatpush.bf16.msrb.mxu0 %v6677_v17  ;;  %v8117_v17 = vld [vmem:[%s12453_s1 + $0x3d4] sm:$0xf] }
 0x216   :  { %4126 = vmatpush.bf16.msrb.mxu3 %v6901_v50  ;;  %v6714_v50 = vld [vmem:[%s12453_s1 + $0x208] sm:$0xf0]  ;;  %v6949_v55 = vor.u32 %v8117_v17, %v6946_v45 }
 0x217   :  { %4006 = vmatmul.bf16.gmra.mxu0 %v10632_v29  ;;  %4092 = vmatpush.bf16.msrb.mxu1 %v6741_v54  ;;  %v6717_v44 = vor.u32 %v8059_v8, %v6714_v50  ;;  %v8133_v54 = vld [vmem:[%s12453_s1 + $0x454] sm:$0xf]  ;;  %v6906_v50 = vld [vmem:[%s12453_s1 + $0x388] sm:$0xf0] }
 0x218   :  { %v8125_v8 = vld [vmem:[%s12453_s1 + $0x414] sm:$0xf]  ;;  %v10813_v43 = vpop.f32.mrf.mxu2 }
 0x219   :  { %4074 = vmatpush.bf16.msrb.mxu0 %v6669_v30  ;;  %v6938_v30 = vld [vmem:[%s12453_s1 + $0x3c8] sm:$0xf0] }
 0x21a   :  { %4127 = vmatpush.bf16.msrb.mxu3 %v6893_v33  ;;  %v8093_v33 = vld [vmem:[%s12453_s1 + $0x314] sm:$0xf] }
 0x21b   :  { %4044 = vmatmul.bf16.gmra.mxu2 %v10086_v34  ;;  %v8099_v34 = vld [vmem:[%s12453_s1 + $0x344] sm:$0xf]  ;;  %4058 = vmatmul.bf16.vlgmr.msra.gmra.mxu3 %v9686_v60  ;;  %v6869_v60 = vor.u32 %v8097_v21, %v6866_v63  ;;  %v6922_v21 = vld [vmem:[%s12453_s1 + $0x3a8] sm:$0xf0] }
 0x21c   :  { %v6877_v16 = vor.u32 %v8099_v34, %v6874_v3  ;;  %4093 = vmatpush.bf16.msrb.mxu1 %v6733_v41  ;;  %v6941_v3 = vor.u32 %v8115_v39, %v6938_v30  ;;  %v6930_v41 = vld [vmem:[%s12453_s1 + $0x3b8] sm:$0xf0]  ;;  %v6925_v24 = vor.u32 %v8111_v48, %v6922_v21 }
 0x21d   :  { %4075 = vmatpush.bf16.msrb.mxu0 %v6661_v15  ;;  %4025 = vmatmul.bf16.gmra.mxu1 %v10075_v1  ;;  %v6850_v1 = vld [vmem:[%s12453_s1 + $0x318] sm:$0xf0] }
 0x21e   :  { %4128 = vmatpush.bf16.msrb.mxu3 %v6885_v4  ;;  %v6853_v40 = vor.u32 %v8093_v33, %v6850_v1  ;;  %v7010_v4 = vld [vmem:[%s12453_s1 + $0x458] sm:$0xf0] }
 0x21f   :  { %v7013_v34 = vor.u32 %v8133_v54, %v7010_v4  ;;  %v6994_v15 = vld [vmem:[%s12453_s1 + $0x438] sm:$0xf0] }
 0x220   :  { %4094 = vmatpush.bf16.msrb.mxu1 %v6725_v28  ;;  %v6997_v63 = vor.u32 %v8129_v62, %v6994_v15 }
 0x221   :  { %4076 = vmatpush.bf16.msrb.mxu0 %v6653_v27  ;;  %v8107_v27 = vld [vmem:[%s12453_s1 + $0x384] sm:$0xf] }
 0x222   :  { %4129 = vmatpush.bf16.msrb.mxu3 %v6877_v16  ;;  %v6933_v16 = vor.u32 %v8113_v5, %v6930_v41  ;;  %v6909_v0 = vor.u32 %v8107_v27, %v6906_v50 }
 0x224   :  { %4095 = vmatpush.bf16.msrb.mxu1 %v6717_v44 }
 0x225   :  { %4145 = vmatpush.bf16.msra.mxu0 %v6965_v13  ;;  %v8123_v13 = vld [vmem:[%s12453_s1 + $0x404] sm:$0xf] }
 0x226   :  { %4130 = vmatpush.bf16.msrb.mxu3 %v6869_v60  ;;  %v6917_v60 = vor.u32 %v8109_v52, %v6914_v37 }
 0x227   :  { %4077 = vmatmul.bf16.vlgmr.msrb.gmra.mxu0 %v10147_v56  ;;  %v8131_v56 = vld [vmem:[%s12453_s1 + $0x444] sm:$0xf] }
 0x228   :  { %4164 = vmatpush.bf16.msra.mxu1 %v7029_v19 }
 0x229   :  { %4146 = vmatpush.bf16.msra.mxu0 %v6957_v58 }
 0x22a   :  { %4131 = vmatpush.bf16.msrb.mxu3 %v6861_v20  ;;  %v3869_v20 = vpop.f32.mrf.mxu1 }
 0x22b   :  { %4115 = vmatmul.bf16.vlgmr.msrb.gmra.mxu2 %v10351_v61  ;;  %v6842_v61 = vld [vmem:[%s12453_s1 + $0x308] sm:$0xf0]  ;;  %4063 = vmatmul.bf16.gmra.mxu3 %v10066_v57  ;;  %v7005_v57 = vor.u32 %v8131_v56, %v7002_v36 }
 0x22c   :  { %v6845_v35 = vor.u32 %v8091_v51, %v6842_v61  ;;  %4165 = vmatpush.bf16.msra.mxu1 %v7021_v9 }
 0x22d   :  { %4147 = vmatpush.bf16.msra.mxu0 %v6949_v55  ;;  %4096 = vmatmul.bf16.vlgmr.msrb.gmra.mxu1 %v10226_v12  ;;  %v6986_v12 = vld [vmem:[%s12453_s1 + $0x428] sm:$0xf0] }
 0x22e   :  { %4132 = vmatpush.bf16.msrb.mxu3 %v6853_v40  ;;  %v6989_v28 = vor.u32 %v8127_v46, %v6986_v12 }
 0x230   :  { %4166 = vmatpush.bf16.msra.mxu1 %v7013_v34 }
 0x231   :  { %4148 = vmatpush.bf16.msra.mxu0 %v6941_v3 }
 0x232   :  { %4133 = vmatpush.bf16.msrb.mxu3 %v6845_v35  ;;  %v10811_v58 = vpop.f32.mrf.mxu1 }
 0x234   :  { %4167 = vmatpush.bf16.msra.mxu1 %v7005_v57 }
 0x235   :  { %4149 = vmatpush.bf16.msra.mxu0 %v6933_v16 }
 0x237   :  { %4082 = vmatmul.bf16.gmra.mxu0 %v10287_v38  ;;  %v6970_v38 = vld [vmem:[%s12453_s1 + $0x408] sm:$0xf0] }
 0x238   :  { %4168 = vmatpush.bf16.msra.mxu1 %v6997_v63  ;;  %v6973_v49 = vor.u32 %v8123_v13, %v6970_v38 }
 0x239   :  { %4150 = vmatpush.bf16.msra.mxu0 %v6925_v24 }
 0x23b   :  { %4120 = vmatmul.bf16.gmra.mxu2 %v10485_v59  ;;  %v6978_v59 = vld [vmem:[%s12453_s1 + $0x418] sm:$0xf0]  ;;  %4134 = vmatmul.bf16.vlgmr.msrb.gmra.mxu3 %v10211_v42  ;;  %v10803_v42 = vperm.slane %v10800_v6, 0 }
 0x23c   :  { %4169 = vmatpush.bf16.msra.mxu1 %v6989_v28  ;;  %v6981_v23 = vor.u32 %v8125_v8, %v6978_v59 }
 0x23d   :  { %4151 = vmatpush.bf16.msra.mxu0 %v6917_v60  ;;  %4101 = vmatmul.bf16.gmra.mxu1 %v10394_v26 }
 0x240   :  { %4170 = vmatpush.bf16.msra.mxu1 %v6981_v23 }
 0x241   :  { %4152 = vmatpush.bf16.msra.mxu0 %v6909_v0 }
 0x244   :  { %v3850_v14 = vpop.f32.mrf.mxu0  ;;  %4171 = vmatpush.bf16.msra.mxu1 %v6973_v49 }
 0x245   :  { %v3851_v44 = vadd.f32 %v3850_v14, %v10803_v42 }
 0x247   :  { %v3870_v19 = vadd.f32 %v3869_v20, %v3851_v44  ;;  %4153 = vmatmul.bf16.vlgmr.msra.gmra.mxu0 %v10437_v53 }
 0x249   :  { %v3889_v33 = vadd.f32 %v3888_v7, %v3870_v19 }
 0x24b   :  { %4139 = vmatmul.bf16.gmra.mxu3 %v10381_v25 }
 0x24c   :  { %v10808_v1 = vpop.f32.mrf.mxu0  ;;  %v3874_v17 = vpop.f32.mrf.mxu1 }
 0x24d   :  { %4172 = vmatmul.bf16.vlgmr.msra.gmra.mxu1 %v10550_v47 }
 0x254   :  { %v3855_v26 = vpop.f32.mrf.mxu0  ;;  %v10823_v55 = vpop.f32.mrf.mxu1 }
 0x255   :  { %v3856_v31 = vadd.f32 %v3855_v26, %v10803_v42 }
 0x257   :  { %v3875_v45 = vadd.f32 %v3874_v17, %v3856_v31  ;;  %4158 = vmatmul.bf16.gmra.mxu0 %v10559_v11 }
 0x25c   :  { %v10818_v53 = vpop.f32.mrf.mxu0 }
 0x25d   :  { %v3907_v51 = vpop.f32.mrf.mxu3  ;;  %4177 = vmatmul.bf16.gmra.mxu1 %v10632_v29 }
 0x25e   :  { %v3893_v40 = vpop.f32.mrf.mxu2  ;;  %v3908_v61 = vadd.f32 %v3907_v51, %v3889_v33  ;;  %v3853_v51 = vadd.f32 %v10808_v1, %v10803_v42  ;;  %v7170_v1 = vld [vmem:[%s12455_s2 + $0xf0] sm:$0xf] }
 0x25f   :  { %v3894_v9 = vadd.f32 %v3893_v40, %v3875_v45  ;;  %v10860_v40 = vperm.slane %v10800_v6, 1  ;;  %v7106_v6 = vld [vmem:[%s12455_s2 + $0x70] sm:$0xf] }
 0x264   :  { %v3926_v47 = vpop.f32.mrf.mxu0 }
 0x265   :  { %v3927_v54 = vadd.f32 %v3926_v47, %v3908_v61  ;;  %v10825_v4 = vpop.f32.mrf.mxu3 }
 0x266   :  { %v10821_v25 = vpop.f32.mrf.mxu2 }
 0x26a   :  { %v3945_v35 = vpop.f32.mrf.mxu1 }
 0x26b   :  { %v3946_v11 = vadd.f32 %v3945_v35, %v3927_v54  ;;  %v3872_v35 = vadd.f32 %v10811_v58, %v3853_v51  ;;  %v7098_v58 = vld [vmem:[%s12455_s2 + $0x60] sm:$0xf] }
 0x26c   :  { %v10827_v30 = vpop.f32.mrf.mxu0 }
 0x26d   :  { %v3912_v34 = vpop.f32.mrf.mxu3 }
 0x26e   :  { %v3964_v39 = vpop.f32.mrf.mxu2  ;;  %v3913_v3 = vadd.f32 %v3912_v34, %v3894_v9  ;;  %v8160_v34 = vld [vmem:[%s12455_s2 + $0x74] sm:$0xf0] }
 0x26f   :  { %v3965_v56 = vadd.f32 %v3964_v39, %v3946_v11 }
 0x272   :  { %v10831_v29 = vpop.f32.mrf.mxu1 }
 0x274   :  { %v3931_v36 = vpop.f32.mrf.mxu0 }
 0x275   :  { %v3932_v5 = vadd.f32 %v3931_v36, %v3913_v3  ;;  %v10833_v57 = vpop.f32.mrf.mxu3  ;;  %v8176_v36 = vld [vmem:[%s12455_s2 + $0xf4] sm:$0xf0] }
 0x276   :  { %v10829_v41 = vpop.f32.mrf.mxu2 }
 0x27a   :  { %v3950_v62 = vpop.f32.mrf.mxu1 }
 0x27b   :  { %v3951_v15 = vadd.f32 %v3950_v62, %v3932_v5  ;;  %v8158_v5 = vld [vmem:[%s12455_s2 + $0x64] sm:$0xf0]  ;;  %v3891_v62 = vadd.f32 %v10813_v43, %v3872_v35 }
 0x27c   :  { %v10835_v16 = vpop.f32.mrf.mxu0  ;;  %v7099_v43 = vor.u32 %v8158_v5, %v7098_v58  ;;  %v7082_v58 = vld [vmem:[%s12455_s2 + $0x40] sm:$0xf] }
 0x27d   :  { %v3983_v48 = vpop.f32.mrf.mxu3 }
 0x27e   :  { %v3969_v21 = vpop.f32.mrf.mxu2  ;;  %v3984_v63 = vadd.f32 %v3983_v48, %v3965_v56  ;;  %v7107_v56 = vor.u32 %v8160_v34, %v7106_v6  ;;  %v8172_v34 = vld [vmem:[%s12455_s2 + $0xd4] sm:$0xf0] }
 0x27f   :  { %v3970_v24 = vadd.f32 %v3969_v21, %v3951_v15  ;;  %v7171_v21 = vor.u32 %v8176_v36, %v7170_v1  ;;  %v7234_v1 = vld [vmem:[%s12455_s2 + $0x170] sm:$0xf]  ;;  %v8208_v36 = vld [vmem:[%s12455_s2 + $0x1f4] sm:$0xf0] }
 0x280   :  { %4957 = vmatpush.bf16.msra.mxu2 %v7107_v56  ;;  %v7298_v56 = vld [vmem:[%s12455_s2 + $0x1f0] sm:$0xf] }
 0x281   :  { %4976 = vmatpush.bf16.msra.mxu3 %v7171_v21  ;;  %v7299_v5 = vor.u32 %v8208_v36, %v7298_v56  ;;  %v8170_v21 = vld [vmem:[%s12455_s2 + $0xc4] sm:$0xf0]  ;;  %v7066_v56 = vld [vmem:[%s12455_s2 + $0x20] sm:$0xf] }
 0x282   :  { %v10837_v46 = vpop.f32.mrf.mxu1  ;;  %v8150_v36 = vld [vmem:[%s12455_s2 + $0x24] sm:$0xf0] }
 0x283   :  { %5014 = vmatpush.bf16.msrb.mxu1 %v7299_v5 }
 0x284   :  { %v4002_v12 = vpop.f32.mrf.mxu0  ;;  %4958 = vmatpush.bf16.msra.mxu2 %v7099_v43 }
 0x285   :  { %v10839_v52 = vpop.f32.mrf.mxu3  ;;  %v10841_v37 = vadd.f32 %v4002_v12, %v3984_v63  ;;  %v7162_v63 = vld [vmem:[%s12455_s2 + $0xe0] sm:$0xf] }
 0x286   :  { %v10843_v28 = vpop.f32.mrf.mxu2 }
 0x287   :  { %v4183_v5 = vmax.f32 %v10841_v37, 0.0 }
 0x28a   :  { %v4021_v60 = vpop.f32.mrf.mxu1 }
 0x28b   :  { %v4022_v54 = vadd.f32 %v4021_v60, %v10860_v40 }
 0x28c   :  { %v10845_v8 = vpop.f32.mrf.mxu0 }
 0x28d   :  { %v3988_v59 = vpop.f32.mrf.mxu3 }
 0x28e   :  { %v3989_v27 = vadd.f32 %v3988_v59, %v3970_v24  ;;  %v4040_v0 = vpop.f32.mrf.mxu2  ;;  %v8174_v24 = vld [vmem:[%s12455_s2 + $0xe4] sm:$0xf0] }
 0x28f   :  { %v4041_v11 = vadd.f32 %v4040_v0, %v4022_v54  ;;  %v7163_v0 = vor.u32 %v8174_v24, %v7162_v63 }
 0x291   :  { %4977 = vmatpush.bf16.msra.mxu3 %v7163_v0 }
 0x292   :  { %v4023_v50 = vpop.f32.mrf.mxu1 }
 0x293   :  { %v4024_v12 = vadd.f32 %v4023_v50, %v10860_v40  ;;  %v7090_v50 = vld [vmem:[%s12455_s2 + $0x50] sm:$0xf] }
 0x294   :  { %v4007_v23 = vpop.f32.mrf.mxu0 }
 0x295   :  { %v10847_v13 = vpop.f32.mrf.mxu3  ;;  %v10849_v38 = vadd.f32 %v4007_v23, %v3989_v27  ;;  %v3910_v23 = vadd.f32 %v10825_v4, %v3891_v62  ;;  %v7154_v4 = vld [vmem:[%s12455_s2 + $0xd0] sm:$0xf]  ;;  %v7146_v62 = vld [vmem:[%s12455_s2 + $0xc0] sm:$0xf] }
 0x296   :  { %v4042_v44 = vpop.f32.mrf.mxu2 }
 0x297   :  { %v4043_v51 = vadd.f32 %v4042_v44, %v4024_v12 }
 0x29a   :  { %v4026_v49 = vpop.f32.mrf.mxu1 }
 0x29c   :  { %v10851_v14 = vpop.f32.mrf.mxu0 }
 0x29e   :  { %v4059_v7 = vpop.f32.mrf.mxu3  ;;  %v10855_v26 = vpop.f32.mrf.mxu2 }
 0x29f   :  { %v4060_v3 = vadd.f32 %v4059_v7, %v4041_v11  ;;  %v3929_v7 = vadd.f32 %v10827_v30, %v3910_v23  ;;  %v3858_v30 = vadd.f32 %v10818_v53, %v10803_v42  ;;  %v8192_v42 = vld [vmem:[%s12455_s2 + $0x174] sm:$0xf0] }
 0x2a1   :  { %v3948_v44 = vadd.f32 %v10831_v29, %v3929_v7  ;;  %v3877_v23 = vadd.f32 %v10823_v55, %v3858_v30  ;;  %v7290_v55 = vld [vmem:[%s12455_s2 + $0x1e0] sm:$0xf] }
 0x2a2   :  { %v10853_v20 = vpop.f32.mrf.mxu1 }
 0x2a3   :  { %v3967_v0 = vadd.f32 %v10829_v41, %v3948_v44 }
 0x2a4   :  { %v4078_v19 = vpop.f32.mrf.mxu0 }
 0x2a5   :  { %v4079_v59 = vadd.f32 %v4078_v19, %v4060_v3  ;;  %v8156_v19 = vld [vmem:[%s12455_s2 + $0x54] sm:$0xf0]  ;;  %v7155_v3 = vor.u32 %v8172_v34, %v7154_v4  ;;  %v3986_v41 = vadd.f32 %v10839_v52, %v3967_v0  ;;  %v7218_v34 = vld [vmem:[%s12455_s2 + $0x150] sm:$0xf] }
 0x2a6   :  { %v4061_v33 = vpop.f32.mrf.mxu3  ;;  %v10862_v9 = vpop.f32.mrf.mxu2  ;;  %v7091_v6 = vor.u32 %v8156_v19, %v7090_v50  ;;  %v8152_v50 = vld [vmem:[%s12455_s2 + $0x34] sm:$0xf0]  ;;  %v4029_v19 = vadd.f32 %v10853_v20, %v10860_v40  ;;  %v3896_v20 = vadd.f32 %v10821_v25, %v3877_v23 }
 0x2a7   :  { %v4062_v35 = vadd.f32 %v4061_v33, %v4043_v51  ;;  %4978 = vmatpush.bf16.msra.mxu3 %v7155_v3  ;;  %v10995_v3 = vadd.f32 %v10845_v8, %v3986_v41  ;;  %v7274_v41 = vld [vmem:[%s12455_s2 + $0x1c0] sm:$0xf] }
 0x2a8   :  { %4959 = vmatpush.bf16.msra.mxu2 %v7091_v6  ;;  %v8168_v6 = vld [vmem:[%s12455_s2 + $0xb4] sm:$0xf0] }
 0x2aa   :  { %v4097_v31 = vpop.f32.mrf.mxu1 }
 0x2ab   :  { %v4098_v54 = vadd.f32 %v4097_v31, %v4079_v59  ;;  %v4027_v31 = vadd.f32 %v4026_v49, %v10860_v40  ;;  %v7235_v49 = vor.u32 %v8192_v42, %v7234_v1  ;;  %v7147_v59 = vor.u32 %v8170_v21, %v7146_v62  ;;  %v8188_v42 = vld [vmem:[%s12455_s2 + $0x154] sm:$0xf0]  ;;  %v8166_v21 = vld [vmem:[%s12455_s2 + $0xa4] sm:$0xf0] }
 0x2ac   :  { %v4080_v17 = vpop.f32.mrf.mxu0  ;;  %v7219_v25 = vor.u32 %v8188_v42, %v7218_v34  ;;  %v7067_v62 = vor.u32 %v8150_v36, %v7066_v56  ;;  %v8200_v42 = vld [vmem:[%s12455_s2 + $0x1b4] sm:$0xf0]  ;;  %v7114_v56 = vld [vmem:[%s12455_s2 + $0x80] sm:$0xf] }
 0x2ad   :  { %v4081_v53 = vadd.f32 %v4080_v17, %v4062_v35  ;;  %v8154_v17 = vld [vmem:[%s12455_s2 + $0x44] sm:$0xf0]  ;;  %4995 = vmatpush.bf16.msrb.mxu0 %v7235_v49  ;;  %v4046_v43 = vadd.f32 %v10855_v26, %v4027_v31  ;;  %4979 = vmatpush.bf16.msra.mxu3 %v7147_v59 }
 0x2ae   :  { %v10857_v45 = vpop.f32.mrf.mxu3  ;;  %v4116_v60 = vpop.f32.mrf.mxu2  ;;  %v8190_v35 = vld [vmem:[%s12455_s2 + $0x164] sm:$0xf0] }
 0x2af   :  { %v4117_v29 = vadd.f32 %v4116_v60, %v4098_v54  ;;  %v7083_v60 = vor.u32 %v8154_v17, %v7082_v58  ;;  %v4065_v54 = vadd.f32 %v10857_v45, %v4046_v43  ;;  %v8206_v45 = vld [vmem:[%s12455_s2 + $0x1e4] sm:$0xf0]  ;;  %v7130_v58 = vld [vmem:[%s12455_s2 + $0xa0] sm:$0xf] }
 0x2b0   :  { %v7291_v44 = vor.u32 %v8206_v45, %v7290_v55  ;;  %v7131_v59 = vor.u32 %v8166_v21, %v7130_v58  ;;  %v7058_v45 = vld [vmem:[%s12455_s2 + $0x10] sm:$0xf] }
 0x2b1   :  { %4960 = vmatpush.bf16.msra.mxu2 %v7083_v60 }
 0x2b2   :  { %v10866_v61 = vpop.f32.mrf.mxu1  ;;  %5015 = vmatpush.bf16.msrb.mxu1 %v7291_v44 }
 0x2b3   :  { %v4100_v7 = vadd.f32 %v10866_v61, %v4081_v53  ;;  %v7074_v61 = vld [vmem:[%s12455_s2 + $0x30] sm:$0xf] }
 0x2b4   :  { %v10868_v47 = vpop.f32.mrf.mxu0  ;;  %v7075_v31 = vor.u32 %v8152_v50, %v7074_v61  ;;  %v7282_v53 = vld [vmem:[%s12455_s2 + $0x1d0] sm:$0xf] }
 0x2b5   :  { %v4084_v4 = vadd.f32 %v10868_v47, %v4065_v54 }
 0x2b6   :  { %v10871_v39 = vpop.f32.mrf.mxu3  ;;  %v4118_v63 = vpop.f32.mrf.mxu2  ;;  %4961 = vmatpush.bf16.msra.mxu2 %v7075_v31  ;;  %v8164_v31 = vld [vmem:[%s12455_s2 + $0x94] sm:$0xf0] }
 0x2b7   :  { %v4119_v40 = vadd.f32 %v4118_v63, %v4100_v7  ;;  %v3915_v63 = vadd.f32 %v10833_v57, %v3896_v20  ;;  %v4187_v57 = vmax.f32 %v10849_v38, 0.0  ;;  %v4235_v20 = vld [vmem:[#allocation2] sm:$0xff]  ;;  %v8220_v38 = vld [vmem:[%s12455_s2 + $0x254] sm:$0xf0] }
 0x2b9   :  { %v3934_v37 = vadd.f32 %v10835_v16, %v3915_v63 }
 0x2ba   :  { %v10893_v15 = vpop.f32.mrf.mxu1  ;;  %4962 = vmatpush.bf16.msra.mxu2 %v7067_v62  ;;  %v8182_v62 = vld [vmem:[%s12455_s2 + $0x124] sm:$0xf0] }
 0x2bb   :  { %v4103_v60 = vadd.f32 %v10893_v15, %v4084_v4  ;;  %v8186_v15 = vld [vmem:[%s12455_s2 + $0x144] sm:$0xf0]  ;;  %v8148_v4 = vld [vmem:[%s12455_s2 + $0x14] sm:$0xf0] }
 0x2bc   :  { %v10895_v48 = vpop.f32.mrf.mxu0  ;;  %v7059_v44 = vor.u32 %v8148_v4, %v7058_v45  ;;  %v8180_v45 = vld [vmem:[%s12455_s2 + $0x114] sm:$0xf0] }
 0x2be   :  { %v4135_v27 = vpop.f32.mrf.mxu3  ;;  %v4121_v43 = vpop.f32.mrf.mxu2  ;;  %4963 = vmatpush.bf16.msra.mxu2 %v7059_v44  ;;  %v7354_v44 = vld [vmem:[%s12455_s2 + $0x260] sm:$0xf] }
 0x2bf   :  { %v4136_v24 = vadd.f32 %v4135_v27, %v4117_v29  ;;  %v7226_v27 = vld [vmem:[%s12455_s2 + $0x160] sm:$0xf]  ;;  %v8204_v29 = vld [vmem:[%s12455_s2 + $0x1d4] sm:$0xf0] }
 0x2c0   :  { %v7227_v26 = vor.u32 %v8190_v35, %v7226_v27  ;;  %v7283_v49 = vor.u32 %v8204_v29, %v7282_v53  ;;  %v4122_v27 = vadd.f32 %v4121_v43, %v4103_v60  ;;  %v8198_v43 = vld [vmem:[%s12455_s2 + $0x1a4] sm:$0xf0] }
 0x2c2   :  { %v10919_v33 = vpop.f32.mrf.mxu1  ;;  %4996 = vmatpush.bf16.msrb.mxu0 %v7227_v26  ;;  %5016 = vmatpush.bf16.msrb.mxu1 %v7283_v49  ;;  %v8202_v26 = vld [vmem:[%s12455_s2 + $0x1c4] sm:$0xf0] }
 0x2c3   :  { %v8146_v49 = vld [vmem:[%s12455_s2 + $0x4] sm:$0xf0] }
 0x2c4   :  { %v4154_v11 = vpop.f32.mrf.mxu0 }
 0x2c5   :  { %v4155_v51 = vadd.f32 %v4154_v11, %v4136_v24  ;;  %v7138_v11 = vld [vmem:[%s12455_s2 + $0xb0] sm:$0xf]  ;;  %v4048_v24 = vadd.f32 %v10862_v9, %v4029_v19  ;;  %v7210_v9 = vld [vmem:[%s12455_s2 + $0x140] sm:$0xf]  ;;  %v7275_v19 = vor.u32 %v8202_v26, %v7274_v41 }
 0x2c6   :  { %v4137_v12 = vpop.f32.mrf.mxu3  ;;  %v7139_v1 = vor.u32 %v8168_v6, %v7138_v11  ;;  %4997 = vmatpush.bf16.msrb.mxu0 %v7219_v25  ;;  %v7202_v11 = vld [vmem:[%s12455_s2 + $0x130] sm:$0xf]  ;;  %v8184_v6 = vld [vmem:[%s12455_s2 + $0x134] sm:$0xf0]  ;;  %v7050_v25 = vld [vmem:[%s12455_s2] sm:$0xf] }
 0x2c7   :  { %v4138_v8 = vadd.f32 %v4137_v12, %v4119_v40  ;;  %v4185_v12 = vmax.f32 %v10995_v3, 0.0  ;;  %5017 = vmatpush.bf16.msrb.mxu1 %v7275_v19  ;;  %v7203_v29 = vor.u32 %v8184_v6, %v7202_v11 }
 0x2c8   :  { %4980 = vmatpush.bf16.msra.mxu3 %v7139_v1  ;;  %v7266_v1 = vld [vmem:[%s12455_s2 + $0x1b0] sm:$0xf] }
 0x2c9   :  { %v7267_v3 = vor.u32 %v8200_v42, %v7266_v1  ;;  %v7178_v1 = vld [vmem:[%s12455_s2 + $0x100] sm:$0xf]  ;;  %v8178_v42 = vld [vmem:[%s12455_s2 + $0x104] sm:$0xf0] }
 0x2ca   :  { %v4173_v52 = vpop.f32.mrf.mxu1 }
 0x2cb   :  { %v4174_v47 = vadd.f32 %v4173_v52, %v4155_v51  ;;  %v4067_v51 = vadd.f32 %v10871_v39, %v4048_v24  ;;  %v7211_v39 = vor.u32 %v8186_v15, %v7210_v9  ;;  %v7122_v52 = vld [vmem:[%s12455_s2 + $0x90] sm:$0xf]  ;;  %5018 = vmatpush.bf16.msrb.mxu1 %v7267_v3 }
 0x2cc   :  { %v4156_v30 = vpop.f32.mrf.mxu0  ;;  %4981 = vmatpush.bf16.msra.mxu3 %v7131_v59  ;;  %v7258_v59 = vld [vmem:[%s12455_s2 + $0x1a0] sm:$0xf] }
 0x2cd   :  { %v4184_v17 = vmax.f32 %v4174_v47, 0.0  ;;  %v4157_v7 = vadd.f32 %v4156_v30, %v4138_v8  ;;  %v4086_v16 = vadd.f32 %v10895_v48, %v4067_v51  ;;  %v3953_v30 = vadd.f32 %v10837_v46, %v3934_v37  ;;  %4998 = vmatpush.bf16.msrb.mxu0 %v7211_v39  ;;  %v8162_v8 = vld [vmem:[%s12455_s2 + $0x84] sm:$0xf0]  ;;  %v7362_v37 = vld [vmem:[%s12455_s2 + $0x270] sm:$0xf] }
 0x2ce   :  { %v4140_v0 = vpop.f32.mrf.mxu3  ;;  %v7123_v46 = vor.u32 %v8164_v31, %v7122_v52  ;;  %v7115_v24 = vor.u32 %v8162_v8, %v7114_v56  ;;  %v8222_v31 = vld [vmem:[%s12455_s2 + $0x264] sm:$0xf0] }
 0x2cf   :  { %v4191_v23 = vpack.c.bf16 %v4184_v17, %v4183_v5  ;;  %v4141_v40 = vadd.f32 %v4140_v0, %v4122_v27  ;;  %v4105_v53 = vadd.f32 %v10919_v33, %v4086_v16  ;;  %v7051_v5 = vor.u32 %v8146_v49, %v7050_v25  ;;  %v7194_v17 = vld [vmem:[%s12455_s2 + $0x120] sm:$0xf]  ;;  %v7426_v27 = vld [vmem:[%s12455_s2 + $0x2f0] sm:$0xf]  ;;  %v8194_v56 = vld [vmem:[%s12455_s2 + $0x184] sm:$0xf0] }
 0x2d0   :  { %4982 = vmatpush.bf16.msra.mxu3 %v7123_v46  ;;  %v3972_v21 = vadd.f32 %v10843_v28, %v3953_v30  ;;  %v7195_v60 = vor.u32 %v8182_v62, %v7194_v17  ;;  %v7259_v28 = vor.u32 %v8198_v43, %v7258_v59  ;;  %v8196_v30 = vld [vmem:[%s12455_s2 + $0x194] sm:$0xf0]  ;;  %v7410_v62 = vld [vmem:[%s12455_s2 + $0x2d0] sm:$0xf] }
 0x2d1   :  { %v4196_v54 = vshrl.u32 %v4191_v23, 16  ;;  %v4199_v50 = vshll.u32 %v4191_v23, 16  ;;  %4999 = vmatpush.bf16.msrb.mxu0 %v7203_v29  ;;  %v4123_v23 = vpop.f32.mrf.mxu2  ;;  %4964 = vmatpush.bf16.msra.mxu2 %v7051_v5  ;;  %v7346_v5 = vld [vmem:[%s12455_s2 + $0x250] sm:$0xf] }
 0x2d2   :  { %v4175_v35 = vpop.f32.mrf.mxu1  ;;  %v4124_v9 = vadd.f32 %v4123_v23, %v4105_v53  ;;  %5019 = vmatpush.bf16.msrb.mxu1 %v7259_v28  ;;  %v7242_v53 = vld [vmem:[%s12455_s2 + $0x180] sm:$0xf]  ;;  %v7347_v17 = vor.u32 %v8220_v38, %v7346_v5  ;;  %v7164_v5 = vld [vmem:[%s12455_s2 + $0xe8] sm:$0xf0]  ;;  %v7330_v38 = vld [vmem:[%s12455_s2 + $0x230] sm:$0xf] }
 0x2d3   :  { %v11033_v61 = vrot.slane %v4196_v54, 7  ;;  %v4176_v48 = vadd.f32 %v4175_v35, %v4157_v7  ;;  %v3991_v54 = vadd.f32 %v10847_v13, %v3972_v21  ;;  %v8240_v35 = vld [vmem:[%s12455_s2 + $0x2f4] sm:$0xf0]  ;;  %v7243_v8 = vor.u32 %v8194_v56, %v7242_v53 }
 0x2d4   :  { %v4159_v55 = vpop.f32.mrf.mxu0  ;;  %4983 = vmatpush.bf16.msra.mxu3 %v7115_v24  ;;  %v7427_v13 = vor.u32 %v8240_v35, %v7426_v27  ;;  %v8175_v27 = vld [vmem:[%s12455_s2 + $0xf4] sm:$0xf] }
 0x2d5   :  { %v4201_v34 = vor.u32 %v4199_v50, %v11033_v61  ;;  %v4186_v47 = vmax.f32 %v4176_v48, 0.0  ;;  %v4160_v58 = vadd.f32 %v4159_v55, %v4141_v40  ;;  %v4202_v63 = vrot.slane %v11033_v61, 4  ;;  %v7186_v55 = vld [vmem:[%s12455_s2 + $0x110] sm:$0xf]  ;;  %v4239_v48 = vld [vmem:[#allocation2 + $0x18] sm:$0x11]  ;;  %5000 = vmatpush.bf16.msrb.mxu0 %v7195_v60 }
 0x2d6   :  { %v4142_v7 = vpop.f32.mrf.mxu3  ;;  %v7250_v61 = vld [vmem:[%s12455_s2 + $0x190] sm:$0xf]  ;;  %v11114_v50 = vadd.f32 %v10851_v14, %v3991_v54  ;;  %v7187_v52 = vor.u32 %v8180_v45, %v7186_v55  ;;  %v8238_v40 = vld [vmem:[%s12455_s2 + $0x2e4] sm:$0xf0]  ;;  %v8236_v60 = vld [vmem:[%s12455_s2 + $0x2d4] sm:$0xf0] }
 0x2d7   :  { %v11070_v36 = vsel %vm9817_vm4, %v4201_v34, %v4235_v20  ;;  %v4192_v33 = vpack.c.bf16 %v4186_v47, %v4185_v12  ;;  %v8224_v12 = vld [vmem:[%s12455_s2 + $0x274] sm:$0xf0]  ;;  %v4143_v19 = vadd.f32 %v4142_v7, %v4124_v9  ;;  %v7251_v34 = vor.u32 %v8196_v30, %v7250_v61  ;;  %v7418_v20 = vld [vmem:[%s12455_s2 + $0x2e0] sm:$0xf]  ;;  %v4242_v54 = vld [vmem:[#allocation2 + $0x24] sm:$0xff] }
 0x2d8   :  { %4237 = vst [vmem:[#allocation2] sm:$0xff] %v11070_v36  ;;  %v4353_v51 = vshrl.u32 %v11070_v36, 16  ;;  %v7363_v16 = vor.u32 %v8224_v12, %v7362_v37  ;;  %5052 = vmatpush.bf16.msrb.mxu3 %v7427_v13  ;;  %v7355_v47 = vor.u32 %v8222_v31, %v7354_v44  ;;  %v7419_v46 = vor.u32 %v8238_v40, %v7418_v20  ;;  %v8159_v37 = vld [vmem:[%s12455_s2 + $0x74] sm:$0xf]  ;;  %v7108_v12 = vld [vmem:[%s12455_s2 + $0x78] sm:$0xf0] }
 0x2d9   :  { %v4204_v0 = vshrl.u32 %v4192_v33, 16  ;;  %v4207_v41 = vshll.u32 %v4192_v33, 16  ;;  %v4189_v33 = vmax.f32 %v11114_v50, 0.0  ;;  %5001 = vmatpush.bf16.msrb.mxu0 %v7187_v52  ;;  %5020 = vmatpush.bf16.msrb.mxu1 %v7251_v34  ;;  %v4356_v59 = vshll.u32 %v11070_v36, 16  ;;  %v7172_v13 = vld [vmem:[%s12455_s2 + $0xf8] sm:$0xf0] }
 0x2da   :  { %v4178_v15 = vpop.f32.mrf.mxu1  ;;  %5033 = vmatpush.bf16.msrb.mxu2 %v7363_v16  ;;  %v4355_v21 = vrot.slane %v4353_v51, 4  ;;  %v7411_v28 = vor.u32 %v8236_v60, %v7410_v62  ;;  %v7111_v16 = vor.u32 %v8159_v37, %v7108_v12  ;;  %v7338_v45 = vld [vmem:[%s12455_s2 + $0x240] sm:$0xf]  ;;  %v8234_v52 = vld [vmem:[%s12455_s2 + $0x2c4] sm:$0xf0] }
 0x2db   :  { %v4206_v39 = vrot.slane %v4204_v0, 7  ;;  %v4179_v26 = vadd.f32 %v4178_v15, %v4160_v58  ;;  %v7179_v58 = vor.u32 %v8178_v42, %v7178_v1  ;;  %v4358_v36 = vrot.slane %v4356_v59, 5  ;;  %v8157_v34 = vld [vmem:[%s12455_s2 + $0x64] sm:$0xf]  ;;  %v7394_v62 = vld [vmem:[%s12455_s2 + $0x2b0] sm:$0xf] }
 0x2dc   :  { %v4161_v4 = vpop.f32.mrf.mxu0  ;;  %5053 = vmatpush.bf16.msrb.mxu3 %v7419_v46  ;;  %v8232_v59 = vld [vmem:[%s12455_s2 + $0x2b4] sm:$0xf0] }
 0x2dd   :  { %v4209_v14 = vor.u32 %v4207_v41, %v4206_v39  ;;  %v4211_v11 = vrot.slane %v4206_v39, 4  ;;  %v4188_v6 = vmax.f32 %v4179_v26, 0.0  ;;  %v4162_v49 = vadd.f32 %v4161_v4, %v4143_v19  ;;  %5002 = vmatpush.bf16.msrb.mxu0 %v7179_v58  ;;  %5021 = vmatpush.bf16.msrb.mxu1 %v7243_v8  ;;  %v8218_v19 = vld [vmem:[%s12455_s2 + $0x244] sm:$0xf0]  ;;  %v7402_v4 = vld [vmem:[%s12455_s2 + $0x2c0] sm:$0xf] }
 0x2de   :  { %5034 = vmatpush.bf16.msrb.mxu2 %v7355_v47  ;;  %v4359_v61 = vor.u32 %v4358_v36, %v4355_v21  ;;  %v8173_v58 = vld [vmem:[%s12455_s2 + $0xe4] sm:$0xf]  ;;  %v4246_v21 = vld [vmem:[#allocation2 + $0x3c] sm:$0x11]  ;;  %v7395_v12 = vor.u32 %v8232_v59, %v7394_v62 }
 0x2df   :  { %v11142_v29 = vsel %vm9630_vm6, %v4202_v63, %v4209_v14  ;;  %v4240_v3 = vsel %vm9729_vm12, %v4211_v11, %v4239_v48  ;;  %v4193_v25 = vpack.c.bf16 %v4188_v6, %v4187_v57  ;;  %v7034_v41 = vld [vmem:[#allocation2] sm:$0xf]  ;;  %v8241_v26 = vld [vmem:[#allocation2 + $0x4] sm:$0xf]  ;;  %v7175_v48 = vor.u32 %v8175_v27, %v7172_v13  ;;  %v7156_v36 = vld [vmem:[%s12455_s2 + $0xd8] sm:$0xf0] }
 0x2e0   :  { %4238 = vst [vmem:[#allocation2 + $0xc] sm:$0xff] %v11142_v29  ;;  %v4362_v43 = vshll.u32 %v11142_v29, 16  ;;  %v4366_v23 = vshrl.u32 %v11142_v29, 16  ;;  %v4410_v51 = vrot.slane %v11142_v29, 5  ;;  %5054 = vmatpush.bf16.msrb.mxu3 %v7411_v28  ;;  %v7339_v11 = vor.u32 %v8218_v19, %v7338_v45  ;;  %v7140_v62 = vld [vmem:[%s12455_s2 + $0xb8] sm:$0xf0] }
 0x2e1   :  { %4241 = vst [vmem:[#allocation2 + $0x18] sm:$0x11] %v4240_v3  ;;  %v4213_v57 = vshrl.u32 %v4193_v25, 16  ;;  %v4216_v63 = vshll.u32 %v4193_v25, 16  ;;  %5071 = vmatpush.bf16.msra.mxu0 %v7111_v16  ;;  %v7403_v6 = vor.u32 %v8234_v52, %v7402_v4  ;;  %v4360_v46 = vrot.slane %v4359_v61, 4  ;;  %5090 = vmatpush.bf16.msra.mxu1 %v7175_v48 }
 0x2e2   :  { %v4180_v24 = vpop.f32.mrf.mxu1  ;;  %5035 = vmatpush.bf16.msrb.mxu2 %v7347_v17  ;;  %v4364_v9 = vrot.slane %v4362_v43, 5  ;;  %v4368_v15 = vrot.slane %v4366_v23, 4  ;;  %v7100_v25 = vld [vmem:[%s12455_s2 + $0x68] sm:$0xf0]  ;;  %v8216_v17 = vld [vmem:[%s12455_s2 + $0x234] sm:$0xf0] }
 0x2e3   :  { %v11168_v0 = vrot.slane %v4213_v57, 7  ;;  %v4181_v7 = vadd.f32 %v4180_v24, %v4162_v49  ;;  %v7167_v24 = vor.u32 %v8173_v58, %v7164_v5  ;;  %v7331_v60 = vor.u32 %v8216_v17, %v7330_v38  ;;  %v8155_v43 = vld [vmem:[%s12455_s2 + $0x54] sm:$0xf]  ;;  %v7092_v23 = vld [vmem:[%s12455_s2 + $0x58] sm:$0xf0] }
 0x2e4   :  { %v4369_v50 = vor.u32 %v4368_v15, %v4364_v9  ;;  %5055 = vmatpush.bf16.msrb.mxu3 %v7403_v6  ;;  %v4365_v56 = vsel %vm10050_vm15, %v4360_v46, %v4364_v9  ;;  %v7095_v27 = vor.u32 %v8155_v43, %v7092_v23  ;;  %v7084_v4 = vld [vmem:[%s12455_s2 + $0x48] sm:$0xf0]  ;;  %v7314_v6 = vld [vmem:[%s12455_s2 + $0x210] sm:$0xf]  ;;  %v8167_v58 = vld [vmem:[%s12455_s2 + $0xb4] sm:$0xf] }
 0x2e5   :  { %v4218_v35 = vor.u32 %v4216_v63, %v11168_v0  ;;  %v4219_v55 = vrot.slane %v11168_v0, 4  ;;  %v4190_v39 = vmax.f32 %v4181_v7, 0.0  ;;  %v4440_v63 = vunpack.c.l.b16 %v4365_v56  ;;  %5091 = vmatpush.bf16.msra.mxu1 %v7167_v24  ;;  %v7378_v46 = vld [vmem:[%s12455_s2 + $0x290] sm:$0xf]  ;;  %v8210_v24 = vld [vmem:[%s12455_s2 + $0x204] sm:$0xf0] }
 0x2e6   :  { %v4370_v1 = vrot.slane %v4369_v50, 4  ;;  %5036 = vmatpush.bf16.msrb.mxu2 %v7339_v11  ;;  %v4441_v15 = vunpack.c.h.b16 %v4365_v56  ;;  %v8230_v50 = vld [vmem:[%s12455_s2 + $0x2a4] sm:$0xf0]  ;;  %v8151_v56 = vld [vmem:[%s12455_s2 + $0x34] sm:$0xf] }
 0x2e7   :  { %v11199_v30 = vsel %vm9817_vm4, %v4218_v35, %v4242_v54  ;;  %v4194_v44 = vpack.c.bf16 %v4190_v39, %v4189_v33  ;;  %v8242_v31 = vld [vmem:[#allocation2 + $0x8] sm:$0xf0]  ;;  %v7036_v14 = vld [vmem:[#allocation2 + $0xc] sm:$0xf0]  ;;  %v7103_v33 = vor.u32 %v8157_v34, %v7100_v25  ;;  %v8171_v54 = vld [vmem:[%s12455_s2 + $0xd4] sm:$0xf] }
 0x2e8   :  { %4244 = vst [vmem:[#allocation2 + $0x24] sm:$0xff] %v11199_v30  ;;  %v11205_v20 = vor.u32 %v8242_v31, %v7034_v41  ;;  %v11207_v40 = vor.u32 %v8241_v26, %v7036_v14  ;;  %v11209_v47 = vld [vmem:[#allocation2 + $0x18] sm:$0x11]  ;;  %v4377_v49 = vshrl.u32 %v11199_v30, 16  ;;  %v7322_v35 = vld [vmem:[%s12455_s2 + $0x220] sm:$0xf]  ;;  %5056 = vmatpush.bf16.msrb.mxu3 %v7395_v12  ;;  %v7159_v45 = vor.u32 %v8171_v54, %v7156_v36 }
 0x2e9   :  { %v4221_v42 = vshrl.u32 %v4194_v44, 16  ;;  %v4224_v53 = vshll.u32 %v4194_v44, 16  ;;  %v4372_v3 = vshll.u32 %v11209_v47, 16  ;;  %5072 = vmatpush.bf16.msra.mxu0 %v7103_v33  ;;  %v8214_v39 = vld [vmem:[%s12455_s2 + $0x224] sm:$0xf0] }
 0x2ea   :  { %4965 = vmatmul.bf16.vlgmr.msra.gmra.mxu2 %v11205_v20  ;;  %4984 = vmatmul.bf16.vlgmr.msra.gmra.mxu3 %v11207_v40  ;;  %v7386_v41 = vld [vmem:[%s12455_s2 + $0x2a0] sm:$0xf]  ;;  %v7323_v61 = vor.u32 %v8214_v39, %v7322_v35  ;;  %v4379_v52 = vrot.slane %v4377_v49, 4  ;;  %v8169_v31 = vld [vmem:[%s12455_s2 + $0xc4] sm:$0xf] }
 0x2eb   :  { %v4223_v57 = vrot.slane %v4221_v42, 7  ;;  %v4374_v8 = vrot.slane %v4372_v3, 5  ;;  %5037 = vmatpush.bf16.msrb.mxu2 %v7331_v60  ;;  %v7387_v0 = vor.u32 %v8230_v50, %v7386_v41  ;;  %v7148_v14 = vld [vmem:[%s12455_s2 + $0xc8] sm:$0xf0]  ;;  %v8212_v34 = vld [vmem:[%s12455_s2 + $0x214] sm:$0xf0]  ;;  %5092 = vmatpush.bf16.msra.mxu1 %v7159_v45 }
 0x2ec   :  { %v7151_v11 = vor.u32 %v8169_v31, %v7148_v14  ;;  %v8228_v42 = vld [vmem:[%s12455_s2 + $0x294] sm:$0xf0]  ;;  %v7076_v33 = vld [vmem:[%s12455_s2 + $0x38] sm:$0xf0]  ;;  %v7370_v60 = vld [vmem:[%s12455_s2 + $0x280] sm:$0xf] }
 0x2ed   :  { %v4226_v7 = vor.u32 %v4224_v53, %v4223_v57  ;;  %v4228_v28 = vrot.slane %v4223_v57, 4  ;;  %v4375_v37 = vsel %vm10050_vm15, %v4370_v1, %v4374_v8  ;;  %5073 = vmatpush.bf16.msra.mxu0 %v7095_v27  ;;  %v7315_v1 = vor.u32 %v8212_v34, %v7314_v6  ;;  %5057 = vmatpush.bf16.msrb.mxu3 %v7387_v0  ;;  %v4400_v41 = vld [vmem:[#allocation2] sm:$0xee]  ;;  %v7236_v31 = vld [vmem:[%s12455_s2 + $0x178] sm:$0xf0] }
 0x2ee   :  { %v4442_v9 = vunpack.c.l.b16 %v4375_v37  ;;  %v4443_v16 = vunpack.c.h.b16 %v4375_v37  ;;  %v4380_v53 = vshll.u32 %v11199_v30, 16  ;;  %v7379_v49 = vor.u32 %v8228_v42, %v7378_v46  ;;  %v8226_v37 = vld [vmem:[%s12455_s2 + $0x284] sm:$0xf0]  ;;  %v8165_v50 = vld [vmem:[%s12455_s2 + $0xa4] sm:$0xf] }
 0x2ef   :  { %v11265_v26 = vsel %vm9630_vm6, %v4219_v55, %v4226_v7  ;;  %v4247_v13 = vsel %vm9729_vm12, %v4228_v28, %v4246_v21  ;;  %v8153_v55 = vld [vmem:[%s12455_s2 + $0x44] sm:$0xf]  ;;  %5038 = vmatpush.bf16.msrb.mxu2 %v7323_v61  ;;  %v8243_v5 = vld [vmem:[#allocation2 + $0x28] sm:$0xf]  ;;  %v7079_v17 = vor.u32 %v8151_v56, %v7076_v33  ;;  %v7143_v21 = vor.u32 %v8167_v58, %v7140_v62  ;;  %v8207_v14 = vld [vmem:[%s12455_s2 + $0x1f4] sm:$0xf] }
 0x2f0   :  { %4245 = vst [vmem:[#allocation2 + $0x30] sm:$0xff] %v11265_v26  ;;  %v11273_v48 = vpack.c.b16 %v4442_v9, %v4440_v63  ;;  %v11275_v19 = vpack.c.b16 %v4443_v16, %v4441_v15  ;;  %v7087_v44 = vor.u32 %v8153_v55, %v7084_v4  ;;  %v4386_v3 = vshll.u32 %v11265_v26, 16  ;;  %v7042_v30 = vld [vmem:[#allocation2 + $0x24] sm:$0xf]  ;;  %v7306_v63 = vld [vmem:[%s12455_s2 + $0x200] sm:$0xf]  ;;  %5093 = vmatpush.bf16.msra.mxu1 %v7151_v11 }
 0x2f1   :  { %4248 = vst [vmem:[#allocation2 + $0x3c] sm:$0x11] %v4247_v13  ;;  %v4390_v25 = vshrl.u32 %v11265_v26, 16  ;;  %v4382_v38 = vrot.slane %v4380_v53, 5  ;;  %v7307_v28 = vor.u32 %v8210_v24, %v7306_v63  ;;  %5058 = vmatpush.bf16.msrb.mxu3 %v7379_v49  ;;  %v7371_v9 = vor.u32 %v8226_v37, %v7370_v60  ;;  %v8149_v15 = vld [vmem:[%s12455_s2 + $0x24] sm:$0xf] }
 0x2f2   :  { %5003 = vmatmul.bf16.vlgmr.msrb.gmra.mxu0 %v11273_v48  ;;  %5022 = vmatmul.bf16.vlgmr.msrb.gmra.mxu1 %v11275_v19  ;;  %v4388_v57 = vrot.slane %v4386_v3, 5  ;;  %v7068_v16 = vld [vmem:[%s12455_s2 + $0x28] sm:$0xf0]  ;;  %v7030_v45 = vrot.slane %v4400_v41, 9  ;;  %v4412_v61 = vrot.slane %v4410_v51, 4  ;;  %v4413_v4 = vrot.slane %v11209_v47, 5 }
 0x2f3   :  { %5074 = vmatpush.bf16.msra.mxu0 %v7087_v44  ;;  %v4392_v8 = vrot.slane %v4390_v25, 4  ;;  %5039 = vmatpush.bf16.msrb.mxu2 %v7315_v1  ;;  %v4383_v23 = vor.u32 %v4382_v38, %v4379_v52  ;;  %v7071_v39 = vor.u32 %v8149_v15, %v7068_v16  ;;  %v7132_v52 = vld [vmem:[%s12455_s2 + $0xa8] sm:$0xf0]  ;;  %v8191_v44 = vld [vmem:[%s12455_s2 + $0x174] sm:$0xf] }
 0x2f4   :  { %5094 = vmatpush.bf16.msra.mxu1 %v7143_v21  ;;  %v7300_v47 = vld [vmem:[%s12455_s2 + $0x1f8] sm:$0xf0]  ;;  %v8147_v34 = vld [vmem:[%s12455_s2 + $0x14] sm:$0xf]  ;;  %v7135_v25 = vor.u32 %v8165_v50, %v7132_v52  ;;  %v8189_v56 = vld [vmem:[%s12455_s2 + $0x164] sm:$0xf]  ;;  %v7239_v58 = vor.u32 %v8191_v44, %v7236_v31 }
 0x2f5   :  { %v4393_v7 = vor.u32 %v4392_v8, %v4388_v57  ;;  %v4384_v27 = vrot.slane %v4383_v23, 4  ;;  %5059 = vmatpush.bf16.msrb.mxu3 %v7371_v9  ;;  %v7060_v46 = vld [vmem:[%s12455_s2 + $0x18] sm:$0xf0]  ;;  %v8163_v1 = vld [vmem:[%s12455_s2 + $0x94] sm:$0xf] }
 0x2f6   :  { %v7124_v49 = vld [vmem:[%s12455_s2 + $0x98] sm:$0xf0]  ;;  %v7228_v33 = vld [vmem:[%s12455_s2 + $0x168] sm:$0xf0]  ;;  %v8205_v38 = vld [vmem:[%s12455_s2 + $0x1e4] sm:$0xf] }
 0x2f7   :  { %v8244_v59 = vld [vmem:[#allocation2 + $0x2c] sm:$0xf0]  ;;  %v7044_v43 = vld [vmem:[#allocation2 + $0x30] sm:$0xf0]  ;;  %5075 = vmatpush.bf16.msra.mxu0 %v7079_v17  ;;  %v4394_v13 = vrot.slane %v4393_v7, 4  ;;  %v4389_v0 = vsel %vm10050_vm15, %v4384_v27, %v4388_v57  ;;  %5040 = vmatpush.bf16.msrb.mxu2 %v7307_v28  ;;  %v7127_v21 = vor.u32 %v8163_v1, %v7124_v49  ;;  %v4411_v27 = vsel %vm10071_vm3, %v7030_v45, %v4410_v51 }
 0x2f8   :  { %v11330_v12 = vor.u32 %v8244_v59, %v7042_v30  ;;  %v11332_v54 = vor.u32 %v8243_v5, %v7044_v43  ;;  %v11334_v36 = vld [vmem:[#allocation2 + $0x3c] sm:$0x11]  ;;  %v4444_v6 = vunpack.c.l.b16 %v4389_v0  ;;  %v4445_v53 = vunpack.c.h.b16 %v4389_v0  ;;  %v7292_v57 = vld [vmem:[%s12455_s2 + $0x1e8] sm:$0xf0]  ;;  %v8145_v8 = vld [vmem:[%s12455_s2 + $0x4] sm:$0xf]  ;;  %5095 = vmatpush.bf16.msra.mxu1 %v7135_v25 }
 0x2f9   :  { %v4396_v35 = vshll.u32 %v11334_v36, 16  ;;  %v7303_v30 = vor.u32 %v8207_v14, %v7300_v47  ;;  %v7063_v5 = vor.u32 %v8147_v34, %v7060_v46  ;;  %v7052_v63 = vld [vmem:[%s12455_s2 + $0x8] sm:$0xf0]  ;;  %v8161_v24 = vld [vmem:[%s12455_s2 + $0x84] sm:$0xf]  ;;  %v4414_v59 = vsel %vm10071_vm3, %v4412_v61, %v4413_v4 }
 0x2fa   :  { %4970 = vmatmul.bf16.gmra.mxu2 %v11330_v12  ;;  %4989 = vmatmul.bf16.gmra.mxu3 %v11332_v54  ;;  %v7116_v60 = vld [vmem:[%s12455_s2 + $0x88] sm:$0xf0]  ;;  %v7231_v43 = vor.u32 %v8189_v56, %v7228_v33  ;;  %v7295_v23 = vor.u32 %v8205_v38, %v7292_v57  ;;  %v8187_v7 = vld [vmem:[%s12455_s2 + $0x154] sm:$0xf]  ;;  %v7220_v28 = vld [vmem:[%s12455_s2 + $0x158] sm:$0xf0]  ;;  %v4459_v41 = vunpack.c.h.b16 %v4414_v59  ;;  %v4456_v52 = vunpack.c.l.b16 %v4411_v27 }
 0x2fb   :  { %v4398_v55 = vrot.slane %v4396_v35, 5  ;;  %5076 = vmatpush.bf16.msra.mxu0 %v7071_v39  ;;  %5109 = vmatpush.bf16.msra.mxu2 %v7239_v58  ;;  %v8203_v37 = vld [vmem:[%s12455_s2 + $0x1d4] sm:$0xf]  ;;  %v7284_v9 = vld [vmem:[%s12455_s2 + $0x1d8] sm:$0xf0]  ;;  %v7055_v35 = vor.u32 %v8145_v8, %v7052_v63  ;;  %v4458_v39 = vunpack.c.l.b16 %v4414_v59  ;;  %v7223_v29 = vor.u32 %v8187_v7, %v7220_v28 }
 0x2fc   :  { %5128 = vmatpush.bf16.msra.mxu3 %v7303_v30  ;;  %v8223_v15 = vld [vmem:[%s12455_s2 + $0x274] sm:$0xf]  ;;  %v7364_v16 = vld [vmem:[%s12455_s2 + $0x278] sm:$0xf0]  ;;  %5096 = vmatpush.bf16.msra.mxu1 %v7127_v21  ;;  %v8185_v51 = vld [vmem:[%s12455_s2 + $0x144] sm:$0xf]  ;;  %v4457_v44 = vunpack.c.h.b16 %v4411_v27 }
 0x2fd   :  { %v4399_v11 = vsel %vm10050_vm15, %v4394_v13, %v4398_v55  ;;  %v7119_v13 = vor.u32 %v8161_v24, %v7116_v60  ;;  %v7367_v61 = vor.u32 %v8223_v15, %v7364_v16  ;;  %v8239_v50 = vld [vmem:[%s12455_s2 + $0x2f4] sm:$0xf]  ;;  %v7428_v0 = vld [vmem:[%s12455_s2 + $0x2f8] sm:$0xf0]  ;;  %v7287_v55 = vor.u32 %v8203_v37, %v7284_v9  ;;  %v8221_v45 = vld [vmem:[%s12455_s2 + $0x264] sm:$0xf] }
 0x2fe   :  { %v4446_v42 = vunpack.c.l.b16 %v4399_v11  ;;  %v4447_v3 = vunpack.c.h.b16 %v4399_v11  ;;  %v7356_v4 = vld [vmem:[%s12455_s2 + $0x268] sm:$0xf0]  ;;  %v8201_v14 = vld [vmem:[%s12455_s2 + $0x1c4] sm:$0xf]  ;;  %v7431_v11 = vor.u32 %v8239_v50, %v7428_v0  ;;  %v11462_v34 = vpack.c.b16 %v4459_v41, %v4457_v44  ;;  %v8183_v25 = vld [vmem:[%s12455_s2 + $0x134] sm:$0xf] }
 0x2ff   :  { %5077 = vmatpush.bf16.msra.mxu0 %v7063_v5  ;;  %5110 = vmatpush.bf16.msra.mxu2 %v7231_v43  ;;  %v7212_v31 = vld [vmem:[%s12455_s2 + $0x148] sm:$0xf0]  ;;  %v7359_v46 = vor.u32 %v8221_v45, %v7356_v4  ;;  %v8237_v1 = vld [vmem:[%s12455_s2 + $0x2e4] sm:$0xf]  ;;  %v8219_v49 = vld [vmem:[%s12455_s2 + $0x254] sm:$0xf] }
 0x300   :  { %v11397_v17 = vpack.c.b16 %v4446_v42, %v4444_v6  ;;  %v11399_v62 = vpack.c.b16 %v4447_v3, %v4445_v53  ;;  %5129 = vmatpush.bf16.msra.mxu3 %v7295_v23  ;;  %v7276_v47 = vld [vmem:[%s12455_s2 + $0x1c8] sm:$0xf0]  ;;  %v11460_v6 = vpack.c.b16 %v4458_v39, %v4456_v52  ;;  %5097 = vmatpush.bf16.msra.mxu1 %v7119_v13  ;;  %v7348_v56 = vld [vmem:[%s12455_s2 + $0x258] sm:$0xf0]  ;;  %v8199_v58 = vld [vmem:[%s12455_s2 + $0x1b4] sm:$0xf] }
 0x301   :  { %v7420_v42 = vld [vmem:[%s12455_s2 + $0x2e8] sm:$0xf0]  ;;  %v7215_v53 = vor.u32 %v8185_v51, %v7212_v31  ;;  %v7279_v3 = vor.u32 %v8201_v14, %v7276_v47  ;;  %v7204_v33 = vld [vmem:[%s12455_s2 + $0x138] sm:$0xf0]  ;;  %v4417_v5 = vrot.slane %v11265_v26, 5  ;;  %v4420_v38 = vrot.slane %v11334_v36, 5 }
 0x302   :  { %5008 = vmatmul.bf16.gmra.mxu0 %v11397_v17  ;;  %5027 = vmatmul.bf16.gmra.mxu1 %v11399_v62  ;;  %v7268_v30 = vld [vmem:[%s12455_s2 + $0x1b8] sm:$0xf0]  ;;  %v7423_v57 = vor.u32 %v8237_v1, %v7420_v42  ;;  %v4401_v8 = vld [vmem:[#allocation2 + $0x24] sm:$0xee]  ;;  %v7351_v21 = vor.u32 %v8219_v49, %v7348_v56  ;;  %v8235_v63 = vld [vmem:[%s12455_s2 + $0x2d4] sm:$0xf]  ;;  %v7207_v60 = vor.u32 %v8183_v25, %v7204_v33 }
 0x303   :  { %5078 = vmatpush.bf16.msra.mxu0 %v7055_v35  ;;  %5111 = vmatpush.bf16.msra.mxu2 %v7223_v29  ;;  %v7412_v24 = vld [vmem:[%s12455_s2 + $0x2d8] sm:$0xf0]  ;;  %v7271_v59 = vor.u32 %v8199_v58, %v7268_v30  ;;  %v8181_v26 = vld [vmem:[%s12455_s2 + $0x124] sm:$0xf]  ;;  %v7340_v43 = vld [vmem:[%s12455_s2 + $0x248] sm:$0xf0] }
 0x304   :  { %5130 = vmatpush.bf16.msra.mxu3 %v7287_v55  ;;  %5166 = vmatpush.bf16.msrb.mxu1 %v7431_v11  ;;  %v8217_v36 = vld [vmem:[%s12455_s2 + $0x244] sm:$0xf]  ;;  %v7196_v23 = vld [vmem:[%s12455_s2 + $0x128] sm:$0xf0]  ;;  %v7031_v37 = vrot.slane %v4401_v8, 9  ;;  %v4419_v9 = vrot.slane %v4417_v5, 4  ;;  %v7415_v15 = vor.u32 %v8235_v63, %v7412_v24 }
 0x305   :  { %v8197_v7 = vld [vmem:[%s12455_s2 + $0x1a4] sm:$0xf]  ;;  %v7260_v28 = vld [vmem:[%s12455_s2 + $0x1a8] sm:$0xf0]  ;;  %v7343_v16 = vor.u32 %v8217_v36, %v7340_v43  ;;  %v7199_v41 = vor.u32 %v8181_v26, %v7196_v23  ;;  %v8215_v50 = vld [vmem:[%s12455_s2 + $0x234] sm:$0xf] }
 0x306   :  { %v8233_v27 = vld [vmem:[%s12455_s2 + $0x2c4] sm:$0xf]  ;;  %v7404_v35 = vld [vmem:[%s12455_s2 + $0x2c8] sm:$0xf0]  ;;  %v4421_v39 = vsel %vm10071_vm3, %v4419_v9, %v4420_v38  ;;  %v7263_v13 = vor.u32 %v8197_v7, %v7260_v28  ;;  %v7332_v0 = vld [vmem:[%s12455_s2 + $0x238] sm:$0xf0]  ;;  %v4418_v45 = vsel %vm10071_vm3, %v7031_v37, %v4417_v5 }
 0x307   :  { %5147 = vmatpush.bf16.msrb.mxu0 %v7367_v61  ;;  %5112 = vmatpush.bf16.msra.mxu2 %v7215_v53  ;;  %v8179_v61 = vld [vmem:[%s12455_s2 + $0x114] sm:$0xf]  ;;  %v7188_v29 = vld [vmem:[%s12455_s2 + $0x118] sm:$0xf0]  ;;  %v7407_v4 = vor.u32 %v8233_v27, %v7404_v35  ;;  %v4463_v52 = vunpack.c.h.b16 %v4421_v39  ;;  %v8177_v11 = vld [vmem:[%s12455_s2 + $0x104] sm:$0xf]  ;;  %v4460_v42 = vunpack.c.l.b16 %v4418_v45  ;;  %v4461_v53 = vunpack.c.h.b16 %v4418_v45 }
 0x308   :  { %5131 = vmatpush.bf16.msra.mxu3 %v7279_v3  ;;  %5167 = vmatpush.bf16.msrb.mxu1 %v7423_v57  ;;  %v8195_v55 = vld [vmem:[%s12455_s2 + $0x194] sm:$0xf]  ;;  %v7252_v51 = vld [vmem:[%s12455_s2 + $0x198] sm:$0xf0]  ;;  %v7191_v14 = vor.u32 %v8179_v61, %v7188_v29  ;;  %v7324_v1 = vld [vmem:[%s12455_s2 + $0x228] sm:$0xf0] }
 0x309   :  { %v8231_v44 = vld [vmem:[%s12455_s2 + $0x2b4] sm:$0xf]  ;;  %v7396_v31 = vld [vmem:[%s12455_s2 + $0x2b8] sm:$0xf0]  ;;  %v7255_v47 = vor.u32 %v8195_v55, %v7252_v51  ;;  %v7180_v3 = vld [vmem:[%s12455_s2 + $0x108] sm:$0xf0]  ;;  %v4467_v58 = vpack.c.b16 %v4463_v52, %v4461_v53 }
 0x30a   :  { %5041 = vmatmul.bf16.vlgmr.msrb.gmra.mxu2 %v11460_v6  ;;  %5060 = vmatmul.bf16.vlgmr.msrb.gmra.mxu3 %v11462_v34  ;;  %v8193_v25 = vld [vmem:[%s12455_s2 + $0x184] sm:$0xf]  ;;  %v7244_v49 = vld [vmem:[%s12455_s2 + $0x188] sm:$0xf0]  ;;  %v7399_v56 = vor.u32 %v8231_v44, %v7396_v31  ;;  %v7183_v57 = vor.u32 %v8177_v11, %v7180_v3  ;;  %v7316_v63 = vld [vmem:[%s12455_s2 + $0x218] sm:$0xf0] }
 0x30b   :  { %5148 = vmatpush.bf16.msrb.mxu0 %v7359_v46  ;;  %5113 = vmatpush.bf16.msra.mxu2 %v7207_v60  ;;  %v8213_v46 = vld [vmem:[%s12455_s2 + $0x224] sm:$0xf]  ;;  %v7388_v38 = vld [vmem:[%s12455_s2 + $0x2a8] sm:$0xf0]  ;;  %v7247_v8 = vor.u32 %v8193_v25, %v7244_v49  ;;  %v7380_v26 = vld [vmem:[%s12455_s2 + $0x298] sm:$0xf0] }
 0x30c   :  { %5132 = vmatpush.bf16.msra.mxu3 %v7271_v59  ;;  %5168 = vmatpush.bf16.msrb.mxu1 %v7415_v15  ;;  %v7327_v30 = vor.u32 %v8213_v46, %v7324_v1  ;;  %v8229_v5 = vld [vmem:[%s12455_s2 + $0x2a4] sm:$0xf]  ;;  %v8227_v59 = vld [vmem:[%s12455_s2 + $0x294] sm:$0xf]  ;;  %v7308_v43 = vld [vmem:[%s12455_s2 + $0x208] sm:$0xf0] }
 0x30d   :  { %v7391_v24 = vor.u32 %v8229_v5, %v7388_v38  ;;  %v8209_v36 = vld [vmem:[%s12455_s2 + $0x204] sm:$0xf]  ;;  %v7383_v23 = vor.u32 %v8227_v59, %v7380_v26  ;;  %v7372_v37 = vld [vmem:[%s12455_s2 + $0x288] sm:$0xf0]  ;;  %v4345_v51 = vld [vmem:[%s12456_s5] sm:$0x3] }
 0x30e   :  { %v7311_v7 = vor.u32 %v8209_v36, %v7308_v43  ;;  %v8225_v28 = vld [vmem:[%s12455_s2 + $0x284] sm:$0xf]  ;;  %v7605_v1 = vld [vmem:[%s12455_s2 + $0x370] sm:$0xf]  ;;  %v8276_v49 = vld [vmem:[%s12455_s2 + $0x3f4] sm:$0xf0] }
 0x30f   :  { %5149 = vmatpush.bf16.msrb.mxu0 %v7351_v21  ;;  %5114 = vmatpush.bf16.msra.mxu2 %v7199_v41  ;;  %v8211_v21 = vld [vmem:[%s12455_s2 + $0x214] sm:$0xf]  ;;  %v7375_v9 = vor.u32 %v8225_v28, %v7372_v37  ;;  %v7669_v53 = vld [vmem:[%s12455_s2 + $0x3f0] sm:$0xf]  ;;  %v7661_v5 = vld [vmem:[%s12455_s2 + $0x3e0] sm:$0xf] }
 0x310   :  { %5133 = vmatpush.bf16.msra.mxu3 %v7263_v13  ;;  %5169 = vmatpush.bf16.msrb.mxu1 %v7407_v4  ;;  %v7319_v60 = vor.u32 %v8211_v21, %v7316_v63  ;;  %v8274_v38 = vld [vmem:[%s12455_s2 + $0x3e4] sm:$0xf0]  ;;  %v7589_v37 = vld [vmem:[%s12455_s2 + $0x350] sm:$0xf] }
 0x312   :  { %5079 = vmatmul.bf16.vlgmr.msra.gmra.mxu0 %v11205_v20  ;;  %5098 = vmatmul.bf16.vlgmr.msra.gmra.mxu1 %v11207_v40  ;;  %v4462_v20 = vunpack.c.l.b16 %v4421_v39  ;;  %v7335_v40 = vor.u32 %v8215_v50, %v7332_v0 }
 0x313   :  { %5150 = vmatpush.bf16.msrb.mxu0 %v7343_v16  ;;  %5115 = vmatpush.bf16.msra.mxu2 %v7191_v14 }
 0x314   :  { %v4466_v33 = vpack.c.b16 %v4462_v20, %v4460_v42  ;;  %5134 = vmatpush.bf16.msra.mxu3 %v7255_v47  ;;  %5170 = vmatpush.bf16.msrb.mxu1 %v7399_v56  ;;  %v11627_v20 = vperm.slane %v4345_v51, 0  ;;  %v8260_v42 = vld [vmem:[%s12455_s2 + $0x374] sm:$0xf0]  ;;  %v7597_v56 = vld [vmem:[%s12455_s2 + $0x360] sm:$0xf] }
 0x315   :  { %v7606_v25 = vor.u32 %v8260_v42, %v7605_v1  ;;  %v8254_v1 = vld [vmem:[%s12455_s2 + $0x344] sm:$0xf0]  ;;  %v7645_v42 = vld [vmem:[%s12455_s2 + $0x3c0] sm:$0xf] }
 0x317   :  { %5151 = vmatpush.bf16.msrb.mxu0 %v7335_v40  ;;  %5116 = vmatpush.bf16.msra.mxu2 %v7183_v57 }
 0x318   :  { %5135 = vmatpush.bf16.msra.mxu3 %v7247_v8  ;;  %5171 = vmatpush.bf16.msrb.mxu1 %v7391_v24  ;;  %v11668_v8 = vperm.slane %v4345_v51, 1  ;;  %v8308_v51 = vld [vmem:[%s12455_s2 + $0x4f4] sm:$0xf0] }
 0x31a   :  { %5046 = vmatmul.bf16.gmra.mxu2 %v4466_v33  ;;  %5065 = vmatmul.bf16.gmra.mxu3 %v4467_v58 }
 0x31b   :  { %5152 = vmatpush.bf16.msrb.mxu0 %v7327_v30  ;;  %v8258_v30 = vld [vmem:[%s12455_s2 + $0x364] sm:$0xf0]  ;;  %5960 = vmatpush.bf16.msrb.mxu2 %v7606_v25 }
 0x31c   :  { %5172 = vmatpush.bf16.msrb.mxu1 %v7383_v23  ;;  %v7598_v21 = vor.u32 %v8258_v30, %v7597_v56  ;;  %v8270_v25 = vld [vmem:[%s12455_s2 + $0x3c4] sm:$0xf0] }
 0x31f   :  { %5153 = vmatpush.bf16.msrb.mxu0 %v7319_v60  ;;  %v7662_v60 = vor.u32 %v8274_v38, %v7661_v5  ;;  %5961 = vmatpush.bf16.msrb.mxu2 %v7598_v21 }
 0x320   :  { %5173 = vmatpush.bf16.msrb.mxu1 %v7375_v9  ;;  %v8256_v9 = vld [vmem:[%s12455_s2 + $0x354] sm:$0xf0] }
 0x322   :  { %5084 = vmatmul.bf16.gmra.mxu0 %v11330_v12  ;;  %5103 = vmatmul.bf16.gmra.mxu1 %v11332_v54 }
 0x323   :  { %5154 = vmatpush.bf16.msrb.mxu0 %v7311_v7 }
 0x32a   :  { %5117 = vmatmul.bf16.vlgmr.msra.gmra.mxu2 %v11273_v48  ;;  %5136 = vmatmul.bf16.vlgmr.msra.gmra.mxu3 %v11275_v19 }
 0x332   :  { %5155 = vmatmul.bf16.vlgmr.msrb.gmra.mxu0 %v11460_v6  ;;  %5174 = vmatmul.bf16.vlgmr.msrb.gmra.mxu1 %v11462_v34 }
 0x33a   :  { %5122 = vmatmul.bf16.gmra.mxu2 %v11397_v17  ;;  %5141 = vmatmul.bf16.gmra.mxu3 %v11399_v62 }
 0x342   :  { %5160 = vmatmul.bf16.gmra.mxu0 %v4466_v33  ;;  %5179 = vmatmul.bf16.gmra.mxu1 %v4467_v58  ;;  %v7670_v58 = vor.u32 %v8276_v49, %v7669_v53 }
 0x344   :  { %5979 = vmatpush.bf16.msrb.mxu3 %v7670_v58  ;;  %v7646_v58 = vor.u32 %v8270_v25, %v7645_v42 }
 0x348   :  { %5980 = vmatpush.bf16.msrb.mxu3 %v7662_v60  ;;  %v8290_v60 = vld [vmem:[%s12455_s2 + $0x464] sm:$0xf0] }
 0x36d   :  { %v4966_v12 = vpop.f32.mrf.mxu2  ;;  %v4985_v54 = vpop.f32.mrf.mxu3 }
 0x36e   :  { %v4967_v44 = vadd.f32 %v4966_v12, %v11627_v20 }
 0x36f   :  { %v5004_v15 = vpop.f32.mrf.mxu0  ;;  %v5023_v16 = vpop.f32.mrf.mxu1 }
 0x370   :  { %v4986_v47 = vadd.f32 %v4985_v54, %v4967_v44  ;;  %v7590_v54 = vor.u32 %v8256_v9, %v7589_v37  ;;  %v8268_v9 = vld [vmem:[%s12455_s2 + $0x3b4] sm:$0xf0] }
 0x372   :  { %v5005_v3 = vadd.f32 %v5004_v15, %v4986_v47  ;;  %v7653_v15 = vld [vmem:[%s12455_s2 + $0x3d0] sm:$0xf]  ;;  %5962 = vmatpush.bf16.msrb.mxu2 %v7590_v54 }
 0x374   :  { %v5024_v59 = vadd.f32 %v5023_v16, %v5005_v3  ;;  %v8272_v16 = vld [vmem:[%s12455_s2 + $0x3d4] sm:$0xf0] }
 0x375   :  { %v4968_v27 = vpop.f32.mrf.mxu2  ;;  %v4987_v35 = vpop.f32.mrf.mxu3 }
 0x376   :  { %v4969_v33 = vadd.f32 %v4968_v27, %v11627_v20  ;;  %v7733_v27 = vld [vmem:[%s12455_s2 + $0x470] sm:$0xf] }
 0x377   :  { %v5006_v39 = vpop.f32.mrf.mxu0  ;;  %v11608_v48 = vpop.f32.mrf.mxu1 }
 0x378   :  { %v4988_v26 = vadd.f32 %v4987_v35, %v4969_v33 }
 0x37a   :  { %v5007_v12 = vadd.f32 %v5006_v39, %v4988_v26  ;;  %v8292_v39 = vld [vmem:[%s12455_s2 + $0x474] sm:$0xf0] }
 0x37c   :  { %v5026_v49 = vadd.f32 %v11608_v48, %v5007_v12  ;;  %v7725_v48 = vld [vmem:[%s12455_s2 + $0x460] sm:$0xf]  ;;  %v7717_v12 = vld [vmem:[%s12455_s2 + $0x450] sm:$0xf] }
 0x37d   :  { %v4971_v19 = vpop.f32.mrf.mxu2  ;;  %v4990_v41 = vpop.f32.mrf.mxu3 }
 0x37e   :  { %v4972_v57 = vadd.f32 %v4971_v19, %v11627_v20 }
 0x37f   :  { %v5009_v6 = vpop.f32.mrf.mxu0  ;;  %v11610_v13 = vpop.f32.mrf.mxu1 }
 0x380   :  { %v4991_v23 = vadd.f32 %v4990_v41, %v4972_v57 }
 0x382   :  { %v5010_v35 = vadd.f32 %v5009_v6, %v4991_v23  ;;  %v7734_v6 = vor.u32 %v8292_v39, %v7733_v27  ;;  %v7573_v23 = vld [vmem:[%s12455_s2 + $0x330] sm:$0xf] }
 0x384   :  { %5998 = vmatpush.bf16.msra.mxu0 %v7734_v6  ;;  %v5029_v30 = vadd.f32 %v11610_v13, %v5010_v35  ;;  %v7789_v13 = vld [vmem:[%s12455_s2 + $0x4e0] sm:$0xf]  ;;  %v8288_v35 = vld [vmem:[%s12455_s2 + $0x454] sm:$0xf0] }
 0x385   :  { %v11612_v34 = vpop.f32.mrf.mxu2  ;;  %v11614_v17 = vpop.f32.mrf.mxu3 }
 0x386   :  { %v4974_v54 = vadd.f32 %v11612_v34, %v11627_v20 }
 0x387   :  { %v11616_v62 = vpop.f32.mrf.mxu0  ;;  %v11618_v61 = vpop.f32.mrf.mxu1 }
 0x38d   :  { %v5042_v50 = vpop.f32.mrf.mxu2  ;;  %v5061_v0 = vpop.f32.mrf.mxu3 }
 0x38e   :  { %v5043_v7 = vadd.f32 %v5042_v50, %v5024_v59  ;;  %v7654_v50 = vor.u32 %v8272_v16, %v7653_v15 }
 0x38f   :  { %v5080_v29 = vpop.f32.mrf.mxu0  ;;  %v5099_v55 = vpop.f32.mrf.mxu1 }
 0x390   :  { %v5081_v28 = vadd.f32 %v5080_v29, %v11668_v8  ;;  %v11694_v19 = vadd.f32 %v5061_v0, %v5043_v7  ;;  %v7797_v29 = vld [vmem:[%s12455_s2 + $0x4f0] sm:$0xf]  ;;  %5981 = vmatpush.bf16.msrb.mxu3 %v7654_v50  ;;  %v8252_v7 = vld [vmem:[%s12455_s2 + $0x334] sm:$0xf0] }
 0x391   :  { %v7798_v0 = vor.u32 %v8308_v51, %v7797_v29  ;;  %v7574_v37 = vor.u32 %v8252_v7, %v7573_v23  ;;  %v7565_v29 = vld [vmem:[%s12455_s2 + $0x320] sm:$0xf]  ;;  %v8250_v51 = vld [vmem:[%s12455_s2 + $0x324] sm:$0xf0] }
 0x392   :  { %v5100_v41 = vadd.f32 %v5099_v55, %v5081_v28  ;;  %v7581_v55 = vld [vmem:[%s12455_s2 + $0x340] sm:$0xf]  ;;  %v5185_v5 = vmax.f32 %v11694_v19, 0.0  ;;  %v7781_v19 = vld [vmem:[%s12455_s2 + $0x4d0] sm:$0xf] }
 0x393   :  { %v7582_v3 = vor.u32 %v8254_v1, %v7581_v55  ;;  %6017 = vmatpush.bf16.msra.mxu1 %v7798_v0  ;;  %v7566_v0 = vor.u32 %v8250_v51, %v7565_v29  ;;  %v8266_v55 = vld [vmem:[%s12455_s2 + $0x3a4] sm:$0xf0]  ;;  %v8409_v29 = vld [vmem:[#allocation2] sm:$0xff] }
 0x394   :  { %5982 = vmatpush.bf16.msrb.mxu3 %v7646_v58 }
 0x395   :  { %v11623_v45 = vpop.f32.mrf.mxu2  ;;  %v11625_v4 = vpop.f32.mrf.mxu3  ;;  %5963 = vmatpush.bf16.msrb.mxu2 %v7582_v3 }
 0x396   :  { %v5045_v21 = vadd.f32 %v11623_v45, %v5026_v49  ;;  %v8306_v45 = vld [vmem:[%s12455_s2 + $0x4e4] sm:$0xf0] }
 0x397   :  { %v11629_v52 = vpop.f32.mrf.mxu0  ;;  %v11631_v40 = vpop.f32.mrf.mxu1  ;;  %v7790_v28 = vor.u32 %v8306_v45, %v7789_v13 }
 0x398   :  { %v5083_v38 = vadd.f32 %v11629_v52, %v11668_v8  ;;  %v7726_v52 = vor.u32 %v8290_v60, %v7725_v48  ;;  %v11764_v50 = vadd.f32 %v11625_v4, %v5045_v21  ;;  %v8302_v21 = vld [vmem:[%s12455_s2 + $0x4c4] sm:$0xf0]  ;;  %v7557_v48 = vld [vmem:[%s12455_s2 + $0x310] sm:$0xf] }
 0x399   :  { %6018 = vmatpush.bf16.msra.mxu1 %v7790_v28  ;;  %5964 = vmatpush.bf16.msrb.mxu2 %v7574_v37  ;;  %v8264_v37 = vld [vmem:[%s12455_s2 + $0x394] sm:$0xf0] }
 0x39a   :  { %v5102_v15 = vadd.f32 %v11631_v40, %v5083_v38  ;;  %5999 = vmatpush.bf16.msra.mxu0 %v7726_v52  ;;  %v7718_v40 = vor.u32 %v8288_v35, %v7717_v12  ;;  %v7621_v52 = vld [vmem:[%s12455_s2 + $0x390] sm:$0xf] }
 0x39d   :  { %v11634_v31 = vpop.f32.mrf.mxu2  ;;  %v11636_v14 = vpop.f32.mrf.mxu3  ;;  %5965 = vmatpush.bf16.msrb.mxu2 %v7566_v0  ;;  %v8282_v0 = vld [vmem:[%s12455_s2 + $0x424] sm:$0xf0] }
 0x39e   :  { %v5048_v59 = vadd.f32 %v11634_v31, %v5029_v30  ;;  %v7637_v31 = vld [vmem:[%s12455_s2 + $0x3b0] sm:$0xf]  ;;  %6000 = vmatpush.bf16.msra.mxu0 %v7718_v40  ;;  %v8246_v40 = vld [vmem:[%s12455_s2 + $0x304] sm:$0xf0] }
 0x39f   :  { %v11638_v11 = vpop.f32.mrf.mxu0  ;;  %v11640_v46 = vpop.f32.mrf.mxu1  ;;  %v7638_v27 = vor.u32 %v8268_v9, %v7637_v31  ;;  %v7701_v31 = vld [vmem:[%s12455_s2 + $0x430] sm:$0xf]  ;;  %v8284_v9 = vld [vmem:[%s12455_s2 + $0x434] sm:$0xf0] }
 0x3a0   :  { %v11776_v4 = vadd.f32 %v11636_v14, %v5048_v59  ;;  %v5086_v1 = vadd.f32 %v11638_v11, %v11668_v8  ;;  %v4993_v14 = vadd.f32 %v11614_v17, %v4974_v54  ;;  %v7709_v11 = vld [vmem:[%s12455_s2 + $0x440] sm:$0xf] }
 0x3a1   :  { %5983 = vmatpush.bf16.msrb.mxu3 %v7638_v27  ;;  %v8300_v27 = vld [vmem:[%s12455_s2 + $0x4b4] sm:$0xf0] }
 0x3a2   :  { %v5105_v38 = vadd.f32 %v11640_v46, %v5086_v1  ;;  %v8248_v46 = vld [vmem:[%s12455_s2 + $0x314] sm:$0xf0]  ;;  %v5012_v45 = vadd.f32 %v11616_v62, %v4993_v14 }
 0x3a3   :  { %v7558_v28 = vor.u32 %v8248_v46, %v7557_v48  ;;  %v7685_v48 = vld [vmem:[%s12455_s2 + $0x410] sm:$0xf] }
 0x3a5   :  { %v11670_v63 = vpop.f32.mrf.mxu2  ;;  %v11672_v24 = vpop.f32.mrf.mxu3  ;;  %5966 = vmatpush.bf16.msrb.mxu2 %v7558_v28  ;;  %v8296_v28 = vld [vmem:[%s12455_s2 + $0x494] sm:$0xf0] }
 0x3a7   :  { %v11674_v36 = vpop.f32.mrf.mxu0  ;;  %v11676_v43 = vpop.f32.mrf.mxu1 }
 0x3a8   :  { %v5088_v35 = vadd.f32 %v11674_v36, %v11668_v8 }
 0x3ad   :  { %v5118_v44 = vpop.f32.mrf.mxu2  ;;  %v5137_v47 = vpop.f32.mrf.mxu3 }
 0x3ae   :  { %v5119_v53 = vadd.f32 %v5118_v44, %v5100_v41  ;;  %v8304_v41 = vld [vmem:[%s12455_s2 + $0x4d4] sm:$0xf0]  ;;  %v7629_v44 = vld [vmem:[%s12455_s2 + $0x3a0] sm:$0xf] }
 0x3af   :  { %v5156_v56 = vpop.f32.mrf.mxu0  ;;  %v5175_v33 = vpop.f32.mrf.mxu1  ;;  %v7782_v39 = vor.u32 %v8304_v41, %v7781_v19  ;;  %v7630_v3 = vor.u32 %v8266_v55, %v7629_v44  ;;  %v7622_v41 = vor.u32 %v8264_v37, %v7621_v52  ;;  %v7853_v37 = vld [vmem:[%s12455_s2 + $0x560] sm:$0xf] }
 0x3b0   :  { %v5138_v57 = vadd.f32 %v5137_v47, %v5119_v53 }
 0x3b1   :  { %6019 = vmatpush.bf16.msra.mxu1 %v7782_v39  ;;  %5984 = vmatpush.bf16.msrb.mxu3 %v7630_v3  ;;  %v7613_v39 = vld [vmem:[%s12455_s2 + $0x380] sm:$0xf]  ;;  %v8298_v3 = vld [vmem:[%s12455_s2 + $0x4a4] sm:$0xf0] }
 0x3b2   :  { %v5157_v26 = vadd.f32 %v5156_v56, %v5138_v57  ;;  %v5187_v56 = vmax.f32 %v11764_v50, 0.0  ;;  %v7773_v57 = vld [vmem:[%s12455_s2 + $0x4c0] sm:$0xf]  ;;  %v7702_v50 = vor.u32 %v8284_v9, %v7701_v31  ;;  %v8322_v31 = vld [vmem:[%s12455_s2 + $0x564] sm:$0xf0] }
 0x3b4   :  { %v5176_v16 = vadd.f32 %v5175_v33, %v5157_v26  ;;  %v5189_v33 = vmax.f32 %v11776_v4, 0.0  ;;  %v7774_v26 = vor.u32 %v8302_v21, %v7773_v57  ;;  %v7925_v57 = vld [vmem:[%s12455_s2 + $0x5f0] sm:$0xf]  ;;  %v8340_v21 = vld [vmem:[%s12455_s2 + $0x5f4] sm:$0xf0] }
 0x3b5   :  { %v5120_v34 = vpop.f32.mrf.mxu2  ;;  %v5139_v20 = vpop.f32.mrf.mxu3  ;;  %5985 = vmatpush.bf16.msrb.mxu3 %v7622_v41  ;;  %v8320_v4 = vld [vmem:[%s12455_s2 + $0x554] sm:$0xf0] }
 0x3b6   :  { %v5186_v47 = vmax.f32 %v5176_v16, 0.0  ;;  %v5121_v6 = vadd.f32 %v5120_v34, %v5102_v15  ;;  %6020 = vmatpush.bf16.msra.mxu1 %v7774_v26  ;;  %v7765_v16 = vld [vmem:[%s12455_s2 + $0x4b0] sm:$0xf]  ;;  %v7926_v26 = vor.u32 %v8340_v21, %v7925_v57  ;;  %v8275_v21 = vld [vmem:[%s12455_s2 + $0x3f4] sm:$0xf] }
 0x3b7   :  { %v5158_v42 = vpop.f32.mrf.mxu0  ;;  %v5177_v53 = vpop.f32.mrf.mxu1  ;;  %v7766_v34 = vor.u32 %v8300_v27, %v7765_v16  ;;  %v8338_v16 = vld [vmem:[%s12455_s2 + $0x5e4] sm:$0xf0] }
 0x3b8   :  { %v5193_v25 = vpack.c.bf16 %v5186_v47, %v5185_v5  ;;  %v5140_v49 = vadd.f32 %v5139_v20, %v5121_v6  ;;  %v8286_v5 = vld [vmem:[%s12455_s2 + $0x444] sm:$0xf0]  ;;  %v7549_v20 = vld [vmem:[%s12455_s2 + $0x300] sm:$0xf] }
 0x3b9   :  { %v7710_v17 = vor.u32 %v8286_v5, %v7709_v11  ;;  %v7550_v44 = vor.u32 %v8246_v40, %v7549_v20  ;;  %v8262_v47 = vld [vmem:[%s12455_s2 + $0x384] sm:$0xf0]  ;;  %v7693_v6 = vld [vmem:[%s12455_s2 + $0x420] sm:$0xf]  ;;  %v8324_v11 = vld [vmem:[%s12455_s2 + $0x574] sm:$0xf0]  ;;  %v5031_v5 = vadd.f32 %v11618_v61, %v5012_v45 }
 0x3ba   :  { %v5198_v58 = vshrl.u32 %v5193_v25, 16  ;;  %v5159_v30 = vadd.f32 %v5158_v42, %v5140_v49  ;;  %v5201_v13 = vshll.u32 %v5193_v25, 16  ;;  %v7614_v1 = vor.u32 %v8262_v47, %v7613_v39  ;;  %6021 = vmatpush.bf16.msra.mxu1 %v7766_v34  ;;  %v8280_v61 = vld [vmem:[%s12455_s2 + $0x414] sm:$0xf0]  ;;  %v8278_v34 = vld [vmem:[%s12455_s2 + $0x404] sm:$0xf0] }
 0x3bb   :  { %6001 = vmatpush.bf16.msra.mxu0 %v7710_v17  ;;  %v7694_v42 = vor.u32 %v8282_v0, %v7693_v6  ;;  %5967 = vmatpush.bf16.msrb.mxu2 %v7550_v44  ;;  %v5050_v52 = vadd.f32 %v11670_v63, %v5031_v5  ;;  %v5240_v45 = vld [vmem:[#allocation2 + $0x18] sm:$0x11]  ;;  %v7741_v20 = vld [vmem:[%s12455_s2 + $0x480] sm:$0xf]  ;;  %v7845_v6 = vld [vmem:[%s12455_s2 + $0x550] sm:$0xf] }
 0x3bc   :  { %v11802_v60 = vrot.slane %v5198_v58, 7  ;;  %v5178_v59 = vadd.f32 %v5177_v53, %v5159_v30  ;;  %v7757_v53 = vld [vmem:[%s12455_s2 + $0x4a0] sm:$0xf]  ;;  %v7861_v30 = vld [vmem:[%s12455_s2 + $0x570] sm:$0xf]  ;;  %5986 = vmatpush.bf16.msrb.mxu3 %v7614_v1 }
 0x3bd   :  { %v5123_v23 = vpop.f32.mrf.mxu2  ;;  %v5142_v7 = vpop.f32.mrf.mxu3  ;;  %v7758_v58 = vor.u32 %v8298_v3, %v7757_v53  ;;  %v7862_v17 = vor.u32 %v8324_v11, %v7861_v30  ;;  %v5069_v44 = vadd.f32 %v11672_v24, %v5050_v52  ;;  %v7846_v24 = vor.u32 %v8320_v4, %v7845_v6  ;;  %v7909_v1 = vld [vmem:[%s12455_s2 + $0x5d0] sm:$0xf]  ;;  %v8336_v53 = vld [vmem:[%s12455_s2 + $0x5d4] sm:$0xf0]  ;;  %v8259_v30 = vld [vmem:[%s12455_s2 + $0x374] sm:$0xf] }
 0x3be   :  { %v5203_v12 = vor.u32 %v5201_v13, %v11802_v60  ;;  %v5204_v62 = vrot.slane %v11802_v60, 4  ;;  %v5188_v54 = vmax.f32 %v5178_v59, 0.0  ;;  %v5124_v15 = vadd.f32 %v5123_v23, %v5105_v38  ;;  %v7607_v11 = vld [vmem:[%s12455_s2 + $0x378] sm:$0xf0]  ;;  %v7837_v52 = vld [vmem:[%s12455_s2 + $0x540] sm:$0xf] }
 0x3bf   :  { %v5161_v19 = vpop.f32.mrf.mxu0  ;;  %v5180_v55 = vpop.f32.mrf.mxu1  ;;  %6002 = vmatpush.bf16.msra.mxu0 %v7702_v50  ;;  %v5107_v38 = vadd.f32 %v11676_v43, %v5088_v35  ;;  %v7749_v43 = vld [vmem:[%s12455_s2 + $0x490] sm:$0xf]  ;;  %6022 = vmatpush.bf16.msra.mxu1 %v7758_v58  ;;  %v7677_v50 = vld [vmem:[%s12455_s2 + $0x400] sm:$0xf]  ;;  %v7910_v58 = vor.u32 %v8336_v53, %v7909_v1  ;;  %v7610_v57 = vor.u32 %v8259_v30, %v7607_v11  ;;  %v7655_v30 = vld [vmem:[%s12455_s2 + $0x3d8] sm:$0xf0] }
 0x3c0   :  { %v11841_v8 = vsel %vm9817_vm4, %v5203_v12, %v8409_v29  ;;  %v5194_v36 = vpack.c.bf16 %v5188_v54, %v5187_v56  ;;  %v5143_v51 = vadd.f32 %v5142_v7, %v5124_v15  ;;  %v7686_v7 = vor.u32 %v8280_v61, %v7685_v48  ;;  %6036 = vmatpush.bf16.msra.mxu2 %v7862_v17  ;;  %v7917_v15 = vld [vmem:[%s12455_s2 + $0x5e0] sm:$0xf]  ;;  %v7671_v48 = vld [vmem:[%s12455_s2 + $0x3f8] sm:$0xf0] }
 0x3c1   :  { %5238 = vst [vmem:[#allocation2] sm:$0xff] %v11841_v8  ;;  %v5356_v25 = vshrl.u32 %v11841_v8, 16  ;;  %6055 = vmatpush.bf16.msra.mxu3 %v7926_v26  ;;  %v7750_v35 = vor.u32 %v8296_v28, %v7749_v43  ;;  %v7918_v41 = vor.u32 %v8338_v16, %v7917_v15  ;;  %v7678_v47 = vor.u32 %v8278_v34, %v7677_v50  ;;  %v7599_v34 = vld [vmem:[%s12455_s2 + $0x368] sm:$0xf0]  ;;  %v5247_v1 = vld [vmem:[#allocation2 + $0x3c] sm:$0x11] }
 0x3c2   :  { %v5206_v49 = vshrl.u32 %v5194_v36, 16  ;;  %v5209_v14 = vshll.u32 %v5194_v36, 16  ;;  %v5162_v56 = vadd.f32 %v5161_v19, %v5143_v51  ;;  %v7854_v19 = vor.u32 %v8322_v31, %v7853_v37  ;;  %v8294_v51 = vld [vmem:[%s12455_s2 + $0x484] sm:$0xf0]  ;;  %v7901_v31 = vld [vmem:[%s12455_s2 + $0x5c0] sm:$0xf] }
 0x3c3   :  { %v11883_v46 = vrot.slane %v5356_v25, 4  ;;  %6003 = vmatpush.bf16.msra.mxu0 %v7694_v42  ;;  %6023 = vmatpush.bf16.msra.mxu1 %v7750_v35  ;;  %v7821_v11 = vld [vmem:[%s12455_s2 + $0x520] sm:$0xf] }
 0x3c4   :  { %v5208_v13 = vrot.slane %v5206_v49, 7  ;;  %v5181_v59 = vadd.f32 %v5180_v55, %v5162_v56  ;;  %6037 = vmatpush.bf16.msra.mxu2 %v7854_v19 }
 0x3c5   :  { %v5125_v23 = vpop.f32.mrf.mxu2  ;;  %v5144_v27 = vpop.f32.mrf.mxu3  ;;  %6056 = vmatpush.bf16.msra.mxu3 %v7918_v41 }
 0x3c6   :  { %v5211_v9 = vor.u32 %v5209_v14, %v5208_v13  ;;  %v5213_v12 = vrot.slane %v5208_v13, 4  ;;  %v5190_v63 = vmax.f32 %v5181_v59, 0.0  ;;  %v5126_v54 = vadd.f32 %v5125_v23, %v5107_v38  ;;  %v5243_v23 = vld [vmem:[#allocation2 + $0x24] sm:$0xff] }
 0x3c7   :  { %v5163_v60 = vpop.f32.mrf.mxu0  ;;  %6004 = vmatpush.bf16.msra.mxu0 %v7686_v7  ;;  %v5182_v42 = vpop.f32.mrf.mxu1  ;;  %v5191_v13 = vmax.f32 %v5069_v44, 0.0 }
 0x3c8   :  { %v11914_v40 = vsel %vm9630_vm6, %v5204_v62, %v5211_v9  ;;  %v5241_v39 = vsel %vm9729_vm12, %v5213_v12, %v5240_v45  ;;  %v5195_v29 = vpack.c.bf16 %v5190_v63, %v5189_v33  ;;  %v5145_v36 = vadd.f32 %v5144_v27, %v5126_v54  ;;  %v7533_v61 = vld [vmem:[#allocation2] sm:$0xf]  ;;  %v8341_v43 = vld [vmem:[#allocation2 + $0x4] sm:$0xf]  ;;  %6038 = vmatpush.bf16.msra.mxu2 %v7846_v24  ;;  %v8318_v45 = vld [vmem:[%s12455_s2 + $0x544] sm:$0xf0] }
 0x3c9   :  { %5239 = vst [vmem:[#allocation2 + $0xc] sm:$0xff] %v11914_v40  ;;  %v7742_v62 = vor.u32 %v8294_v51, %v7741_v20  ;;  %v5359_v33 = vshll.u32 %v11841_v8, 16  ;;  %v5365_v25 = vshll.u32 %v11914_v40, 16  ;;  %v5369_v8 = vshrl.u32 %v11914_v40, 16  ;;  %6057 = vmatpush.bf16.msra.mxu3 %v7910_v58  ;;  %v8334_v9 = vld [vmem:[%s12455_s2 + $0x5c4] sm:$0xf0] }
 0x3ca   :  { %5242 = vst [vmem:[#allocation2 + $0x18] sm:$0x11] %v5241_v39  ;;  %v5215_v0 = vshrl.u32 %v5195_v29, 16  ;;  %v5164_v55 = vadd.f32 %v5163_v60, %v5145_v36  ;;  %v5218_v14 = vshll.u32 %v5195_v29, 16  ;;  %v7838_v37 = vor.u32 %v8318_v45, %v7837_v52  ;;  %v8257_v27 = vld [vmem:[%s12455_s2 + $0x364] sm:$0xf] }
 0x3cb   :  { %v5361_v3 = vrot.slane %v5359_v33, 5  ;;  %6005 = vmatpush.bf16.msra.mxu0 %v7678_v47  ;;  %v5367_v38 = vrot.slane %v5365_v25, 5  ;;  %v5371_v17 = vrot.slane %v5369_v8, 4  ;;  %6024 = vmatpush.bf16.msra.mxu1 %v7742_v62  ;;  %v7902_v16 = vor.u32 %v8334_v9, %v7901_v31  ;;  %v8273_v51 = vld [vmem:[%s12455_s2 + $0x3e4] sm:$0xf] }
 0x3cc   :  { %v11940_v49 = vrot.slane %v5215_v0, 7  ;;  %v5183_v56 = vadd.f32 %v5182_v42, %v5164_v55  ;;  %6039 = vmatpush.bf16.msra.mxu2 %v7838_v37  ;;  %v7602_v44 = vor.u32 %v8257_v27, %v7599_v34  ;;  %v7663_v60 = vld [vmem:[%s12455_s2 + $0x3e8] sm:$0xf0]  ;;  %v7829_v47 = vld [vmem:[%s12455_s2 + $0x530] sm:$0xf] }
 0x3cd   :  { %v5362_v5 = vor.u32 %v5361_v3, %v11883_v46  ;;  %v7674_v46 = vor.u32 %v8275_v21, %v7671_v48  ;;  %v5372_v28 = vor.u32 %v5371_v17, %v5367_v38  ;;  %v8316_v62 = vld [vmem:[%s12455_s2 + $0x534] sm:$0xf0]  ;;  %6058 = vmatpush.bf16.msra.mxu3 %v7902_v16  ;;  %v7666_v33 = vor.u32 %v8273_v51, %v7663_v60  ;;  %v7893_v55 = vld [vmem:[%s12455_s2 + $0x5b0] sm:$0xf]  ;;  %v8255_v3 = vld [vmem:[%s12455_s2 + $0x354] sm:$0xf] }
 0x3ce   :  { %v5220_v59 = vor.u32 %v5218_v14, %v11940_v49  ;;  %v5192_v26 = vmax.f32 %v5183_v56, 0.0  ;;  %v5221_v35 = vrot.slane %v11940_v49, 4  ;;  %v7830_v0 = vor.u32 %v8316_v62, %v7829_v47  ;;  %v8332_v24 = vld [vmem:[%s12455_s2 + $0x5b4] sm:$0xf0]  ;;  %v7591_v25 = vld [vmem:[%s12455_s2 + $0x358] sm:$0xf0] }
 0x3cf   :  { %v5363_v7 = vrot.slane %v5362_v5, 4  ;;  %6074 = vmatpush.bf16.msrb.mxu0 %v7610_v57  ;;  %6093 = vmatpush.bf16.msrb.mxu1 %v7674_v46  ;;  %v5373_v29 = vrot.slane %v5372_v28, 4  ;;  %v7894_v53 = vor.u32 %v8332_v24, %v7893_v55  ;;  %v8271_v8 = vld [vmem:[%s12455_s2 + $0x3d4] sm:$0xf]  ;;  %v7594_v58 = vor.u32 %v8255_v3, %v7591_v25  ;;  %v8314_v21 = vld [vmem:[%s12455_s2 + $0x524] sm:$0xf0] }
 0x3d0   :  { %v11970_v12 = vsel %vm9817_vm4, %v5220_v59, %v5243_v23  ;;  %v5196_v63 = vpack.c.bf16 %v5192_v26, %v5191_v13  ;;  %v8342_v54 = vld [vmem:[#allocation2 + $0x8] sm:$0xf0]  ;;  %v7535_v15 = vld [vmem:[#allocation2 + $0xc] sm:$0xf0]  ;;  %6040 = vmatpush.bf16.msra.mxu2 %v7830_v0  ;;  %v7658_v57 = vor.u32 %v8271_v8, %v7655_v30  ;;  %v7885_v48 = vld [vmem:[%s12455_s2 + $0x5a0] sm:$0xf] }
 0x3d1   :  { %5245 = vst [vmem:[#allocation2 + $0x24] sm:$0xff] %v11970_v12  ;;  %v11977_v19 = vor.u32 %v8342_v54, %v7533_v61  ;;  %v11979_v41 = vor.u32 %v8341_v43, %v7535_v15  ;;  %v11981_v32 = vld [vmem:[#allocation2 + $0x18] sm:$0x11]  ;;  %v5368_v50 = vsel %vm10050_vm15, %v5363_v7, %v5367_v38  ;;  %v8330_v13 = vld [vmem:[%s12455_s2 + $0x5a4] sm:$0xf0]  ;;  %6059 = vmatpush.bf16.msra.mxu3 %v7894_v53  ;;  %v5380_v23 = vshrl.u32 %v11970_v12, 16 }
 0x3d2   :  { %v5223_v20 = vshrl.u32 %v5196_v63, 16  ;;  %v5226_v39 = vshll.u32 %v5196_v63, 16  ;;  %v5375_v36 = vshll.u32 %v11981_v32, 16  ;;  %v5443_v42 = vunpack.c.l.b16 %v5368_v50  ;;  %v8253_v46 = vld [vmem:[%s12455_s2 + $0x344] sm:$0xf] }
 0x3d3   :  { %5968 = vmatmul.bf16.vlgmr.msrb.gmra.mxu2 %v11977_v19  ;;  %5987 = vmatmul.bf16.vlgmr.msrb.gmra.mxu3 %v11979_v41  ;;  %v5444_v38 = vunpack.c.h.b16 %v5368_v50  ;;  %v7822_v61 = vor.u32 %v8314_v21, %v7821_v11  ;;  %v7886_v43 = vor.u32 %v8330_v13, %v7885_v48  ;;  %v7586_v7 = vor.u32 %v8253_v46, %v7583_v18  ;;  %v7647_v28 = vld [vmem:[%s12455_s2 + $0x3c8] sm:$0xf0]  ;;  %v7813_v37 = vld [vmem:[%s12455_s2 + $0x510] sm:$0xf]  ;;  %v8312_v9 = vld [vmem:[%s12455_s2 + $0x514] sm:$0xf0] }
 0x3d4   :  { %v5225_v6 = vrot.slane %v5223_v20, 7  ;;  %v5377_v4 = vrot.slane %v5375_v36, 5  ;;  %6075 = vmatpush.bf16.msrb.mxu0 %v7602_v44  ;;  %6094 = vmatpush.bf16.msrb.mxu1 %v7666_v33  ;;  %v7650_v31 = vor.u32 %v8269_v22, %v7647_v28  ;;  %v7877_v63 = vld [vmem:[%s12455_s2 + $0x590] sm:$0xf]  ;;  %v8328_v54 = vld [vmem:[%s12455_s2 + $0x594] sm:$0xf0]  ;;  %v7814_v15 = vor.u32 %v8312_v9, %v7813_v37 }
 0x3d5   :  { %6041 = vmatpush.bf16.msra.mxu2 %v7822_v61  ;;  %6060 = vmatpush.bf16.msra.mxu3 %v7886_v43  ;;  %v7878_v16 = vor.u32 %v8328_v54, %v7877_v63  ;;  %v5382_v27 = vrot.slane %v5380_v23, 4  ;;  %v8251_v50 = vld [vmem:[%s12455_s2 + $0x334] sm:$0xf]  ;;  %v7575_v34 = vld [vmem:[%s12455_s2 + $0x338] sm:$0xf0]  ;;  %v5416_v13 = vrot.slane %v11981_v32, 5 }
 0x3d6   :  { %v5228_v49 = vor.u32 %v5226_v39, %v5225_v6  ;;  %v5230_v14 = vrot.slane %v5225_v6, 4  ;;  %v5378_v56 = vsel %vm10050_vm15, %v5373_v29, %v5377_v4  ;;  %v7578_v29 = vor.u32 %v8251_v50, %v7575_v34  ;;  %v8267_v36 = vld [vmem:[%s12455_s2 + $0x3b4] sm:$0xf]  ;;  %v7805_v62 = vld [vmem:[%s12455_s2 + $0x500] sm:$0xf] }
 0x3d7   :  { %v5445_v5 = vunpack.c.l.b16 %v5378_v56  ;;  %v5446_v17 = vunpack.c.h.b16 %v5378_v56  ;;  %v8310_v6 = vld [vmem:[%s12455_s2 + $0x504] sm:$0xf0]  ;;  %v5413_v4 = vrot.slane %v11914_v40, 5  ;;  %v7869_v24 = vld [vmem:[%s12455_s2 + $0x580] sm:$0xf] }
 0x3d8   :  { %v12037_v59 = vsel %vm9630_vm6, %v5221_v35, %v5228_v49  ;;  %v5248_v26 = vsel %vm9729_vm12, %v5230_v14, %v5247_v1  ;;  %6076 = vmatpush.bf16.msrb.mxu0 %v7594_v58  ;;  %6095 = vmatpush.bf16.msrb.mxu1 %v7658_v57  ;;  %v5383_v35 = vshll.u32 %v11970_v12, 16  ;;  %v7639_v12 = vld [vmem:[%s12455_s2 + $0x3b8] sm:$0xf0]  ;;  %v7541_v51 = vld [vmem:[#allocation2 + $0x24] sm:$0xf]  ;;  %v7806_v55 = vor.u32 %v8310_v6, %v7805_v62 }
 0x3d9   :  { %5246 = vst [vmem:[#allocation2 + $0x30] sm:$0xff] %v12037_v59  ;;  %v12045_v52 = vpack.c.b16 %v5445_v5, %v5443_v42  ;;  %v12047_v45 = vpack.c.b16 %v5446_v17, %v5444_v38  ;;  %v5389_v20 = vshll.u32 %v12037_v59, 16  ;;  %v5393_v39 = vshrl.u32 %v12037_v59, 16  ;;  %v8343_v44 = vld [vmem:[#allocation2 + $0x28] sm:$0xf]  ;;  %6042 = vmatpush.bf16.msra.mxu2 %v7814_v15  ;;  %6061 = vmatpush.bf16.msra.mxu3 %v7878_v16 }
 0x3da   :  { %5249 = vst [vmem:[#allocation2 + $0x3c] sm:$0x11] %v5248_v26  ;;  %v5385_v60 = vrot.slane %v5383_v35, 5  ;;  %v7642_v47 = vor.u32 %v8267_v36, %v7639_v12  ;;  %v8326_v1 = vld [vmem:[%s12455_s2 + $0x584] sm:$0xf0]  ;;  %v5415_v57 = vrot.slane %v5413_v4, 4 }
 0x3db   :  { %6006 = vmatmul.bf16.vlgmr.msra.gmra.mxu0 %v12045_v52  ;;  %6025 = vmatmul.bf16.vlgmr.msra.gmra.mxu1 %v12047_v45  ;;  %v5391_v33 = vrot.slane %v5389_v20, 5  ;;  %v5395_v0 = vrot.slane %v5393_v39, 4  ;;  %v7870_v25 = vor.u32 %v8326_v1, %v7869_v24  ;;  %v8249_v8 = vld [vmem:[%s12455_s2 + $0x324] sm:$0xf]  ;;  %v7567_v30 = vld [vmem:[%s12455_s2 + $0x328] sm:$0xf0] }
 0x3dc   :  { %6077 = vmatpush.bf16.msrb.mxu0 %v7586_v7  ;;  %6096 = vmatpush.bf16.msrb.mxu1 %v7650_v31  ;;  %v5386_v3 = vor.u32 %v5385_v60, %v5382_v27  ;;  %v12113_v11 = vld [vmem:[#allocation2] sm:$0xee]  ;;  %v7570_v17 = vor.u32 %v8249_v8, %v7567_v30  ;;  %v7631_v26 = vld [vmem:[%s12455_s2 + $0x3a8] sm:$0xf0]  ;;  %v8291_v61 = vld [vmem:[%s12455_s2 + $0x474] sm:$0xf]  ;;  %v5417_v1 = vsel %vm10071_vm3, %v5415_v57, %v5416_v13 }
 0x3dd   :  { %v5396_v58 = vor.u32 %v5395_v0, %v5391_v33  ;;  %6043 = vmatpush.bf16.msra.mxu2 %v7806_v55  ;;  %v8265_v21 = vld [vmem:[%s12455_s2 + $0x3a4] sm:$0xf]  ;;  %v7529_v48 = vrot.slane %v12113_v11, 9  ;;  %6062 = vmatpush.bf16.msra.mxu3 %v7870_v25  ;;  %v7735_v23 = vld [vmem:[%s12455_s2 + $0x478] sm:$0xf0]  ;;  %v5462_v13 = vunpack.c.h.b16 %v5417_v1 }
 0x3de   :  { %v5387_v5 = vrot.slane %v5386_v3, 4  ;;  %v7634_v22 = vor.u32 %v8265_v21, %v7631_v26  ;;  %v8307_v32 = vld [vmem:[%s12455_s2 + $0x4f4] sm:$0xf]  ;;  %v7799_v7 = vld [vmem:[%s12455_s2 + $0x4f8] sm:$0xf0]  ;;  %v7738_v9 = vor.u32 %v8291_v61, %v7735_v23 }
 0x3df   :  { %v5397_v46 = vrot.slane %v5396_v58, 4  ;;  %v8247_v28 = vld [vmem:[%s12455_s2 + $0x314] sm:$0xf]  ;;  %v7559_v37 = vld [vmem:[%s12455_s2 + $0x318] sm:$0xf0]  ;;  %v7802_v63 = vor.u32 %v8307_v32, %v7799_v7  ;;  %v5414_v8 = vsel %vm10071_vm3, %v7529_v48, %v5413_v4  ;;  %v5461_v48 = vunpack.c.l.b16 %v5417_v1 }
 0x3e0   :  { %v8344_v42 = vld [vmem:[#allocation2 + $0x2c] sm:$0xf0]  ;;  %v7543_v53 = vld [vmem:[#allocation2 + $0x30] sm:$0xf0]  ;;  %6078 = vmatpush.bf16.msrb.mxu0 %v7578_v29  ;;  %6097 = vmatpush.bf16.msrb.mxu1 %v7642_v47  ;;  %v5392_v43 = vsel %vm10050_vm15, %v5387_v5, %v5391_v33  ;;  %v7562_v54 = vor.u32 %v8247_v28, %v7559_v37  ;;  %v7623_v16 = vld [vmem:[%s12455_s2 + $0x398] sm:$0xf0]  ;;  %v5460_v23 = vunpack.c.h.b16 %v5414_v8 }
 0x3e1   :  { %v12104_v49 = vor.u32 %v8344_v42, %v7541_v51  ;;  %v12106_v14 = vor.u32 %v8343_v44, %v7543_v53  ;;  %v12108_v56 = vld [vmem:[#allocation2 + $0x3c] sm:$0x11]  ;;  %v8263_v15 = vld [vmem:[%s12455_s2 + $0x394] sm:$0xf]  ;;  %v8289_v27 = vld [vmem:[%s12455_s2 + $0x464] sm:$0xf]  ;;  %v5447_v35 = vunpack.c.l.b16 %v5392_v43  ;;  %v5448_v10 = vunpack.c.h.b16 %v5392_v43  ;;  %6112 = vmatpush.bf16.msrb.mxu2 %v7738_v9  ;;  %6131 = vmatpush.bf16.msrb.mxu3 %v7802_v63 }
 0x3e2   :  { %v5399_v38 = vshll.u32 %v12108_v56, 16  ;;  %v7727_v20 = vld [vmem:[%s12455_s2 + $0x468] sm:$0xf0]  ;;  %v8305_v39 = vld [vmem:[%s12455_s2 + $0x4e4] sm:$0xf]  ;;  %v7626_v36 = vor.u32 %v8263_v15, %v7623_v16 }
 0x3e3   :  { %5973 = vmatmul.bf16.gmra.mxu2 %v12104_v49  ;;  %5992 = vmatmul.bf16.gmra.mxu3 %v12106_v14  ;;  %v7791_v29 = vld [vmem:[%s12455_s2 + $0x4e8] sm:$0xf0]  ;;  %v7730_v12 = vor.u32 %v8289_v27, %v7727_v20  ;;  %v8245_v44 = vld [vmem:[%s12455_s2 + $0x304] sm:$0xf]  ;;  %v8287_v55 = vld [vmem:[%s12455_s2 + $0x454] sm:$0xf] }
 0x3e4   :  { %v5401_v18 = vrot.slane %v5399_v38, 5  ;;  %6079 = vmatpush.bf16.msrb.mxu0 %v7570_v17  ;;  %6098 = vmatpush.bf16.msrb.mxu1 %v7634_v22  ;;  %v7794_v51 = vor.u32 %v8305_v39, %v7791_v29  ;;  %v7551_v60 = vld [vmem:[%s12455_s2 + $0x308] sm:$0xf0]  ;;  %v8261_v47 = vld [vmem:[%s12455_s2 + $0x384] sm:$0xf]  ;;  %v5459_v22 = vunpack.c.l.b16 %v5414_v8  ;;  %v5420_v20 = vrot.slane %v12037_v59, 5 }
 0x3e5   :  { %v7554_v33 = vor.u32 %v8245_v44, %v7551_v60  ;;  %v7615_v0 = vld [vmem:[%s12455_s2 + $0x388] sm:$0xf0]  ;;  %v7719_v24 = vld [vmem:[%s12455_s2 + $0x458] sm:$0xf0]  ;;  %v8303_v53 = vld [vmem:[%s12455_s2 + $0x4d4] sm:$0xf]  ;;  %6113 = vmatpush.bf16.msrb.mxu2 %v7730_v12 }
 0x3e6   :  { %v5402_v31 = vsel %vm10050_vm15, %v5397_v46, %v5401_v18  ;;  %v7618_v42 = vor.u32 %v8261_v47, %v7615_v0  ;;  %v7783_v3 = vld [vmem:[%s12455_s2 + $0x4d8] sm:$0xf0]  ;;  %v8323_v25 = vld [vmem:[%s12455_s2 + $0x574] sm:$0xf]  ;;  %v7722_v58 = vor.u32 %v8287_v55, %v7719_v24  ;;  %6132 = vmatpush.bf16.msrb.mxu3 %v7794_v51  ;;  %v8285_v4 = vld [vmem:[%s12455_s2 + $0x444] sm:$0xf]  ;;  %v12249_v63 = vpack.c.b16 %v5461_v48, %v5459_v22 }
 0x3e7   :  { %v5449_v50 = vunpack.c.l.b16 %v5402_v31  ;;  %v5450_v34 = vunpack.c.h.b16 %v5402_v31  ;;  %v7863_v30 = vld [vmem:[%s12455_s2 + $0x578] sm:$0xf0]  ;;  %v8339_v11 = vld [vmem:[%s12455_s2 + $0x5f4] sm:$0xf]  ;;  %v7786_v38 = vor.u32 %v8303_v53, %v7783_v3  ;;  %v7711_v57 = vld [vmem:[%s12455_s2 + $0x448] sm:$0xf0] }
 0x3e8   :  { %6080 = vmatpush.bf16.msrb.mxu0 %v7562_v54  ;;  %6099 = vmatpush.bf16.msrb.mxu1 %v7626_v36  ;;  %v7927_v5 = vld [vmem:[%s12455_s2 + $0x5f8] sm:$0xf0]  ;;  %v7866_v40 = vor.u32 %v8323_v25, %v7863_v30  ;;  %v8301_v21 = vld [vmem:[%s12455_s2 + $0x4c4] sm:$0xf]  ;;  %v7775_v26 = vld [vmem:[%s12455_s2 + $0x4c8] sm:$0xf0]  ;;  %v7714_v7 = vor.u32 %v8285_v4, %v7711_v57  ;;  %v12251_v54 = vpack.c.b16 %v5462_v13, %v5460_v23 }
 0x3e9   :  { %v12177_v62 = vpack.c.b16 %v5449_v50, %v5447_v35  ;;  %v12179_v6 = vpack.c.b16 %v5450_v34, %v5448_v10  ;;  %v7930_v17 = vor.u32 %v8339_v11, %v7927_v5  ;;  %v8321_v61 = vld [vmem:[%s12455_s2 + $0x564] sm:$0xf]  ;;  %v7855_v43 = vld [vmem:[%s12455_s2 + $0x568] sm:$0xf0]  ;;  %6114 = vmatpush.bf16.msrb.mxu2 %v7722_v58  ;;  %v7778_v28 = vor.u32 %v8301_v21, %v7775_v26  ;;  %v8283_v37 = vld [vmem:[%s12455_s2 + $0x434] sm:$0xf] }
 0x3ea   :  { %v7858_v46 = vor.u32 %v8321_v61, %v7855_v43  ;;  %v8337_v18 = vld [vmem:[%s12455_s2 + $0x5e4] sm:$0xf]  ;;  %v7919_v32 = vld [vmem:[%s12455_s2 + $0x5e8] sm:$0xf0]  ;;  %6133 = vmatpush.bf16.msrb.mxu3 %v7786_v38  ;;  %v7703_v31 = vld [vmem:[%s12455_s2 + $0x438] sm:$0xf0] }
 0x3eb   :  { %6011 = vmatmul.bf16.gmra.mxu0 %v12177_v62  ;;  %6030 = vmatmul.bf16.gmra.mxu1 %v12179_v6  ;;  %v8299_v9 = vld [vmem:[%s12455_s2 + $0x4b4] sm:$0xf]  ;;  %v7922_v15 = vor.u32 %v8337_v18, %v7919_v32  ;;  %v7767_v16 = vld [vmem:[%s12455_s2 + $0x4b8] sm:$0xf0]  ;;  %v8317_v39 = vld [vmem:[%s12455_s2 + $0x544] sm:$0xf]  ;;  %v7706_v36 = vor.u32 %v8283_v37, %v7703_v31 }
 0x3ec   :  { %6081 = vmatpush.bf16.msrb.mxu0 %v7554_v33  ;;  %6100 = vmatpush.bf16.msrb.mxu1 %v7618_v42  ;;  %v8319_v27 = vld [vmem:[%s12455_s2 + $0x554] sm:$0xf]  ;;  %v7847_v35 = vld [vmem:[%s12455_s2 + $0x558] sm:$0xf0]  ;;  %v5404_v29 = vld [vmem:[#allocation2 + $0x24] sm:$0xee]  ;;  %v7770_v12 = vor.u32 %v8299_v9, %v7767_v16 }
 0x3ed   :  { %v7850_v50 = vor.u32 %v8319_v27, %v7847_v35  ;;  %v8335_v10 = vld [vmem:[%s12455_s2 + $0x5d4] sm:$0xf]  ;;  %v7911_v34 = vld [vmem:[%s12455_s2 + $0x5d8] sm:$0xf0]  ;;  %6115 = vmatpush.bf16.msrb.mxu2 %v7714_v7  ;;  %v8281_v51 = vld [vmem:[%s12455_s2 + $0x424] sm:$0xf] }
 0x3ee   :  { %6134 = vmatpush.bf16.msrb.mxu3 %v7778_v28  ;;  %v7839_v44 = vld [vmem:[%s12455_s2 + $0x548] sm:$0xf0]  ;;  %v7914_v60 = vor.u32 %v8335_v10, %v7911_v34  ;;  %v8297_v47 = vld [vmem:[%s12455_s2 + $0x4a4] sm:$0xf]  ;;  %v5423_v0 = vrot.slane %v12108_v56, 5  ;;  %v7530_v3 = vrot.slane %v5404_v29, 9 }
 0x3ef   :  { %v7695_v59 = vld [vmem:[%s12455_s2 + $0x428] sm:$0xf0]  ;;  %v7842_v55 = vor.u32 %v8317_v39, %v7839_v44  ;;  %v8333_v24 = vld [vmem:[%s12455_s2 + $0x5c4] sm:$0xf]  ;;  %v8315_v42 = vld [vmem:[%s12455_s2 + $0x534] sm:$0xf] }
 0x3f0   :  { %6150 = vmatpush.bf16.msra.mxu0 %v7866_v40  ;;  %6169 = vmatpush.bf16.msra.mxu1 %v7930_v17  ;;  %v7759_v33 = vld [vmem:[%s12455_s2 + $0x4a8] sm:$0xf0]  ;;  %v7831_v53 = vld [vmem:[%s12455_s2 + $0x538] sm:$0xf0]  ;;  %v5422_v56 = vrot.slane %v5420_v20, 4  ;;  %v7698_v25 = vor.u32 %v8281_v51, %v7695_v59  ;;  %v5421_v13 = vsel %vm10071_vm3, %v7530_v3, %v5420_v20 }
 0x3f1   :  { %v7903_v1 = vld [vmem:[%s12455_s2 + $0x5c8] sm:$0xf0]  ;;  %6116 = vmatpush.bf16.msrb.mxu2 %v7706_v36  ;;  %v7762_v8 = vor.u32 %v8297_v47, %v7759_v33  ;;  %v8279_v58 = vld [vmem:[%s12455_s2 + $0x414] sm:$0xf]  ;;  %v7687_v11 = vld [vmem:[%s12455_s2 + $0x418] sm:$0xf0]  ;;  %v7834_v17 = vor.u32 %v8315_v42, %v7831_v53  ;;  %v5463_v28 = vunpack.c.l.b16 %v5421_v13  ;;  %v5464_v37 = vunpack.c.h.b16 %v5421_v13 }
 0x3f2   :  { %6135 = vmatpush.bf16.msrb.mxu3 %v7770_v12  ;;  %v7906_v30 = vor.u32 %v8333_v24, %v7903_v1  ;;  %v8295_v5 = vld [vmem:[%s12455_s2 + $0x494] sm:$0xf]  ;;  %v7751_v38 = vld [vmem:[%s12455_s2 + $0x498] sm:$0xf0]  ;;  %v5424_v40 = vsel %vm10071_vm3, %v5422_v56, %v5423_v0  ;;  %v8313_v21 = vld [vmem:[%s12455_s2 + $0x524] sm:$0xf]  ;;  %v7690_v26 = vor.u32 %v8279_v58, %v7687_v11 }
 0x3f3   :  { %6044 = vmatmul.bf16.vlgmr.msra.gmra.mxu2 %v12249_v63  ;;  %6063 = vmatmul.bf16.vlgmr.msra.gmra.mxu3 %v12251_v54  ;;  %v8331_v4 = vld [vmem:[%s12455_s2 + $0x5b4] sm:$0xf]  ;;  %v7895_v57 = vld [vmem:[%s12455_s2 + $0x5b8] sm:$0xf0]  ;;  %v7823_v48 = vld [vmem:[%s12455_s2 + $0x528] sm:$0xf0]  ;;  %v7754_v61 = vor.u32 %v8295_v5, %v7751_v38  ;;  %v5466_v43 = vunpack.c.h.b16 %v5424_v40 }
 0x3f4   :  { %6151 = vmatpush.bf16.msra.mxu0 %v7858_v46  ;;  %6170 = vmatpush.bf16.msra.mxu1 %v7922_v15  ;;  %v7898_v46 = vor.u32 %v8331_v4, %v7895_v57  ;;  %v7679_v18 = vld [vmem:[%s12455_s2 + $0x408] sm:$0xf0]  ;;  %v7826_v23 = vor.u32 %v8313_v21, %v7823_v48  ;;  %v8329_v32 = vld [vmem:[%s12455_s2 + $0x5a4] sm:$0xf]  ;;  %v8311_v31 = vld [vmem:[%s12455_s2 + $0x514] sm:$0xf] }
 0x3f5   :  { %6117 = vmatpush.bf16.msrb.mxu2 %v7698_v25  ;;  %v7743_v22 = vld [vmem:[%s12455_s2 + $0x488] sm:$0xf0]  ;;  %v7815_v9 = vld [vmem:[%s12455_s2 + $0x518] sm:$0xf0]  ;;  %v5470_v35 = vpack.c.b16 %v5466_v43, %v5464_v37  ;;  %v8327_v34 = vld [vmem:[%s12455_s2 + $0x594] sm:$0xf] }
 0x3f6   :  { %6136 = vmatpush.bf16.msrb.mxu3 %v7762_v8  ;;  %v7887_v7 = vld [vmem:[%s12455_s2 + $0x5a8] sm:$0xf0]  ;;  %v7746_v16 = vor.u32 %v8293_v2, %v7743_v22  ;;  %v7818_v10 = vor.u32 %v8311_v31, %v7815_v9  ;;  %v7879_v20 = vld [vmem:[%s12455_s2 + $0x598] sm:$0xf0]  ;;  %v8309_v39 = vld [vmem:[%s12455_s2 + $0x504] sm:$0xf] }
 0x3f7   :  { %v7807_v29 = vld [vmem:[%s12455_s2 + $0x508] sm:$0xf0]  ;;  %v7882_v36 = vor.u32 %v8327_v34, %v7879_v20  ;;  %v8325_v51 = vld [vmem:[%s12455_s2 + $0x584] sm:$0xf]  ;;  %v8348_v59 = vld [vmem:[%s12458_s3 + $0x18] sm:$0xff] }
 0x3f8   :  { %6152 = vmatpush.bf16.msra.mxu0 %v7850_v50  ;;  %6171 = vmatpush.bf16.msra.mxu1 %v7914_v60  ;;  %v7890_v50 = vor.u32 %v8329_v32, %v7887_v7  ;;  %v7810_v12 = vor.u32 %v8309_v39, %v7807_v29  ;;  %v7871_v44 = vld [vmem:[%s12455_s2 + $0x588] sm:$0xf0]  ;;  %v8347_v47 = vld [vmem:[%s12458_s3 + $0x10] sm:$0xff]  ;;  %v12406_v42 = vld [vmem:[%s12456_s5 + $0x2] sm:$0x3] }
 0x3f9   :  { %6118 = vmatpush.bf16.msrb.mxu2 %v7690_v26  ;;  %v7874_v60 = vor.u32 %v8325_v51, %v7871_v44  ;;  %v8346_v1 = vld [vmem:[%s12458_s3 + $0x8] sm:$0xff]  ;;  %v8345_v56 = vld [vmem:[%s12458_s3] sm:$0xff]  ;;  %v5476_v58 = vperm.slane %v12406_v42, 0  ;;  %v8359_v13 = vld [vmem:[%s12458_s3 + $0x70] sm:$0xff] }
 0x3fa   :  { %6137 = vmatpush.bf16.msrb.mxu3 %v7754_v61  ;;  %v8357_v22 = vld [vmem:[%s12458_s3 + $0x60] sm:$0xff]  ;;  %v8356_v9 = vld [vmem:[%s12458_s3 + $0x58] sm:$0xff]  ;;  %v8355_v20 = vld [vmem:[%s12458_s3 + $0x50] sm:$0xff] }
 0x3fb   :  { %6082 = vmatmul.bf16.vlgmr.msrb.gmra.mxu0 %v11977_v19  ;;  %6101 = vmatmul.bf16.vlgmr.msrb.gmra.mxu1 %v11979_v41  ;;  %v8277_v19 = vld [vmem:[%s12455_s2 + $0x404] sm:$0xf]  ;;  %v5465_v41 = vunpack.c.l.b16 %v5424_v40 }
 0x3fc   :  { %6153 = vmatpush.bf16.msra.mxu0 %v7842_v55  ;;  %6172 = vmatpush.bf16.msra.mxu1 %v7906_v30  ;;  %v7682_v15 = vor.u32 %v8277_v19, %v7679_v18  ;;  %v8360_v30 = vld [vmem:[%s12458_s3 + $0x78] sm:$0xff]  ;;  %v8358_v19 = vld [vmem:[%s12458_s3 + $0x68] sm:$0xff] }
 0x3fd   :  { %v5469_v27 = vpack.c.b16 %v5465_v41, %v5463_v28 }
 0x3fe   :  { %6119 = vmatpush.bf16.msrb.mxu2 %v7682_v15  ;;  %6138 = vmatpush.bf16.msrb.mxu3 %v7746_v16 }
 0x400   :  { %6154 = vmatpush.bf16.msra.mxu0 %v7834_v17  ;;  %6173 = vmatpush.bf16.msra.mxu1 %v7898_v46 }
 0x402   :  { %6351 = vmatpush.bf16.msra.mxu3 %v8360_v30 }
 0x403   :  { %6049 = vmatmul.bf16.gmra.mxu2 %v5469_v27  ;;  %6068 = vmatmul.bf16.gmra.mxu3 %v5470_v35 }
 0x404   :  { %6155 = vmatpush.bf16.msra.mxu0 %v7826_v23  ;;  %6174 = vmatpush.bf16.msra.mxu1 %v7890_v50 }
 0x406   :  { %6352 = vmatpush.bf16.msra.mxu3 %v8359_v13 }
 0x408   :  { %6156 = vmatpush.bf16.msra.mxu0 %v7818_v10  ;;  %6175 = vmatpush.bf16.msra.mxu1 %v7882_v36 }
 0x40a   :  { %6353 = vmatpush.bf16.msra.mxu3 %v8358_v19 }
 0x40b   :  { %6087 = vmatmul.bf16.gmra.mxu0 %v12104_v49  ;;  %6106 = vmatmul.bf16.gmra.mxu1 %v12106_v14  ;;  %v8352_v49 = vld [vmem:[%s12458_s3 + $0x38] sm:$0xff]  ;;  %v8349_v14 = vld [vmem:[%s12458_s3 + $0x20] sm:$0xff] }
 0x40c   :  { %6157 = vmatpush.bf16.msra.mxu0 %v7810_v12  ;;  %6176 = vmatpush.bf16.msra.mxu1 %v7874_v60 }
 0x40d   :  { %6332 = vmatpush.bf16.msra.mxu2 %v8352_v49 }
 0x40e   :  { %6354 = vmatpush.bf16.msra.mxu3 %v8357_v22 }
 0x412   :  { %6355 = vmatpush.bf16.msra.mxu3 %v8356_v9 }
 0x413   :  { %6120 = vmatmul.bf16.vlgmr.msrb.gmra.mxu2 %v12045_v52  ;;  %6139 = vmatmul.bf16.vlgmr.msrb.gmra.mxu3 %v12047_v45  ;;  %v8351_v52 = vld [vmem:[%s12458_s3 + $0x30] sm:$0xff]  ;;  %v8350_v45 = vld [vmem:[%s12458_s3 + $0x28] sm:$0xff] }
 0x414   :  { %6333 = vmatpush.bf16.msra.mxu2 %v8351_v52 }
 0x416   :  { %6356 = vmatpush.bf16.msra.mxu3 %v8355_v20 }
 0x418   :  { %6334 = vmatpush.bf16.msra.mxu2 %v8350_v45  ;;  %v8354_v45 = vld [vmem:[%s12458_s3 + $0x48] sm:$0xff] }
 0x41a   :  { %6357 = vmatpush.bf16.msra.mxu3 %v8354_v45 }
 0x41b   :  { %6158 = vmatmul.bf16.vlgmr.msra.gmra.mxu0 %v12249_v63  ;;  %6177 = vmatmul.bf16.vlgmr.msra.gmra.mxu1 %v12251_v54 }
 0x41c   :  { %6335 = vmatpush.bf16.msra.mxu2 %v8349_v14 }
 0x420   :  { %6336 = vmatpush.bf16.msra.mxu2 %v8348_v59 }
 0x423   :  { %6125 = vmatmul.bf16.gmra.mxu2 %v12177_v62  ;;  %6144 = vmatmul.bf16.gmra.mxu3 %v12179_v6 }
 0x424   :  { %6337 = vmatpush.bf16.msra.mxu2 %v8347_v47 }
 0x428   :  { %6338 = vmatpush.bf16.msra.mxu2 %v8346_v1 }
 0x42b   :  { %6163 = vmatmul.bf16.gmra.mxu0 %v5469_v27  ;;  %6182 = vmatmul.bf16.gmra.mxu1 %v5470_v35 }
 0x42c   :  { %6339 = vmatpush.bf16.msra.mxu2 %v8345_v56 }
 0x456   :  { %v5969_v62 = vpop.f32.mrf.mxu2  ;;  %v5988_v6 = vpop.f32.mrf.mxu3 }
 0x457   :  { %v5970_v11 = vadd.f32 %v5969_v62, %v5476_v58  ;;  %v8353_v62 = vld [vmem:[%s12458_s3 + $0x40] sm:$0xff] }
 0x458   :  { %v6007_v63 = vpop.f32.mrf.mxu0  ;;  %v6026_v54 = vpop.f32.mrf.mxu1  ;;  %6358 = vmatpush.bf16.msra.mxu3 %v8353_v62 }
 0x459   :  { %v5989_v4 = vadd.f32 %v5988_v6, %v5970_v11 }
 0x45b   :  { %v6008_v21 = vadd.f32 %v6007_v63, %v5989_v4  ;;  %v5477_v63 = vperm.slane %v12406_v42, 1 }
 0x45d   :  { %v6027_v46 = vadd.f32 %v6026_v54, %v6008_v21 }
 0x45e   :  { %v5971_v33 = vpop.f32.mrf.mxu2  ;;  %v5990_v0 = vpop.f32.mrf.mxu3 }
 0x45f   :  { %v5972_v57 = vadd.f32 %v5971_v33, %v5476_v58 }
 0x460   :  { %v6009_v55 = vpop.f32.mrf.mxu0  ;;  %v6028_v24 = vpop.f32.mrf.mxu1 }
 0x461   :  { %v5991_v48 = vadd.f32 %v5990_v0, %v5972_v57 }
 0x463   :  { %v6010_v18 = vadd.f32 %v6009_v55, %v5991_v48 }
 0x465   :  { %v6029_v23 = vadd.f32 %v6028_v24, %v6010_v18 }
 0x466   :  { %v5974_v53 = vpop.f32.mrf.mxu2  ;;  %v5993_v3 = vpop.f32.mrf.mxu3 }
 0x467   :  { %v5975_v32 = vadd.f32 %v5974_v53, %v5476_v58 }
 0x468   :  { %v6012_v25 = vpop.f32.mrf.mxu0  ;;  %v6031_v8 = vpop.f32.mrf.mxu1 }
 0x469   :  { %v5994_v27 = vadd.f32 %v5993_v3, %v5975_v32 }
 0x46b   :  { %v6013_v39 = vadd.f32 %v6012_v25, %v5994_v27 }
 0x46d   :  { %v6032_v49 = vadd.f32 %v6031_v8, %v6013_v39 }
 0x46e   :  { %v5976_v5 = vpop.f32.mrf.mxu2  ;;  %v5995_v38 = vpop.f32.mrf.mxu3 }
 0x46f   :  { %v5977_v35 = vadd.f32 %v5976_v5, %v5476_v58 }
 0x470   :  { %v6014_v40 = vpop.f32.mrf.mxu0  ;;  %v6033_v17 = vpop.f32.mrf.mxu1 }
 0x471   :  { %v5996_v29 = vadd.f32 %v5995_v38, %v5977_v35 }
 0x473   :  { %v6015_v52 = vadd.f32 %v6014_v40, %v5996_v29 }
 0x475   :  { %v6034_v6 = vadd.f32 %v6033_v17, %v6015_v52 }
 0x476   :  { %v6045_v26 = vpop.f32.mrf.mxu2  ;;  %v6064_v61 = vpop.f32.mrf.mxu3 }
 0x477   :  { %v6046_v2 = vadd.f32 %v6045_v26, %v6027_v46 }
 0x478   :  { %v6083_v41 = vpop.f32.mrf.mxu0  ;;  %v6102_v43 = vpop.f32.mrf.mxu1 }
 0x479   :  { %v6065_v37 = vadd.f32 %v6064_v61, %v6046_v2  ;;  %v6084_v24 = vadd.f32 %v6083_v41, %v5477_v63 }
 0x47b   :  { %v6188_v10 = vmax.f32 %v6065_v37, 0.0  ;;  %v6103_v56 = vadd.f32 %v6102_v43, %v6084_v24 }
 0x47e   :  { %v6047_v7 = vpop.f32.mrf.mxu2  ;;  %v6066_v28 = vpop.f32.mrf.mxu3 }
 0x47f   :  { %v6048_v31 = vadd.f32 %v6047_v7, %v6029_v23 }
 0x480   :  { %v6085_v15 = vpop.f32.mrf.mxu0  ;;  %v6104_v16 = vpop.f32.mrf.mxu1 }
 0x481   :  { %v6067_v50 = vadd.f32 %v6066_v28, %v6048_v31  ;;  %v6086_v42 = vadd.f32 %v6085_v15, %v5477_v63 }
 0x483   :  { %v6190_v34 = vmax.f32 %v6067_v50, 0.0  ;;  %v6105_v40 = vadd.f32 %v6104_v16, %v6086_v42 }
 0x485   :  { %v6196_v36 = vpack.c.bf16 %v6190_v34, %v6188_v10 }
 0x486   :  { %v6050_v12 = vpop.f32.mrf.mxu2  ;;  %v6069_v51 = vpop.f32.mrf.mxu3 }
 0x487   :  { %6340 = vmatmul.bf16.vlgmr.msra.gmra.mxu2 %v6196_v36  ;;  %v6051_v14 = vadd.f32 %v6050_v12, %v6032_v49  ;;  %v8401_v49 = vld [vmem:[%s12457_s6] ss:$0 sm:$0xff] }
 0x488   :  { %v6088_v44 = vpop.f32.mrf.mxu0  ;;  %v6107_v60 = vpop.f32.mrf.mxu1 }
 0x489   :  { %v6070_v47 = vadd.f32 %v6069_v51, %v6051_v14  ;;  %v6089_v26 = vadd.f32 %v6088_v44, %v5477_v63 }
 0x48b   :  { %v6192_v53 = vmax.f32 %v6070_v47, 0.0  ;;  %v6108_v43 = vadd.f32 %v6107_v60, %v6089_v26 }
 0x48e   :  { %v6052_v54 = vpop.f32.mrf.mxu2  ;;  %v6071_v59 = vpop.f32.mrf.mxu3 }
 0x48f   :  { %v6053_v33 = vadd.f32 %v6052_v54, %v6034_v6 }
 0x490   :  { %v6090_v0 = vpop.f32.mrf.mxu0  ;;  %v6109_v55 = vpop.f32.mrf.mxu1 }
 0x491   :  { %v6072_v1 = vadd.f32 %v6071_v59, %v6053_v33  ;;  %v6091_v28 = vadd.f32 %v6090_v0, %v5477_v63 }
 0x493   :  { %v6194_v3 = vmax.f32 %v6072_v1, 0.0  ;;  %v6110_v15 = vadd.f32 %v6109_v55, %v6091_v28 }
 0x495   :  { %v6198_v25 = vpack.c.bf16 %v6194_v3, %v6192_v53 }
 0x496   :  { %v6121_v8 = vpop.f32.mrf.mxu2  ;;  %v6140_v58 = vpop.f32.mrf.mxu3 }
 0x497   :  { %v6122_v30 = vadd.f32 %v6121_v8, %v6103_v56  ;;  %6345 = vmatmul.bf16.gmra.mxu2 %v6198_v25 }
 0x498   :  { %v6159_v11 = vpop.f32.mrf.mxu0  ;;  %v6178_v5 = vpop.f32.mrf.mxu1 }
 0x499   :  { %v6141_v38 = vadd.f32 %v6140_v58, %v6122_v30 }
 0x49b   :  { %v6160_v57 = vadd.f32 %v6159_v11, %v6141_v38 }
 0x49d   :  { %v6179_v19 = vadd.f32 %v6178_v5, %v6160_v57 }
 0x49e   :  { %v6123_v17 = vpop.f32.mrf.mxu2  ;;  %v6142_v4 = vpop.f32.mrf.mxu3 }
 0x49f   :  { %v6124_v21 = vadd.f32 %v6123_v17, %v6105_v40  ;;  %v6189_v22 = vmax.f32 %v6179_v19, 0.0 }
 0x4a0   :  { %v6161_v48 = vpop.f32.mrf.mxu0  ;;  %v6180_v13 = vpop.f32.mrf.mxu1 }
 0x4a1   :  { %v6143_v61 = vadd.f32 %v6142_v4, %v6124_v21 }
 0x4a3   :  { %v6162_v41 = vadd.f32 %v6161_v48, %v6143_v61 }
 0x4a5   :  { %v6181_v46 = vadd.f32 %v6180_v13, %v6162_v41 }
 0x4a6   :  { %v6126_v18 = vpop.f32.mrf.mxu2  ;;  %v6145_v2 = vpop.f32.mrf.mxu3 }
 0x4a7   :  { %v6191_v23 = vmax.f32 %v6181_v46, 0.0  ;;  %v6127_v32 = vadd.f32 %v6126_v18, %v6108_v43 }
 0x4a8   :  { %v6164_v7 = vpop.f32.mrf.mxu0  ;;  %v6183_v31 = vpop.f32.mrf.mxu1 }
 0x4a9   :  { %v6197_v37 = vpack.c.bf16 %v6191_v23, %v6189_v22  ;;  %v6146_v9 = vadd.f32 %v6145_v2, %v6127_v32 }
 0x4ab   :  { %6359 = vmatmul.bf16.vlgmr.msra.gmra.mxu3 %v6197_v37  ;;  %v6165_v27 = vadd.f32 %v6164_v7, %v6146_v9 }
 0x4ad   :  { %v6184_v20 = vadd.f32 %v6183_v31, %v6165_v27 }
 0x4ae   :  { %v6128_v16 = vpop.f32.mrf.mxu2  ;;  %v6147_v50 = vpop.f32.mrf.mxu3 }
 0x4af   :  { %v6129_v35 = vadd.f32 %v6128_v16, %v6110_v15  ;;  %v6193_v12 = vmax.f32 %v6184_v20, 0.0 }
 0x4b0   :  { %v6166_v34 = vpop.f32.mrf.mxu0  ;;  %v6185_v29 = vpop.f32.mrf.mxu1 }
 0x4b1   :  { %v6148_v10 = vadd.f32 %v6147_v50, %v6129_v35 }
 0x4b3   :  { %v6167_v39 = vadd.f32 %v6166_v34, %v6148_v10 }
 0x4b5   :  { %v6186_v36 = vadd.f32 %v6185_v29, %v6167_v39 }
 0x4b7   :  { %v6195_v51 = vmax.f32 %v6186_v36, 0.0 }
 0x4b9   :  { %v6199_v44 = vpack.c.bf16 %v6195_v51, %v6193_v12 }
 0x4bb   :  { %6364 = vmatmul.bf16.gmra.mxu3 %v6199_v44 }
 0x50a   :  { %v6341_v60 = vpop.f32.mrf.mxu2 }
 0x50b   :  { %v6342_v52 = vadd.f32 %v8401_v49, %v6341_v60 }
 0x512   :  { %v6343_v45 = vpop.f32.mrf.mxu2 }
 0x513   :  { %v6344_v6 = vadd.f32 %v8401_v49, %v6343_v45 }
 0x51a   :  { %v6346_v59 = vpop.f32.mrf.mxu2 }
 0x51b   :  { %v6347_v47 = vadd.f32 %v8401_v49, %v6346_v59 }
 0x522   :  { %v6348_v55 = vpop.f32.mrf.mxu2 }
 0x523   :  { %v6349_v24 = vadd.f32 %v8401_v49, %v6348_v55 }
 0x52e   :  { %v6360_v14 = vpop.f32.mrf.mxu3 }
 0x52f   :  { %v6361_v62 = vadd.f32 %v6360_v14, %v6342_v52 }
 0x531   :  { %6370 = vst [vmem:[%s12459_s7] sm:$0xff] %v6361_v62 }
 0x536   :  { %v6362_v63 = vpop.f32.mrf.mxu3 }
 0x537   :  { %v6363_v54 = vadd.f32 %v6362_v63, %v6344_v6 }
 0x539   :  { %6371 = vst [vmem:[%s12459_s7 + $0x8] sm:$0xff] %v6363_v54 }
 0x53e   :  { %v6365_v33 = vpop.f32.mrf.mxu3 }
 0x53f   :  { %v6366_v0 = vadd.f32 %v6365_v33, %v6347_v47 }
 0x541   :  { %6372 = vst [vmem:[%s12459_s7 + $0x10] sm:$0xff] %v6366_v0 }
 0x546   :  { %v6367_v1 = vpop.f32.mrf.mxu3 }
 0x547   :  { %v6368_v53 = vadd.f32 %v6367_v1, %v6349_v24 }
 0x549   :  { %6373 = vst [vmem:[%s12459_s7 + $0x18] sm:$0xff] %v6368_v53 }

</bundles_post_ra>
